<compile_context>
chip_gen: v5e
topology: v5e:2x2
jax: 0.10.0
libtpu: 0.0.40
codegen_flags: <defaults>
</compile_context>

<pallas_src>
import jax
import jax.numpy as jnp
from jax.experimental import pallas as pl
from jax.experimental.pallas import tpu as pltpu

# ---- hyperparameters mirroring args in CNN.__init__ (time_intervals=52, soil_depths=6) ----
TIME_INTERVALS = 52
NUM_WEATHER_VARS = 6
NUM_MGMT_VARS = 2            # total management vars in the flat feature vector
NUM_MGMT_THIS_CROP = 1       # len(progress_indices) / time_intervals
NUM_SOIL_VARS = 4
SOIL_DEPTHS = 6
NUM_EXTRA = 6                # num_extra_vars + len(output_names)

N_W = TIME_INTERVALS * NUM_WEATHER_VARS      # 312
N_M = TIME_INTERVALS * NUM_MGMT_VARS         # 104
N_S = SOIL_DEPTHS * NUM_SOIL_VARS            # 24
N_FEAT = N_W + N_M + N_S + NUM_EXTRA         # 446
OUT_DIM = 80 + 40 + NUM_EXTRA                # 126

# progress_indices = columns of the first management variable (contiguous block)
PROGRESS_INDICES = jnp.arange(N_W, N_W + TIME_INTERVALS)

WM_CIN_PAD = 8                               # 7 real channels (6 weather + 1 mgmt) -> 8
WM_K1 = 9
WM_L1 = TIME_INTERVALS - WM_K1 + 1           # 44
S_K1 = 3
S_L1 = SOIL_DEPTHS - S_K1 + 1                # 4
OUT_PAD = 128                                # lane-dense kernel output width


# --------------------------------- the kernel --------------------------------
def cnn_kernel(pw_ref, ps_ref,
               w1_ref, b1_ref, w2_ref, b2_ref, w3_ref, b3_ref, w4_ref, b4_ref,
               s1_ref, sb1_ref, s2_ref, sb2_ref, s3_ref, sb3_ref,
               wfc_ref, bfc_ref, out_ref):
    tb = out_ref.shape[0]

    def dense(x2d, w_ref, b_ref):
        # bf16 operands, f32 accumulation, bias + ReLU in f32.
        y = jnp.dot(x2d.astype(jnp.bfloat16), w_ref[...],
                    preferred_element_type=jnp.float32)
        return jnp.maximum(y + b_ref[...], 0.0)

    def conv_im2col(x, w_ref, b_ref, k):
        # x: (L, tb, Cin) f32 with Cin % 128 == 0 -> aligned lane concat,
        # single MXU dot of the (Lout*tb, K*Cin) patch matrix.
        l, _, cin = x.shape
        lout = l - k + 1
        patches = jnp.concatenate([x[t:t + lout] for t in range(k)], axis=-1)
        y = dense(patches.reshape(lout * tb, k * cin), w_ref, b_ref)
        return y.reshape(lout, tb, w_ref.shape[1])

    def conv_taps(x, w_ref, b_ref, k):
        # Tiny soil convs: per-tap dots (rows = Lout*tb <= 4*tb).
        l, _, cin = x.shape
        lout = l - k + 1
        cout = w_ref.shape[1]
        acc = jnp.zeros((lout * tb, cout), jnp.float32)
        for t in range(k):
            xt = x[t:t + lout].reshape(lout * tb, cin).astype(jnp.bfloat16)
            acc = acc + jnp.dot(xt, w_ref[t * cin:(t + 1) * cin, :],
                                preferred_element_type=jnp.float32)
        acc = jnp.maximum(acc + b_ref[...], 0.0)
        return acc.reshape(lout, tb, cout)

    def pool2(x):
        # AvgPool1d(kernel=2, stride=2) along time (leading axis only:
        # minor (tb, C) dims untouched -> layout-preserving).
        l, _, c = x.shape
        xr = x.reshape(l // 2, 2, tb, c)
        return 0.5 * (xr[:, 0, :, :] + xr[:, 1, :, :])

    # ---- weather + management branch: (52, 7ch) -> (tb, 512) ----
    lw, _, cw = pw_ref.shape                                      # (44, tb, 72)
    h = dense(pw_ref[...].reshape(lw * tb, cw), w1_ref, b1_ref)   # (44*tb, 128)
    h = pool2(h.reshape(lw, tb, w1_ref.shape[1]))                 # (22, tb, 128)
    h = pool2(conv_im2col(h, w2_ref, b2_ref, 3))                  # (10, tb, 128)
    h = pool2(conv_im2col(h, w3_ref, b3_ref, 3))                  # (4,  tb, 256)
    h = pool2(conv_im2col(h, w4_ref, b4_ref, 3))                  # (1,  tb, 512)
    h = h.reshape(tb, w4_ref.shape[1])                            # (tb, 512)

    # ---- soil branch: (6, 4ch) -> (tb, 64) ----
    ls, _, cs = ps_ref.shape                                      # (4, tb, 12)
    s = dense(ps_ref[...].reshape(ls * tb, cs), s1_ref, sb1_ref)  # (4*tb, 16)
    s = s.reshape(ls, tb, s1_ref.shape[1])                        # (4, tb, 16)
    s = conv_taps(s, s2_ref, sb2_ref, 3)                          # (2, tb, 32)
    s = conv_taps(s, s3_ref, sb3_ref, 2)                          # (1, tb, 64)
    s = s.reshape(tb, s3_ref.shape[1])                            # (tb, 64)

    # ---- fused wm_fc + s_fc -> one dot, one lane-dense 128-wide store ----
    z = jnp.concatenate([h, s], axis=1)                           # (tb, 576), 128-aligned concat
    y = jnp.dot(z.astype(jnp.bfloat16), wfc_ref[...],
                preferred_element_type=jnp.float32)
    out_ref[...] = jnp.maximum(y + bfc_ref[...], 0.0)             # (tb, 128)


# ---------------------------- weight pre-processing ---------------------------
def _prep_params(params):
    """Convert (K,Cin,Cout) conv weights to im2col (K*Cin,Cout) bf16, pad channels,
    and fuse the two FC layers into one (576,128) weight for a lane-dense output."""
    (w1, b1, w2, b2, w3, b3, w4, b4, wfc_wm, bfc_wm,
     sw1, sb1, sw2, sb2, sw3, sb3, wfc_s, bfc_s) = params

    def w2d(w, pad_cin=0, pad_cout=0):
        if pad_cin or pad_cout:
            w = jnp.pad(w, ((0, 0), (0, pad_cin), (0, pad_cout)))
        K, Cin, Cout = w.shape
        return w.reshape(K * Cin, Cout).astype(jnp.bfloat16)

    kw1 = w2d(w1, pad_cin=1, pad_cout=64)            # (72, 128)  Cin 7->8, Cout 64->128
    kb1 = jnp.pad(b1, ((0, 0), (0, 64)))             # (1, 128)
    kw2 = w2d(w2, pad_cin=64)                        # (384, 128) Cin 64->128 (zero rows)
    kw3 = w2d(w3)                                    # (384, 256)
    kw4 = w2d(w4)                                    # (768, 512)
    ks1 = w2d(sw1)                                   # (12, 16)
    ks2 = w2d(sw2)                                   # (48, 32)
    ks3 = w2d(sw3)                                   # (64, 64)

    wcomb = jnp.zeros((512 + 64, OUT_PAD), jnp.float32)
    wcomb = wcomb.at[:512, :80].set(wfc_wm)
    wcomb = wcomb.at[512:, 80:120].set(wfc_s)
    bcomb = jnp.zeros((1, OUT_PAD), jnp.float32)
    bcomb = bcomb.at[:, :80].set(bfc_wm)
    bcomb = bcomb.at[:, 80:120].set(bfc_s)

    return (kw1, kb1, kw2, b2, kw3, b3, kw4, b4,
            ks1, sb1, ks2, sb2, ks3, sb3,
            wcomb.astype(jnp.bfloat16), bcomb)


# --------------------------------- wrapper ------------------------------------
def cnn_forward(X, params):
    """X: (B, N_FEAT) float32 — flattened features, same ordering as the PyTorch module."""
    B = X.shape[0]
    kp = _prep_params(params)

    # exact PyTorch slicing semantics; progress_indices block is contiguous -> plain slice
    X_w = X[:, :N_W].reshape(B, NUM_WEATHER_VARS, TIME_INTERVALS)
    X_m = X[:, N_W:N_W + TIME_INTERVALS].reshape(B, NUM_MGMT_THIS_CROP, TIME_INTERVALS)
    X_wm = jnp.concatenate([X_w, X_m], axis=1)                    # (B, 7, 52)
    X_wm = jnp.pad(X_wm, ((0, 0), (0, 1), (0, 0)))                # (B, 8, 52) zero channel
    x_wm_tm = jnp.transpose(X_wm, (2, 0, 1))                      # (52, B, 8) time-major
    pw = jnp.concatenate([x_wm_tm[t:t + WM_L1] for t in range(WM_K1)],
                         axis=-1)                                 # (44, B, 72) conv1 im2col

    X_soil = X[:, N_W + N_M:N_W + N_M + N_S].reshape(B, NUM_SOIL_VARS, SOIL_DEPTHS)
    x_s_tm = jnp.transpose(X_soil, (2, 0, 1))                     # (6, B, 4)
    ps = jnp.concatenate([x_s_tm[t:t + S_L1] for t in range(S_K1)],
                         axis=-1)                                 # (4, B, 12) s_conv1 im2col

    X_extra = X[:, N_W + N_M + N_S:]                              # (B, 6) pure passthrough

    # batch tiling: TB multiple of 8, capped at 128 (fits v7x scoped VMEM easily)
    TB = min(128, ((B + 7) // 8) * 8)
    B_pad = ((B + TB - 1) // TB) * TB
    if B_pad != B:
        pw = jnp.pad(pw, ((0, 0), (0, B_pad - B), (0, 0)))
        ps = jnp.pad(ps, ((0, 0), (0, B_pad - B), (0, 0)))

    in_specs = ([pl.BlockSpec((WM_L1, TB, WM_K1 * WM_CIN_PAD), lambda i: (0, i, 0)),
                 pl.BlockSpec((S_L1, TB, S_K1 * NUM_SOIL_VARS), lambda i: (0, i, 0))] +
                [pl.BlockSpec(a.shape, lambda i: (0, 0)) for a in kp])  # resident weights
    out_spec = pl.BlockSpec((TB, OUT_PAD), lambda i: (i, 0))

    y = pl.pallas_call(
        cnn_kernel,
        out_shape=jax.ShapeDtypeStruct((B_pad, OUT_PAD), jnp.float32),
        grid=(B_pad // TB,),
        in_specs=in_specs,
        out_specs=out_spec,
        compiler_params=pltpu.CompilerParams(
            dimension_semantics=("parallel",)),
    )(pw, ps, *kp)

    # drop batch padding + lane padding, append X_extra (never went through the kernel)
    return jnp.concatenate([y[:B, :OUT_DIM - NUM_EXTRA], X_extra], axis=1)


# ------------------------------ parameter init --------------------------------
def init_params(key):
    ks = iter(jax.random.split(key, 32))

    def conv(K, cin, cout):
        w = jax.random.normal(next(ks), (K, cin, cout), jnp.float32) / jnp.sqrt(K * cin)
        b = jax.random.normal(next(ks), (1, cout), jnp.float32) * 0.01
        return w, b

    def linear(cin, cout):
        w = jax.random.normal(next(ks), (cin, cout), jnp.float32) / jnp.sqrt(cin)
        b = jax.random.normal(next(ks), (1, cout), jnp.float32) * 0.01
        return w, b

    w1, b1 = conv(9, NUM_WEATHER_VARS + NUM_MGMT_THIS_CROP, 64)
    w2, b2 = conv(3, 64, 128)
    w3, b3 = conv(3, 128, 256)
    w4, b4 = conv(3, 256, 512)
    wfc_wm, bfc_wm = linear(512, 80)
    sw1, sb1 = conv(3, NUM_SOIL_VARS, 16)
    sw2, sb2 = conv(3, 16, 32)
    sw3, sb3 = conv(2, 32, 64)
    wfc_s, bfc_s = linear(64, 40)
    return (w1, b1, w2, b2, w3, b3, w4, b4, wfc_wm, bfc_wm,
            sw1, sb1, sw2, sb2, sw3, sb3, wfc_s, bfc_s)


# ------------------------------ pure-JAX reference -----------------------------
def _ref_conv(x, w, b):
    B, L, Cin = x.shape
    K, _, Cout = w.shape
    Lout = L - K + 1
    out = jnp.zeros((B, Lout, Cout), jnp.float32)
    for t in range(K):
        out = out + jnp.einsum('blc,cd->bld', x[:, t:t + Lout, :], w[t])
    return out + b.reshape(1, 1, Cout)


def _ref_pool(x):
    B, L, C = x.shape
    return x.reshape(B, L // 2, 2, C).mean(axis=2)


def cnn_reference(X, params):
    (w1, b1, w2, b2, w3, b3, w4, b4, wfc_wm, bfc_wm,
     sw1, sb1, sw2, sb2, sw3, sb3, wfc_s, bfc_s) = params
    B = X.shape[0]
    X_w = X[:, :N_W].reshape(B, NUM_WEATHER_VARS, TIME_INTERVALS)
    X_m = X[:, PROGRESS_INDICES].reshape(B, NUM_MGMT_THIS_CROP, TIME_INTERVALS)
    X_wm = jnp.transpose(jnp.concatenate([X_w, X_m], axis=1), (0, 2, 1))
    X_soil = jnp.transpose(
        X[:, N_W + N_M:N_W + N_M + N_S].reshape(B, NUM_SOIL_VARS, SOIL_DEPTHS), (0, 2, 1))
    X_extra = X[:, N_W + N_M + N_S:]

    h = _ref_pool(jax.nn.relu(_ref_conv(X_wm, w1, b1)))
    h = _ref_pool(jax.nn.relu(_ref_conv(h, w2, b2)))
    h = _ref_pool(jax.nn.relu(_ref_conv(h, w3, b3)))
    h = _ref_pool(jax.nn.relu(_ref_conv(h, w4, b4)))
    h = jax.nn.relu(h.reshape(B, 512) @ wfc_wm + bfc_wm)

    s = jax.nn.relu(_ref_conv(X_soil, sw1, sb1))
    s = jax.nn.relu(_ref_conv(s, sw2, sb2))
    s = jax.nn.relu(_ref_conv(s, sw3, sb3))
    s = jax.nn.relu(s.reshape(B, 64) @ wfc_s + bfc_s)
    return jnp.concatenate([h, s, X_extra], axis=1)


if __name__ == "__main__":
    key = jax.random.PRNGKey(0)
    k_x, k_p = jax.random.split(key)
    X = jax.random.normal(k_x, (2, N_FEAT), jnp.float32)
    params = init_params(k_p)

    fwd = jax.jit(cnn_forward)
    out = jax.block_until_ready(fwd(X, params))
    ref = jax.block_until_ready(cnn_reference(X, params))

    assert out.shape == (2, OUT_DIM), out.shape
    assert bool(jnp.all(jnp.isfinite(out)))
    max_err = float(jnp.max(jnp.abs(out - ref)))
    # bf16 matmul operands with f32 accumulation vs f32 reference
    assert bool(jnp.allclose(out, ref, rtol=3e-2, atol=3e-2)), max_err
    print("KERNEL_OK")
</pallas_src>

<mosaic_0001>
module attributes {stable_mosaic.version = 11 : i64} {
  func.func @cnn_kernel(%arg0: i32, %arg1: memref<44x8x72xf32, #tpu.memory_space<vmem>>, %arg2: memref<4x8x12xf32, #tpu.memory_space<vmem>>, %arg3: memref<72x128xbf16, #tpu.memory_space<vmem>>, %arg4: memref<1x128xf32, #tpu.memory_space<vmem>>, %arg5: memref<384x128xbf16, #tpu.memory_space<vmem>>, %arg6: memref<1x128xf32, #tpu.memory_space<vmem>>, %arg7: memref<384x256xbf16, #tpu.memory_space<vmem>>, %arg8: memref<1x256xf32, #tpu.memory_space<vmem>>, %arg9: memref<768x512xbf16, #tpu.memory_space<vmem>>, %arg10: memref<1x512xf32, #tpu.memory_space<vmem>>, %arg11: memref<12x16xbf16, #tpu.memory_space<vmem>>, %arg12: memref<1x16xf32, #tpu.memory_space<vmem>>, %arg13: memref<48x32xbf16, #tpu.memory_space<vmem>>, %arg14: memref<1x32xf32, #tpu.memory_space<vmem>>, %arg15: memref<64x64xbf16, #tpu.memory_space<vmem>>, %arg16: memref<1x64xf32, #tpu.memory_space<vmem>>, %arg17: memref<576x128xbf16, #tpu.memory_space<vmem>>, %arg18: memref<1x128xf32, #tpu.memory_space<vmem>>, %arg19: memref<8x128xf32, #tpu.memory_space<vmem>>) attributes {dimension_semantics = [#tpu.dimension_semantics<parallel>], iteration_bounds = array<i64: 1>, scalar_prefetch = 0 : i64, scratch_operands = 0 : i64, tpu.core_type = #tpu.core_type<tc>, window_params = [{transform_indices = @transform_0, window_bounds = array<i64: 44, 8, 72>}, {transform_indices = @transform_1, window_bounds = array<i64: 4, 8, 12>}, {pipeline_mode = #tpu.pipeline_mode<synchronous>, transform_indices = @transform_2, window_bounds = array<i64: 72, 128>}, {pipeline_mode = #tpu.pipeline_mode<synchronous>, transform_indices = @transform_3, window_bounds = array<i64: 1, 128>}, {pipeline_mode = #tpu.pipeline_mode<synchronous>, transform_indices = @transform_4, window_bounds = array<i64: 384, 128>}, {pipeline_mode = #tpu.pipeline_mode<synchronous>, transform_indices = @transform_5, window_bounds = array<i64: 1, 128>}, {pipeline_mode = #tpu.pipeline_mode<synchronous>, transform_indices = @transform_6, window_bounds = array<i64: 384, 256>}, {pipeline_mode = #tpu.pipeline_mode<synchronous>, transform_indices = @transform_7, window_bounds = array<i64: 1, 256>}, {pipeline_mode = #tpu.pipeline_mode<synchronous>, transform_indices = @transform_8, window_bounds = array<i64: 768, 512>}, {pipeline_mode = #tpu.pipeline_mode<synchronous>, transform_indices = @transform_9, window_bounds = array<i64: 1, 512>}, {pipeline_mode = #tpu.pipeline_mode<synchronous>, transform_indices = @transform_10, window_bounds = array<i64: 12, 16>}, {pipeline_mode = #tpu.pipeline_mode<synchronous>, transform_indices = @transform_11, window_bounds = array<i64: 1, 16>}, {pipeline_mode = #tpu.pipeline_mode<synchronous>, transform_indices = @transform_12, window_bounds = array<i64: 48, 32>}, {pipeline_mode = #tpu.pipeline_mode<synchronous>, transform_indices = @transform_13, window_bounds = array<i64: 1, 32>}, {pipeline_mode = #tpu.pipeline_mode<synchronous>, transform_indices = @transform_14, window_bounds = array<i64: 64, 64>}, {pipeline_mode = #tpu.pipeline_mode<synchronous>, transform_indices = @transform_15, window_bounds = array<i64: 1, 64>}, {pipeline_mode = #tpu.pipeline_mode<synchronous>, transform_indices = @transform_16, window_bounds = array<i64: 576, 128>}, {pipeline_mode = #tpu.pipeline_mode<synchronous>, transform_indices = @transform_17, window_bounds = array<i64: 1, 128>}, {transform_indices = @transform_18, window_bounds = array<i64: 8, 128>}]} {
    %c0 = arith.constant 0 : index
    %c0_0 = arith.constant 0 : index
    %c0_1 = arith.constant 0 : index
    %0 = vector.load %arg1[%c0, %c0_0, %c0_1] : memref<44x8x72xf32, #tpu.memory_space<vmem>>, vector<44x8x72xf32>
    %1 = vector.shape_cast %0 : vector<44x8x72xf32> to vector<352x72xf32>
    %2 = arith.truncf %1 : vector<352x72xf32> to vector<352x72xbf16>
    %c0_2 = arith.constant 0 : index
    %c0_3 = arith.constant 0 : index
    %3 = vector.load %arg3[%c0_2, %c0_3] : memref<72x128xbf16, #tpu.memory_space<vmem>>, vector<72x128xbf16>
    %cst = arith.constant dense<0.000000e+00> : vector<352x128xf32>
    %4 = tpu.matmul %2, %3, %cst {dimension_numbers = #tpu.dot_dimension_numbers<[1], [0], [0], [1], [0, 0, 1, 1], [], []>} : vector<352x72xbf16>, vector<72x128xbf16>, vector<352x128xf32> -> vector<352x128xf32>
    %c0_4 = arith.constant 0 : index
    %c0_5 = arith.constant 0 : index
    %5 = vector.load %arg4[%c0_4, %c0_5] : memref<1x128xf32, #tpu.memory_space<vmem>>, vector<1x128xf32>
    %6 = vector.broadcast %5 : vector<1x128xf32> to vector<352x128xf32>
    %7 = arith.addf %4, %6 : vector<352x128xf32>
    %cst_6 = arith.constant 0.000000e+00 : f32
    %8 = vector.broadcast %cst_6 : f32 to vector<352x128xf32>
    %9 = arith.maximumf %7, %8 : vector<352x128xf32>
    %10 = vector.shape_cast %9 : vector<352x128xf32> to vector<44x8x128xf32>
    %11 = vector.shape_cast %10 : vector<44x8x128xf32> to vector<22x2x8x128xf32>
    %12 = vector.extract_strided_slice %11 {offsets = [0, 0, 0, 0], sizes = [22, 1, 8, 128], strides = [1, 1, 1, 1]} : vector<22x2x8x128xf32> to vector<22x1x8x128xf32>
    %13 = vector.shape_cast %12 : vector<22x1x8x128xf32> to vector<22x8x128xf32>
    %14 = vector.extract_strided_slice %11 {offsets = [0, 1, 0, 0], sizes = [22, 1, 8, 128], strides = [1, 1, 1, 1]} : vector<22x2x8x128xf32> to vector<22x1x8x128xf32>
    %15 = vector.shape_cast %14 : vector<22x1x8x128xf32> to vector<22x8x128xf32>
    %16 = arith.addf %13, %15 : vector<22x8x128xf32>
    %cst_7 = arith.constant 5.000000e-01 : f32
    %17 = vector.broadcast %cst_7 : f32 to vector<22x8x128xf32>
    %18 = arith.mulf %17, %16 : vector<22x8x128xf32>
    %19 = vector.extract_strided_slice %18 {offsets = [0, 0, 0], sizes = [20, 8, 128], strides = [1, 1, 1]} : vector<22x8x128xf32> to vector<20x8x128xf32>
    %20 = vector.extract_strided_slice %18 {offsets = [1, 0, 0], sizes = [20, 8, 128], strides = [1, 1, 1]} : vector<22x8x128xf32> to vector<20x8x128xf32>
    %21 = vector.extract_strided_slice %18 {offsets = [2, 0, 0], sizes = [20, 8, 128], strides = [1, 1, 1]} : vector<22x8x128xf32> to vector<20x8x128xf32>
    %22 = tpu.concatenate %19, %20, %21 in 2 : vector<20x8x128xf32>, vector<20x8x128xf32>, vector<20x8x128xf32> -> vector<20x8x384xf32>
    %23 = vector.shape_cast %22 : vector<20x8x384xf32> to vector<160x384xf32>
    %24 = arith.truncf %23 : vector<160x384xf32> to vector<160x384xbf16>
    %c0_8 = arith.constant 0 : index
    %c0_9 = arith.constant 0 : index
    %25 = vector.load %arg5[%c0_8, %c0_9] : memref<384x128xbf16, #tpu.memory_space<vmem>>, vector<384x128xbf16>
    %cst_10 = arith.constant dense<0.000000e+00> : vector<160x128xf32>
    %26 = tpu.matmul %24, %25, %cst_10 {dimension_numbers = #tpu.dot_dimension_numbers<[1], [0], [0], [1], [0, 0, 1, 1], [], []>} : vector<160x384xbf16>, vector<384x128xbf16>, vector<160x128xf32> -> vector<160x128xf32>
    %c0_11 = arith.constant 0 : index
    %c0_12 = arith.constant 0 : index
    %27 = vector.load %arg6[%c0_11, %c0_12] : memref<1x128xf32, #tpu.memory_space<vmem>>, vector<1x128xf32>
    %28 = vector.broadcast %27 : vector<1x128xf32> to vector<160x128xf32>
    %29 = arith.addf %26, %28 : vector<160x128xf32>
    %cst_13 = arith.constant 0.000000e+00 : f32
    %30 = vector.broadcast %cst_13 : f32 to vector<160x128xf32>
    %31 = arith.maximumf %29, %30 : vector<160x128xf32>
    %32 = vector.shape_cast %31 : vector<160x128xf32> to vector<20x8x128xf32>
    %33 = vector.shape_cast %32 : vector<20x8x128xf32> to vector<10x2x8x128xf32>
    %34 = vector.extract_strided_slice %33 {offsets = [0, 0, 0, 0], sizes = [10, 1, 8, 128], strides = [1, 1, 1, 1]} : vector<10x2x8x128xf32> to vector<10x1x8x128xf32>
    %35 = vector.shape_cast %34 : vector<10x1x8x128xf32> to vector<10x8x128xf32>
    %36 = vector.extract_strided_slice %33 {offsets = [0, 1, 0, 0], sizes = [10, 1, 8, 128], strides = [1, 1, 1, 1]} : vector<10x2x8x128xf32> to vector<10x1x8x128xf32>
    %37 = vector.shape_cast %36 : vector<10x1x8x128xf32> to vector<10x8x128xf32>
    %38 = arith.addf %35, %37 : vector<10x8x128xf32>
    %cst_14 = arith.constant 5.000000e-01 : f32
    %39 = vector.broadcast %cst_14 : f32 to vector<10x8x128xf32>
    %40 = arith.mulf %39, %38 : vector<10x8x128xf32>
    %41 = vector.extract_strided_slice %40 {offsets = [0, 0, 0], sizes = [8, 8, 128], strides = [1, 1, 1]} : vector<10x8x128xf32> to vector<8x8x128xf32>
    %42 = vector.extract_strided_slice %40 {offsets = [1, 0, 0], sizes = [8, 8, 128], strides = [1, 1, 1]} : vector<10x8x128xf32> to vector<8x8x128xf32>
    %43 = vector.extract_strided_slice %40 {offsets = [2, 0, 0], sizes = [8, 8, 128], strides = [1, 1, 1]} : vector<10x8x128xf32> to vector<8x8x128xf32>
    %44 = tpu.concatenate %41, %42, %43 in 2 : vector<8x8x128xf32>, vector<8x8x128xf32>, vector<8x8x128xf32> -> vector<8x8x384xf32>
    %45 = vector.shape_cast %44 : vector<8x8x384xf32> to vector<64x384xf32>
    %46 = arith.truncf %45 : vector<64x384xf32> to vector<64x384xbf16>
    %c0_15 = arith.constant 0 : index
    %c0_16 = arith.constant 0 : index
    %47 = vector.load %arg7[%c0_15, %c0_16] : memref<384x256xbf16, #tpu.memory_space<vmem>>, vector<384x256xbf16>
    %cst_17 = arith.constant dense<0.000000e+00> : vector<64x256xf32>
    %48 = tpu.matmul %46, %47, %cst_17 {dimension_numbers = #tpu.dot_dimension_numbers<[1], [0], [0], [1], [0, 0, 1, 1], [], []>} : vector<64x384xbf16>, vector<384x256xbf16>, vector<64x256xf32> -> vector<64x256xf32>
    %c0_18 = arith.constant 0 : index
    %c0_19 = arith.constant 0 : index
    %49 = vector.load %arg8[%c0_18, %c0_19] : memref<1x256xf32, #tpu.memory_space<vmem>>, vector<1x256xf32>
    %50 = vector.broadcast %49 : vector<1x256xf32> to vector<64x256xf32>
    %51 = arith.addf %48, %50 : vector<64x256xf32>
    %cst_20 = arith.constant 0.000000e+00 : f32
    %52 = vector.broadcast %cst_20 : f32 to vector<64x256xf32>
    %53 = arith.maximumf %51, %52 : vector<64x256xf32>
    %54 = vector.shape_cast %53 : vector<64x256xf32> to vector<8x8x256xf32>
    %55 = vector.shape_cast %54 : vector<8x8x256xf32> to vector<4x2x8x256xf32>
    %56 = vector.extract_strided_slice %55 {offsets = [0, 0, 0, 0], sizes = [4, 1, 8, 256], strides = [1, 1, 1, 1]} : vector<4x2x8x256xf32> to vector<4x1x8x256xf32>
    %57 = vector.shape_cast %56 : vector<4x1x8x256xf32> to vector<4x8x256xf32>
    %58 = vector.extract_strided_slice %55 {offsets = [0, 1, 0, 0], sizes = [4, 1, 8, 256], strides = [1, 1, 1, 1]} : vector<4x2x8x256xf32> to vector<4x1x8x256xf32>
    %59 = vector.shape_cast %58 : vector<4x1x8x256xf32> to vector<4x8x256xf32>
    %60 = arith.addf %57, %59 : vector<4x8x256xf32>
    %cst_21 = arith.constant 5.000000e-01 : f32
    %61 = vector.broadcast %cst_21 : f32 to vector<4x8x256xf32>
    %62 = arith.mulf %61, %60 : vector<4x8x256xf32>
    %63 = vector.extract_strided_slice %62 {offsets = [0, 0, 0], sizes = [2, 8, 256], strides = [1, 1, 1]} : vector<4x8x256xf32> to vector<2x8x256xf32>
    %64 = vector.extract_strided_slice %62 {offsets = [1, 0, 0], sizes = [2, 8, 256], strides = [1, 1, 1]} : vector<4x8x256xf32> to vector<2x8x256xf32>
    %65 = vector.extract_strided_slice %62 {offsets = [2, 0, 0], sizes = [2, 8, 256], strides = [1, 1, 1]} : vector<4x8x256xf32> to vector<2x8x256xf32>
    %66 = tpu.concatenate %63, %64, %65 in 2 : vector<2x8x256xf32>, vector<2x8x256xf32>, vector<2x8x256xf32> -> vector<2x8x768xf32>
    %67 = vector.shape_cast %66 : vector<2x8x768xf32> to vector<16x768xf32>
    %68 = arith.truncf %67 : vector<16x768xf32> to vector<16x768xbf16>
    %c0_22 = arith.constant 0 : index
    %c0_23 = arith.constant 0 : index
    %69 = vector.load %arg9[%c0_22, %c0_23] : memref<768x512xbf16, #tpu.memory_space<vmem>>, vector<768x512xbf16>
    %cst_24 = arith.constant dense<0.000000e+00> : vector<16x512xf32>
    %70 = tpu.matmul %68, %69, %cst_24 {dimension_numbers = #tpu.dot_dimension_numbers<[1], [0], [0], [1], [0, 0, 1, 1], [], []>} : vector<16x768xbf16>, vector<768x512xbf16>, vector<16x512xf32> -> vector<16x512xf32>
    %c0_25 = arith.constant 0 : index
    %c0_26 = arith.constant 0 : index
    %71 = vector.load %arg10[%c0_25, %c0_26] : memref<1x512xf32, #tpu.memory_space<vmem>>, vector<1x512xf32>
    %72 = vector.broadcast %71 : vector<1x512xf32> to vector<16x512xf32>
    %73 = arith.addf %70, %72 : vector<16x512xf32>
    %cst_27 = arith.constant 0.000000e+00 : f32
    %74 = vector.broadcast %cst_27 : f32 to vector<16x512xf32>
    %75 = arith.maximumf %73, %74 : vector<16x512xf32>
    %76 = vector.shape_cast %75 : vector<16x512xf32> to vector<2x8x512xf32>
    %77 = vector.shape_cast %76 : vector<2x8x512xf32> to vector<1x2x8x512xf32>
    %78 = vector.extract_strided_slice %77 {offsets = [0, 0, 0, 0], sizes = [1, 1, 8, 512], strides = [1, 1, 1, 1]} : vector<1x2x8x512xf32> to vector<1x1x8x512xf32>
    %79 = vector.shape_cast %78 : vector<1x1x8x512xf32> to vector<1x8x512xf32>
    %80 = vector.extract_strided_slice %77 {offsets = [0, 1, 0, 0], sizes = [1, 1, 8, 512], strides = [1, 1, 1, 1]} : vector<1x2x8x512xf32> to vector<1x1x8x512xf32>
    %81 = vector.shape_cast %80 : vector<1x1x8x512xf32> to vector<1x8x512xf32>
    %82 = arith.addf %79, %81 : vector<1x8x512xf32>
    %cst_28 = arith.constant 5.000000e-01 : f32
    %83 = vector.broadcast %cst_28 : f32 to vector<1x8x512xf32>
    %84 = arith.mulf %83, %82 : vector<1x8x512xf32>
    %85 = vector.shape_cast %84 : vector<1x8x512xf32> to vector<8x512xf32>
    %c0_29 = arith.constant 0 : index
    %c0_30 = arith.constant 0 : index
    %c0_31 = arith.constant 0 : index
    %86 = vector.load %arg2[%c0_29, %c0_30, %c0_31] : memref<4x8x12xf32, #tpu.memory_space<vmem>>, vector<4x8x12xf32>
    %87 = vector.shape_cast %86 : vector<4x8x12xf32> to vector<32x12xf32>
    %88 = arith.truncf %87 : vector<32x12xf32> to vector<32x12xbf16>
    %c0_32 = arith.constant 0 : index
    %c0_33 = arith.constant 0 : index
    %89 = vector.load %arg11[%c0_32, %c0_33] : memref<12x16xbf16, #tpu.memory_space<vmem>>, vector<12x16xbf16>
    %cst_34 = arith.constant dense<0.000000e+00> : vector<32x16xf32>
    %90 = tpu.matmul %88, %89, %cst_34 {dimension_numbers = #tpu.dot_dimension_numbers<[1], [0], [0], [1], [0, 0, 1, 1], [], []>} : vector<32x12xbf16>, vector<12x16xbf16>, vector<32x16xf32> -> vector<32x16xf32>
    %c0_35 = arith.constant 0 : index
    %c0_36 = arith.constant 0 : index
    %91 = vector.load %arg12[%c0_35, %c0_36] : memref<1x16xf32, #tpu.memory_space<vmem>>, vector<1x16xf32>
    %92 = vector.broadcast %91 : vector<1x16xf32> to vector<32x16xf32>
    %93 = arith.addf %90, %92 : vector<32x16xf32>
    %cst_37 = arith.constant 0.000000e+00 : f32
    %94 = vector.broadcast %cst_37 : f32 to vector<32x16xf32>
    %95 = arith.maximumf %93, %94 : vector<32x16xf32>
    %96 = vector.shape_cast %95 : vector<32x16xf32> to vector<4x8x16xf32>
    %cst_38 = arith.constant 0.000000e+00 : f32
    %97 = vector.broadcast %cst_38 : f32 to vector<16x32xf32>
    %98 = vector.extract_strided_slice %96 {offsets = [0, 0, 0], sizes = [2, 8, 16], strides = [1, 1, 1]} : vector<4x8x16xf32> to vector<2x8x16xf32>
    %99 = vector.shape_cast %98 : vector<2x8x16xf32> to vector<16x16xf32>
    %100 = arith.truncf %99 : vector<16x16xf32> to vector<16x16xbf16>
    %c0_39 = arith.constant 0 : index
    %c0_40 = arith.constant 0 : index
    %101 = vector.load %arg13[%c0_39, %c0_40] : memref<48x32xbf16, #tpu.memory_space<vmem>>, vector<16x32xbf16>
    %cst_41 = arith.constant dense<0.000000e+00> : vector<16x32xf32>
    %102 = tpu.matmul %100, %101, %cst_41 {dimension_numbers = #tpu.dot_dimension_numbers<[1], [0], [0], [1], [0, 0, 1, 1], [], []>} : vector<16x16xbf16>, vector<16x32xbf16>, vector<16x32xf32> -> vector<16x32xf32>
    %103 = arith.addf %97, %102 : vector<16x32xf32>
    %104 = vector.extract_strided_slice %96 {offsets = [1, 0, 0], sizes = [2, 8, 16], strides = [1, 1, 1]} : vector<4x8x16xf32> to vector<2x8x16xf32>
    %105 = vector.shape_cast %104 : vector<2x8x16xf32> to vector<16x16xf32>
    %106 = arith.truncf %105 : vector<16x16xf32> to vector<16x16xbf16>
    %c16 = arith.constant 16 : index
    %c0_42 = arith.constant 0 : index
    %107 = vector.load %arg13[%c16, %c0_42] : memref<48x32xbf16, #tpu.memory_space<vmem>>, vector<16x32xbf16>
    %cst_43 = arith.constant dense<0.000000e+00> : vector<16x32xf32>
    %108 = tpu.matmul %106, %107, %cst_43 {dimension_numbers = #tpu.dot_dimension_numbers<[1], [0], [0], [1], [0, 0, 1, 1], [], []>} : vector<16x16xbf16>, vector<16x32xbf16>, vector<16x32xf32> -> vector<16x32xf32>
    %109 = arith.addf %103, %108 : vector<16x32xf32>
    %110 = vector.extract_strided_slice %96 {offsets = [2, 0, 0], sizes = [2, 8, 16], strides = [1, 1, 1]} : vector<4x8x16xf32> to vector<2x8x16xf32>
    %111 = vector.shape_cast %110 : vector<2x8x16xf32> to vector<16x16xf32>
    %112 = arith.truncf %111 : vector<16x16xf32> to vector<16x16xbf16>
    %c32 = arith.constant 32 : index
    %c0_44 = arith.constant 0 : index
    %113 = vector.load %arg13[%c32, %c0_44] : memref<48x32xbf16, #tpu.memory_space<vmem>>, vector<16x32xbf16>
    %cst_45 = arith.constant dense<0.000000e+00> : vector<16x32xf32>
    %114 = tpu.matmul %112, %113, %cst_45 {dimension_numbers = #tpu.dot_dimension_numbers<[1], [0], [0], [1], [0, 0, 1, 1], [], []>} : vector<16x16xbf16>, vector<16x32xbf16>, vector<16x32xf32> -> vector<16x32xf32>
    %115 = arith.addf %109, %114 : vector<16x32xf32>
    %c0_46 = arith.constant 0 : index
    %c0_47 = arith.constant 0 : index
    %116 = vector.load %arg14[%c0_46, %c0_47] : memref<1x32xf32, #tpu.memory_space<vmem>>, vector<1x32xf32>
    %117 = vector.broadcast %116 : vector<1x32xf32> to vector<16x32xf32>
    %118 = arith.addf %115, %117 : vector<16x32xf32>
    %cst_48 = arith.constant 0.000000e+00 : f32
    %119 = vector.broadcast %cst_48 : f32 to vector<16x32xf32>
    %120 = arith.maximumf %118, %119 : vector<16x32xf32>
    %121 = vector.shape_cast %120 : vector<16x32xf32> to vector<2x8x32xf32>
    %cst_49 = arith.constant 0.000000e+00 : f32
    %122 = vector.broadcast %cst_49 : f32 to vector<8x64xf32>
    %123 = vector.extract_strided_slice %121 {offsets = [0, 0, 0], sizes = [1, 8, 32], strides = [1, 1, 1]} : vector<2x8x32xf32> to vector<1x8x32xf32>
    %124 = vector.shape_cast %123 : vector<1x8x32xf32> to vector<8x32xf32>
    %125 = arith.truncf %124 : vector<8x32xf32> to vector<8x32xbf16>
    %c0_50 = arith.constant 0 : index
    %c0_51 = arith.constant 0 : index
    %126 = vector.load %arg15[%c0_50, %c0_51] : memref<64x64xbf16, #tpu.memory_space<vmem>>, vector<32x64xbf16>
    %cst_52 = arith.constant dense<0.000000e+00> : vector<8x64xf32>
    %127 = tpu.matmul %125, %126, %cst_52 {dimension_numbers = #tpu.dot_dimension_numbers<[1], [0], [0], [1], [0, 0, 1, 1], [], []>} : vector<8x32xbf16>, vector<32x64xbf16>, vector<8x64xf32> -> vector<8x64xf32>
    %128 = arith.addf %122, %127 : vector<8x64xf32>
    %129 = vector.extract_strided_slice %121 {offsets = [1, 0, 0], sizes = [1, 8, 32], strides = [1, 1, 1]} : vector<2x8x32xf32> to vector<1x8x32xf32>
    %130 = vector.shape_cast %129 : vector<1x8x32xf32> to vector<8x32xf32>
    %131 = arith.truncf %130 : vector<8x32xf32> to vector<8x32xbf16>
    %c32_53 = arith.constant 32 : index
    %c0_54 = arith.constant 0 : index
    %132 = vector.load %arg15[%c32_53, %c0_54] : memref<64x64xbf16, #tpu.memory_space<vmem>>, vector<32x64xbf16>
    %cst_55 = arith.constant dense<0.000000e+00> : vector<8x64xf32>
    %133 = tpu.matmul %131, %132, %cst_55 {dimension_numbers = #tpu.dot_dimension_numbers<[1], [0], [0], [1], [0, 0, 1, 1], [], []>} : vector<8x32xbf16>, vector<32x64xbf16>, vector<8x64xf32> -> vector<8x64xf32>
    %134 = arith.addf %128, %133 : vector<8x64xf32>
    %c0_56 = arith.constant 0 : index
    %c0_57 = arith.constant 0 : index
    %135 = vector.load %arg16[%c0_56, %c0_57] : memref<1x64xf32, #tpu.memory_space<vmem>>, vector<1x64xf32>
    %136 = vector.broadcast %135 : vector<1x64xf32> to vector<8x64xf32>
    %137 = arith.addf %134, %136 : vector<8x64xf32>
    %cst_58 = arith.constant 0.000000e+00 : f32
    %138 = vector.broadcast %cst_58 : f32 to vector<8x64xf32>
    %139 = arith.maximumf %137, %138 : vector<8x64xf32>
    %140 = vector.shape_cast %139 : vector<8x64xf32> to vector<1x8x64xf32>
    %141 = vector.shape_cast %140 : vector<1x8x64xf32> to vector<8x64xf32>
    %142 = tpu.concatenate %85, %141 in 1 : vector<8x512xf32>, vector<8x64xf32> -> vector<8x576xf32>
    %143 = arith.truncf %142 : vector<8x576xf32> to vector<8x576xbf16>
    %c0_59 = arith.constant 0 : index
    %c0_60 = arith.constant 0 : index
    %144 = vector.load %arg17[%c0_59, %c0_60] : memref<576x128xbf16, #tpu.memory_space<vmem>>, vector<576x128xbf16>
    %cst_61 = arith.constant dense<0.000000e+00> : vector<8x128xf32>
    %145 = tpu.matmul %143, %144, %cst_61 {dimension_numbers = #tpu.dot_dimension_numbers<[1], [0], [0], [1], [0, 0, 1, 1], [], []>} : vector<8x576xbf16>, vector<576x128xbf16>, vector<8x128xf32> -> vector<8x128xf32>
    %c0_62 = arith.constant 0 : index
    %c0_63 = arith.constant 0 : index
    %146 = vector.load %arg18[%c0_62, %c0_63] : memref<1x128xf32, #tpu.memory_space<vmem>>, vector<1x128xf32>
    %147 = vector.broadcast %146 : vector<1x128xf32> to vector<8x128xf32>
    %148 = arith.addf %145, %147 : vector<8x128xf32>
    %cst_64 = arith.constant 0.000000e+00 : f32
    %149 = vector.broadcast %cst_64 : f32 to vector<8x128xf32>
    %150 = arith.maximumf %148, %149 : vector<8x128xf32>
    %c0_65 = arith.constant 0 : index
    %c0_66 = arith.constant 0 : index
    %151 = vector.load %arg19[%c0_65, %c0_66] : memref<8x128xf32, #tpu.memory_space<vmem>>, vector<8x128xf32>
    tpu.vector_store %arg19[%c0_65, %c0_66], %150 {strides = array<i32>} : memref<8x128xf32, #tpu.memory_space<vmem>>, vector<8x128xf32>,
    return
  }
  func.func @transform_0(%arg0: i32) -> (i32, i32, i32) {
    %c0_i32 = arith.constant 0 : i32
    %c0_i32_0 = arith.constant 0 : i32
    %c0_i32_1 = arith.constant 0 : i32
    return %c0_i32, %arg0, %c0_i32_0 : i32, i32, i32
  }
  func.func @transform_1(%arg0: i32) -> (i32, i32, i32) {
    %c0_i32 = arith.constant 0 : i32
    %c0_i32_0 = arith.constant 0 : i32
    %c0_i32_1 = arith.constant 0 : i32
    return %c0_i32, %arg0, %c0_i32_0 : i32, i32, i32
  }
  func.func @transform_2(%arg0: i32) -> (i32, i32) {
    %c0_i32 = arith.constant 0 : i32
    %c0_i32_0 = arith.constant 0 : i32
    %c0_i32_1 = arith.constant 0 : i32
    return %c0_i32, %c0_i32_0 : i32, i32
  }
  func.func @transform_3(%arg0: i32) -> (i32, i32) {
    %c0_i32 = arith.constant 0 : i32
    %c0_i32_0 = arith.constant 0 : i32
    %c0_i32_1 = arith.constant 0 : i32
    return %c0_i32, %c0_i32_0 : i32, i32
  }
  func.func @transform_4(%arg0: i32) -> (i32, i32) {
    %c0_i32 = arith.constant 0 : i32
    %c0_i32_0 = arith.constant 0 : i32
    %c0_i32_1 = arith.constant 0 : i32
    return %c0_i32, %c0_i32_0 : i32, i32
  }
  func.func @transform_5(%arg0: i32) -> (i32, i32) {
    %c0_i32 = arith.constant 0 : i32
    %c0_i32_0 = arith.constant 0 : i32
    %c0_i32_1 = arith.constant 0 : i32
    return %c0_i32, %c0_i32_0 : i32, i32
  }
  func.func @transform_6(%arg0: i32) -> (i32, i32) {
    %c0_i32 = arith.constant 0 : i32
    %c0_i32_0 = arith.constant 0 : i32
    %c0_i32_1 = arith.constant 0 : i32
    return %c0_i32, %c0_i32_0 : i32, i32
  }
  func.func @transform_7(%arg0: i32) -> (i32, i32) {
    %c0_i32 = arith.constant 0 : i32
    %c0_i32_0 = arith.constant 0 : i32
    %c0_i32_1 = arith.constant 0 : i32
    return %c0_i32, %c0_i32_0 : i32, i32
  }
  func.func @transform_8(%arg0: i32) -> (i32, i32) {
    %c0_i32 = arith.constant 0 : i32
    %c0_i32_0 = arith.constant 0 : i32
    %c0_i32_1 = arith.constant 0 : i32
    return %c0_i32, %c0_i32_0 : i32, i32
  }
  func.func @transform_9(%arg0: i32) -> (i32, i32) {
    %c0_i32 = arith.constant 0 : i32
    %c0_i32_0 = arith.constant 0 : i32
    %c0_i32_1 = arith.constant 0 : i32
    return %c0_i32, %c0_i32_0 : i32, i32
  }
  func.func @transform_10(%arg0: i32) -> (i32, i32) {
    %c0_i32 = arith.constant 0 : i32
    %c0_i32_0 = arith.constant 0 : i32
    %c0_i32_1 = arith.constant 0 : i32
    return %c0_i32, %c0_i32_0 : i32, i32
  }
  func.func @transform_11(%arg0: i32) -> (i32, i32) {
    %c0_i32 = arith.constant 0 : i32
    %c0_i32_0 = arith.constant 0 : i32
    %c0_i32_1 = arith.constant 0 : i32
    return %c0_i32, %c0_i32_0 : i32, i32
  }
  func.func @transform_12(%arg0: i32) -> (i32, i32) {
    %c0_i32 = arith.constant 0 : i32
    %c0_i32_0 = arith.constant 0 : i32
    %c0_i32_1 = arith.constant 0 : i32
    return %c0_i32, %c0_i32_0 : i32, i32
  }
  func.func @transform_13(%arg0: i32) -> (i32, i32) {
    %c0_i32 = arith.constant 0 : i32
    %c0_i32_0 = arith.constant 0 : i32
    %c0_i32_1 = arith.constant 0 : i32
    return %c0_i32, %c0_i32_0 : i32, i32
  }
  func.func @transform_14(%arg0: i32) -> (i32, i32) {
    %c0_i32 = arith.constant 0 : i32
    %c0_i32_0 = arith.constant 0 : i32
    %c0_i32_1 = arith.constant 0 : i32
    return %c0_i32, %c0_i32_0 : i32, i32
  }
  func.func @transform_15(%arg0: i32) -> (i32, i32) {
    %c0_i32 = arith.constant 0 : i32
    %c0_i32_0 = arith.constant 0 : i32
    %c0_i32_1 = arith.constant 0 : i32
    return %c0_i32, %c0_i32_0 : i32, i32
  }
  func.func @transform_16(%arg0: i32) -> (i32, i32) {
    %c0_i32 = arith.constant 0 : i32
    %c0_i32_0 = arith.constant 0 : i32
    %c0_i32_1 = arith.constant 0 : i32
    return %c0_i32, %c0_i32_0 : i32, i32
  }
  func.func @transform_17(%arg0: i32) -> (i32, i32) {
    %c0_i32 = arith.constant 0 : i32
    %c0_i32_0 = arith.constant 0 : i32
    %c0_i32_1 = arith.constant 0 : i32
    return %c0_i32, %c0_i32_0 : i32, i32
  }
  func.func @transform_18(%arg0: i32) -> (i32, i32) {
    %c0_i32 = arith.constant 0 : i32
    %c0_i32_0 = arith.constant 0 : i32
    return %arg0, %c0_i32 : i32, i32
  }
}

</mosaic_0001>

<bundles_post_ra>
// kernel: cnn_forward.1
= control target key start
LH: loop header
LB: loop body
LE: loop exit
PB: predicated region body
PF: predicated region fallthrough
CT: control target
= control target key end

     0   :  { %vm233_vm0 = vcmask 1043456   ;;  %vm166_vm1 = vcmask 588800   ;;  %vm2931_vm2 = vcmask 1045504   ;;  %vm2924_vm3 = vcmask 97280   ;;  %s7354_s2 = inlined_call_operand.vmem [shape: bf16[72,128], index: 2, kind: input, shape index: {}]   ;;  %s7355_s3 = inlined_call_operand.vmem [shape: f32[1,128], index: 3, kind: input, shape index: {}]   ;;  %s7356_s0 = inlined_call_operand.vmem [shape: f32[44,8,72], index: 0, kind: input, shape index: {}]   ;;  %s7357_s4 = inlined_call_operand.vmem [shape: bf16[384,128], index: 4, kind: input, shape index: {}]   ;;  %s7358_s5 = inlined_call_operand.vmem [shape: f32[1,128], index: 5, kind: input, shape index: {}]   ;;  %s7359_s6 = inlined_call_operand.vmem [shape: bf16[384,256], index: 6, kind: input, shape index: {}]   ;;  %s7360_s8 = inlined_call_operand.vmem [shape: bf16[768,512], index: 8, kind: input, shape index: {}]   ;;  %s7361_s7 = inlined_call_operand.vmem [shape: f32[1,256], index: 7, kind: input, shape index: {}]   ;;  %s7362_s10 = inlined_call_operand.vmem [shape: bf16[12,16], index: 10, kind: input, shape index: {}]   ;;  %s7363_s1 = inlined_call_operand.vmem [shape: f32[4,8,12], index: 1, kind: input, shape index: {}]   ;;  %s7364_s9 = inlined_call_operand.vmem [shape: f32[1,512], index: 9, kind: input, shape index: {}]   ;;  %s7365_s11 = inlined_call_operand.vmem [shape: f32[1,16], index: 11, kind: input, shape index: {}]   ;;  %s7366_s12 = inlined_call_operand.vmem [shape: bf16[48,32], index: 12, kind: input, shape index: {}]   ;;  %s7367_s16 = inlined_call_operand.vmem [shape: bf16[576,128], index: 16, kind: input, shape index: {}]   ;;  %s7368_s14 = inlined_call_operand.vmem [shape: bf16[64,64], index: 14, kind: input, shape index: {}]   ;;  %s7369_s13 = inlined_call_operand.vmem [shape: f32[1,32], index: 13, kind: input, shape index: {}]   ;;  %s7370_s17 = inlined_call_operand.vmem [shape: f32[1,128], index: 17, kind: input, shape index: {}]   ;;  %s7371_s15 = inlined_call_operand.vmem [shape: f32[1,64], index: 15, kind: input, shape index: {}]   ;;  %s7372_s18 = inlined_call_operand.vmem [shape: f32[8,128], index: 18, kind: output, shape index: {}]  }
   0x1   :  { %7375 = sst [smem:[#allocation2_spill]] %s7354_s2  ;;  %v4781_v29 = vld [vmem:[%s7357_s4 + $0x38] sm:$0xff]  ;;  %v4780_v30 = vld [vmem:[%s7357_s4 + $0x30] sm:$0xff]  ;;  %v4779_v31 = vld [vmem:[%s7357_s4 + $0x28] sm:$0xff]  ;;  %vm2970_vm4 = vcmask 130048   ;;  %vm3069_vm5 = vcmask 261120  }
   0x2   :  { %7376 = sst [smem:[#allocation3_spill]] %s7355_s3  ;;  %661 = vmatpush.bf16.msra.mxu1 %v4781_v29  ;;  %v4778_v34 = vld [vmem:[%s7357_s4 + $0x20] sm:$0xff]  ;;  %v4777_v36 = vld [vmem:[%s7357_s4 + $0x18] sm:$0xff]  ;;  %v4776_v38 = vld [vmem:[%s7357_s4 + $0x10] sm:$0xff]  ;;  %vm3417_vm6 = vcmask 523264  }
   0x3   :  { %7377 = sst [smem:[#allocation4_spill]] %s7356_s0  ;;  %v4789_v37 = vld [vmem:[%s7357_s4 + $0x78] sm:$0xff]  ;;  %v4788_v39 = vld [vmem:[%s7357_s4 + $0x70] sm:$0xff]  ;;  %v4775_v40 = vld [vmem:[%s7357_s4 + $0x8] sm:$0xff] }
   0x4   :  { %s7378_s29 = sld [smem:[#allocation2_spill]]  ;;  %720 = vmatpush.bf16.msra.mxu2 %v4789_v37  ;;  %v4787_v41 = vld [vmem:[%s7357_s4 + $0x68] sm:$0xff]  ;;  %v4774_v44 = vld [vmem:[%s7357_s4] sm:$0xff]  ;;  %v4785_v48 = vld [vmem:[%s7357_s4 + $0x58] sm:$0xff] }
   0x5   :  { %s7379_s25 = sld [smem:[#allocation4_spill]]  ;;  %v4786_v45 = vld [vmem:[%s7357_s4 + $0x60] sm:$0xff]  ;;  %v4797_v49 = vld [vmem:[%s7357_s4 + $0xb8] sm:$0xff]  ;;  %v4784_v50 = vld [vmem:[%s7357_s4 + $0x50] sm:$0xff] }
   0x6   :  { %662 = vmatpush.bf16.msra.mxu1 %v4780_v30  ;;  %779 = vmatpush.bf16.msra.mxu3 %v4797_v49  ;;  %v4796_v51 = vld [vmem:[%s7357_s4 + $0xb0] sm:$0xff]  ;;  %v4783_v53 = vld [vmem:[%s7357_s4 + $0x48] sm:$0xff]  ;;  %v4782_v57 = vld [vmem:[%s7357_s4 + $0x40] sm:$0xff]  ;;  %s7380_s22 = sld [smem:[#allocation3_spill]] }
   0x7   :  { %v4795_v54 = vld [vmem:[%s7357_s4 + $0xa8] sm:$0xff]  ;;  %v4794_v58 = vld [vmem:[%s7357_s4 + $0xa0] sm:$0xff]  ;;  %v4793_v62 = vld [vmem:[%s7357_s4 + $0x98] sm:$0xff] }
   0x8   :  { %721 = vmatpush.bf16.msra.mxu2 %v4788_v39 }
   0xa   :  { %v134_v0 = vld [vmem:[%s7378_s29 + $0x20] sm:$0xf]  ;;  %v4773_v4 = vld [vmem:[%s7378_s29 + $0x18] sm:$0xff]  ;;  %v4772_v5 = vld [vmem:[%s7378_s29 + $0x10] sm:$0xff]  ;;  %663 = vmatpush.bf16.msra.mxu1 %v4779_v31  ;;  %780 = vmatpush.bf16.msra.mxu3 %v4796_v51 }
   0xb   :  { %v156_v1 = vunpack.c.l.b16 %v134_v0  ;;  %v4771_v6 = vld [vmem:[%s7378_s29 + $0x8] sm:$0xff]  ;;  %v4770_v7 = vld [vmem:[%s7378_s29] sm:$0xff]  ;;  %v62_v11 = vld [vmem:[%s7379_s25 + $0x10] sm:$0xff] }
   0xc   :  { %v60_v8 = vld [vmem:[%s7379_s25] sm:$0xff]  ;;  %v61_v9 = vld [vmem:[%s7379_s25 + $0x8] sm:$0xff]  ;;  %v63_v12 = vld [vmem:[%s7379_s25 + $0x18] sm:$0xff]  ;;  %722 = vmatpush.bf16.msra.mxu2 %v4787_v41 }
   0xd   :  { %v161_v2 = vpack.c.b16 %v156_v1, %v156_v1  ;;  %v104_v10 = vpack.c.bf16 %v61_v9, %v60_v8  ;;  %v105_v13 = vpack.c.bf16 %v63_v12, %v62_v11  ;;  %v64_v14 = vld [vmem:[%s7379_s25 + $0x20] sm:$0xff]  ;;  %v65_v15 = vld [vmem:[%s7379_s25 + $0x28] sm:$0xff]  ;;  %v66_v17 = vld [vmem:[%s7379_s25 + $0x30] sm:$0xff] }
   0xe   :  { %v106_v16 = vpack.c.bf16 %v65_v15, %v64_v14  ;;  %v67_v18 = vld [vmem:[%s7379_s25 + $0x38] sm:$0xff]  ;;  %v68_v20 = vld [vmem:[%s7379_s25 + $0x40] sm:$0xff]  ;;  %v69_v21 = vld [vmem:[%s7379_s25 + $0x48] sm:$0xff]  ;;  %664 = vmatpush.bf16.msra.mxu1 %v4778_v34  ;;  %781 = vmatpush.bf16.msra.mxu3 %v4795_v54 }
   0xf   :  { %v235_v3 = vsel %vm233_vm0, %v161_v2, 0  ;;  %v107_v19 = vpack.c.bf16 %v67_v18, %v66_v17  ;;  %v108_v22 = vpack.c.bf16 %v69_v21, %v68_v20  ;;  %v70_v23 = vld [vmem:[%s7379_s25 + $0x50] sm:$0xff]  ;;  %v71_v24 = vld [vmem:[%s7379_s25 + $0x58] sm:$0xff]  ;;  %v72_v26 = vld [vmem:[%s7379_s25 + $0x60] sm:$0xff] }
  0x10   :  { %240 = vmatpush.bf16.msra.mxu0 %v235_v3  ;;  %v109_v25 = vpack.c.bf16 %v71_v24, %v70_v23  ;;  %v73_v27 = vld [vmem:[%s7379_s25 + $0x68] sm:$0xff]  ;;  %v74_v32 = vld [vmem:[%s7379_s25 + $0x70] sm:$0xff]  ;;  %v75_v33 = vld [vmem:[%s7379_s25 + $0x78] sm:$0xff]  ;;  %723 = vmatpush.bf16.msra.mxu2 %v4786_v45 }
  0x11   :  { %v110_v28 = vpack.c.bf16 %v73_v27, %v72_v26  ;;  %v111_v35 = vpack.c.bf16 %v75_v33, %v74_v32  ;;  %v76_v42 = vld [vmem:[%s7379_s25 + $0x80] sm:$0xff]  ;;  %v77_v43 = vld [vmem:[%s7379_s25 + $0x88] sm:$0xff]  ;;  %v78_v55 = vld [vmem:[%s7379_s25 + $0x90] sm:$0xff] }
  0x12   :  { %665 = vmatpush.bf16.msra.mxu1 %v4777_v36  ;;  %v112_v46 = vpack.c.bf16 %v77_v43, %v76_v42  ;;  %v79_v56 = vld [vmem:[%s7379_s25 + $0x98] sm:$0xff]  ;;  %782 = vmatpush.bf16.msra.mxu3 %v4794_v58  ;;  %v5330_v61 = vld [vmem:[%s7380_s22] ss:$0 sm:$0xff]  ;;  %v4792_v1 = vld [vmem:[%s7357_s4 + $0x90] sm:$0xff] }
  0x13   :  { %v113_v59 = vpack.c.bf16 %v79_v56, %v78_v55  ;;  %v80_v11 = vld [vmem:[%s7379_s25 + $0xa0] sm:$0xff]  ;;  %v81_v12 = vld [vmem:[%s7379_s25 + $0xa8] sm:$0xff]  ;;  %v83_v26 = vld [vmem:[%s7379_s25 + $0xb8] sm:$0xff] }
  0x14   :  { %241 = vmatpush.bf16.msra.mxu0 %v4773_v4  ;;  %724 = vmatpush.bf16.msra.mxu2 %v4785_v48  ;;  %v4790_v14 = vld [vmem:[%s7357_s4 + $0x80] sm:$0xff]  ;;  %v114_v15 = vpack.c.bf16 %v81_v12, %v80_v11  ;;  %v86_v49 = vld [vmem:[%s7379_s25 + $0xd0] sm:$0xff]  ;;  %v91_v11 = vld [vmem:[%s7379_s25 + $0xf8] sm:$0xff] }
  0x15   :  { %v84_v37 = vld [vmem:[%s7379_s25 + $0xc0] sm:$0xff] }
  0x16   :  { %666 = vmatpush.bf16.msra.mxu1 %v4776_v38  ;;  %783 = vmatpush.bf16.msra.mxu3 %v4793_v62  ;;  %v85_v38 = vld [vmem:[%s7379_s25 + $0xc8] sm:$0xff]  ;;  %v88_v62 = vld [vmem:[%s7379_s25 + $0xe0] sm:$0xff] }
  0x18   :  { %242 = vmatpush.bf16.msra.mxu0 %v4772_v5  ;;  %725 = vmatpush.bf16.msra.mxu2 %v4784_v50  ;;  %v87_v50 = vld [vmem:[%s7379_s25 + $0xd8] sm:$0xff] }
  0x1a   :  { %667 = vmatpush.bf16.msra.mxu1 %v4775_v40  ;;  %784 = vmatpush.bf16.msra.mxu3 %v4792_v1  ;;  %v116_v40 = vpack.c.bf16 %v85_v38, %v84_v37 }
  0x1c   :  { %243 = vmatpush.bf16.msra.mxu0 %v4771_v6  ;;  %726 = vmatpush.bf16.msra.mxu2 %v4783_v53 }
  0x1e   :  { %668 = vmatpush.bf16.msra.mxu1 %v4774_v44 }
  0x20   :  { %244 = vmatpush.bf16.msra.mxu0 %v4770_v7  ;;  %727 = vmatpush.bf16.msra.mxu2 %v4782_v57  ;;  %v4791_v7 = vld [vmem:[%s7357_s4 + $0x88] sm:$0xff] }
  0x21   :  { %785 = vmatpush.bf16.msra.mxu3 %v4791_v7 }
  0x23   :  { %3508 = vmatmul.msk.bf16.vlgmr.msra.gmra.mxu0 %vm166_vm1, %v104_v10 }
  0x25   :  { %786 = vmatpush.bf16.msra.mxu3 %v4790_v14 }
  0x33   :  { %3509 = vmatmul.msk.bf16.gmra.mxu0 %vm166_vm1, %v105_v13 }
  0x43   :  { %3510 = vmatmul.msk.bf16.gmra.mxu0 %vm166_vm1, %v106_v16 }
  0x53   :  { %3511 = vmatmul.msk.bf16.gmra.mxu0 %vm166_vm1, %v107_v19 }
  0x63   :  { %3512 = vmatmul.msk.bf16.gmra.mxu0 %vm166_vm1, %v108_v22 }
  0x73   :  { %3513 = vmatmul.msk.bf16.gmra.mxu0 %vm166_vm1, %v109_v25  ;;  %v82_v25 = vld [vmem:[%s7379_s25 + $0xb0] sm:$0xff] }
  0x83   :  { %3514 = vmatmul.msk.bf16.gmra.mxu0 %vm166_vm1, %v110_v28  ;;  %v115_v28 = vpack.c.bf16 %v83_v26, %v82_v25 }
  0x93   :  { %3515 = vmatmul.msk.bf16.gmra.mxu0 %vm166_vm1, %v111_v35 }
  0xa0   :  { %v246_v47 = vpop.f32.mrf.mxu0 }
  0xa1   :  { %v247_v0 = vadd.f32 %v5330_v61, %v246_v47 }
  0xa3   :  { %3516 = vmatmul.msk.bf16.gmra.mxu0 %vm166_vm1, %v112_v46  ;;  %v356_v5 = vmax.f32 %v247_v0, 0.0 }
  0xa8   :  { %v248_v52 = vpop.f32.mrf.mxu0 }
  0xa9   :  { %v249_v63 = vadd.f32 %v5330_v61, %v248_v52  ;;  %v117_v52 = vpack.c.bf16 %v87_v50, %v86_v49 }
  0xab   :  { %v357_v2 = vmax.f32 %v249_v63, 0.0  ;;  %v89_v63 = vld [vmem:[%s7379_s25 + $0xe8] sm:$0xff] }
  0xac   :  { %v118_v1 = vpack.c.bf16 %v89_v63, %v88_v62 }
  0xad   :  { %v400_v10 = vadd.f32 %v357_v2, %v356_v5 }
  0xaf   :  { %v422_v16 = vmul.f32 0.5, %v400_v10  ;;  %v90_v10 = vld [vmem:[%s7379_s25 + $0xf0] sm:$0xff] }
  0xb0   :  { %v251_v60 = vpop.f32.mrf.mxu0 }
  0xb1   :  { %v252_v3 = vadd.f32 %v5330_v61, %v251_v60 }
  0xb3   :  { %3517 = vmatmul.msk.bf16.gmra.mxu0 %vm166_vm1, %v113_v59  ;;  %v358_v8 = vmax.f32 %v252_v3, 0.0 }
  0xb8   :  { %v253_v4 = vpop.f32.mrf.mxu0 }
  0xb9   :  { %v254_v6 = vadd.f32 %v5330_v61, %v253_v4 }
  0xbb   :  { %v359_v9 = vmax.f32 %v254_v6, 0.0 }
  0xbd   :  { %v401_v13 = vadd.f32 %v359_v9, %v358_v8 }
  0xbf   :  { %v423_v17 = vmul.f32 0.5, %v401_v13  ;;  %v119_v13 = vpack.c.bf16 %v91_v11, %v90_v10 }
  0xc0   :  { %v256_v18 = vpop.f32.mrf.mxu0 }
  0xc1   :  { %v444_v19 = vpack.c.bf16 %v423_v17, %v422_v16  ;;  %v257_v20 = vadd.f32 %v5330_v61, %v256_v18 }
  0xc3   :  { %3518 = vmatmul.msk.bf16.gmra.mxu0 %vm166_vm1, %v114_v15  ;;  %669 = vmatmul.bf16.vlgmr.msra.gmra.mxu1 %v444_v19  ;;  %v360_v23 = vmax.f32 %v257_v20, 0.0 }
  0xc8   :  { %v258_v21 = vpop.f32.mrf.mxu0 }
  0xc9   :  { %v259_v22 = vadd.f32 %v5330_v61, %v258_v21 }
  0xcb   :  { %v361_v24 = vmax.f32 %v259_v22, 0.0  ;;  %v92_v22 = vld [vmem:[%s7379_s25 + $0x100] sm:$0xff] }
  0xcd   :  { %v402_v27 = vadd.f32 %v361_v24, %v360_v23  ;;  %v93_v23 = vld [vmem:[%s7379_s25 + $0x108] sm:$0xff] }
  0xce   :  { %v120_v25 = vpack.c.bf16 %v93_v23, %v92_v22 }
  0xcf   :  { %v424_v29 = vmul.f32 0.5, %v402_v27 }
  0xd0   :  { %v261_v30 = vpop.f32.mrf.mxu0 }
  0xd1   :  { %v445_v31 = vpack.c.bf16 %v424_v29, %v423_v17  ;;  %v262_v32 = vadd.f32 %v5330_v61, %v261_v30 }
  0xd3   :  { %3519 = vmatmul.msk.bf16.gmra.mxu0 %vm166_vm1, %v115_v28  ;;  %728 = vmatmul.bf16.vlgmr.msra.gmra.mxu2 %v445_v31  ;;  %v362_v35 = vmax.f32 %v262_v32, 0.0 }
  0xd8   :  { %v263_v33 = vpop.f32.mrf.mxu0 }
  0xd9   :  { %v264_v34 = vadd.f32 %v5330_v61, %v263_v33 }
  0xdb   :  { %v363_v36 = vmax.f32 %v264_v34, 0.0  ;;  %v94_v34 = vld [vmem:[%s7379_s25 + $0x110] sm:$0xff] }
  0xdd   :  { %v403_v39 = vadd.f32 %v363_v36, %v362_v35  ;;  %v95_v35 = vld [vmem:[%s7379_s25 + $0x118] sm:$0xff] }
  0xde   :  { %v121_v37 = vpack.c.bf16 %v95_v35, %v94_v34 }
  0xdf   :  { %v425_v41 = vmul.f32 0.5, %v403_v39 }
  0xe0   :  { %v266_v42 = vpop.f32.mrf.mxu0 }
  0xe1   :  { %v446_v43 = vpack.c.bf16 %v425_v41, %v424_v29  ;;  %v267_v44 = vadd.f32 %v5330_v61, %v266_v42 }
  0xe3   :  { %3520 = vmatmul.msk.bf16.gmra.mxu0 %vm166_vm1, %v116_v40  ;;  %674 = vmatmul.bf16.gmra.mxu1 %v446_v43  ;;  %v364_v47 = vmax.f32 %v267_v44, 0.0 }
  0xe4   :  { %787 = vmatmul.bf16.vlgmr.msra.gmra.mxu3 %v446_v43 }
  0xe8   :  { %v268_v45 = vpop.f32.mrf.mxu0 }
  0xe9   :  { %v269_v46 = vadd.f32 %v5330_v61, %v268_v45 }
  0xeb   :  { %v365_v48 = vmax.f32 %v269_v46, 0.0  ;;  %v96_v46 = vld [vmem:[%s7379_s25 + $0x120] sm:$0xff] }
  0xed   :  { %v404_v51 = vadd.f32 %v365_v48, %v364_v47  ;;  %v97_v47 = vld [vmem:[%s7379_s25 + $0x128] sm:$0xff] }
  0xee   :  { %v122_v49 = vpack.c.bf16 %v97_v47, %v96_v46 }
  0xef   :  { %v426_v53 = vmul.f32 0.5, %v404_v51 }
  0xf0   :  { %v271_v54 = vpop.f32.mrf.mxu0 }
  0xf1   :  { %v447_v55 = vpack.c.bf16 %v426_v53, %v425_v41  ;;  %v272_v56 = vadd.f32 %v5330_v61, %v271_v54 }
  0xf3   :  { %3521 = vmatmul.msk.bf16.gmra.mxu0 %vm166_vm1, %v117_v52  ;;  %733 = vmatmul.bf16.gmra.mxu2 %v447_v55  ;;  %v366_v59 = vmax.f32 %v272_v56, 0.0 }
  0xf8   :  { %v273_v57 = vpop.f32.mrf.mxu0 }
  0xf9   :  { %v274_v58 = vadd.f32 %v5330_v61, %v273_v57 }
  0xfb   :  { %v367_v60 = vmax.f32 %v274_v58, 0.0  ;;  %v98_v58 = vld [vmem:[%s7379_s25 + $0x130] sm:$0xff] }
  0xfd   :  { %v405_v0 = vadd.f32 %v367_v60, %v366_v59  ;;  %v99_v59 = vld [vmem:[%s7379_s25 + $0x138] sm:$0xff] }
  0xfe   :  { %v123_v62 = vpack.c.bf16 %v99_v59, %v98_v58 }
  0xff   :  { %v427_v2 = vmul.f32 0.5, %v405_v0 }
 0x100   :  { %v276_v3 = vpop.f32.mrf.mxu0 }
 0x101   :  { %v448_v4 = vpack.c.bf16 %v427_v2, %v426_v53  ;;  %v277_v5 = vadd.f32 %v5330_v61, %v276_v3 }
 0x103   :  { %3522 = vmatmul.msk.bf16.gmra.mxu0 %vm166_vm1, %v118_v1  ;;  %679 = vmatmul.bf16.gmra.mxu1 %v448_v4  ;;  %v368_v8 = vmax.f32 %v277_v5, 0.0 }
 0x104   :  { %792 = vmatmul.bf16.gmra.mxu3 %v448_v4 }
 0x108   :  { %v278_v6 = vpop.f32.mrf.mxu0 }
 0x109   :  { %v279_v7 = vadd.f32 %v5330_v61, %v278_v6 }
 0x10b   :  { %v369_v9 = vmax.f32 %v279_v7, 0.0  ;;  %v100_v7 = vld [vmem:[%s7379_s25 + $0x140] sm:$0xff] }
 0x10d   :  { %v406_v12 = vadd.f32 %v369_v9, %v368_v8  ;;  %v101_v8 = vld [vmem:[%s7379_s25 + $0x148] sm:$0xff] }
 0x10e   :  { %v124_v10 = vpack.c.bf16 %v101_v8, %v100_v7 }
 0x10f   :  { %v428_v14 = vmul.f32 0.5, %v406_v12 }
 0x110   :  { %v281_v15 = vpop.f32.mrf.mxu0 }
 0x111   :  { %v449_v16 = vpack.c.bf16 %v428_v14, %v427_v2  ;;  %v282_v17 = vadd.f32 %v5330_v61, %v281_v15 }
 0x113   :  { %3523 = vmatmul.msk.bf16.gmra.mxu0 %vm166_vm1, %v119_v13  ;;  %738 = vmatmul.bf16.gmra.mxu2 %v449_v16  ;;  %v370_v20 = vmax.f32 %v282_v17, 0.0 }
 0x118   :  { %v283_v18 = vpop.f32.mrf.mxu0 }
 0x119   :  { %v284_v19 = vadd.f32 %v5330_v61, %v283_v18 }
 0x11b   :  { %v371_v21 = vmax.f32 %v284_v19, 0.0  ;;  %v102_v19 = vld [vmem:[%s7379_s25 + $0x150] sm:$0xff] }
 0x11d   :  { %v407_v24 = vadd.f32 %v371_v21, %v370_v20  ;;  %v103_v20 = vld [vmem:[%s7379_s25 + $0x158] sm:$0xff] }
 0x11e   :  { %v125_v22 = vpack.c.bf16 %v103_v20, %v102_v19 }
 0x11f   :  { %v429_v26 = vmul.f32 0.5, %v407_v24 }
 0x120   :  { %v286_v27 = vpop.f32.mrf.mxu0 }
 0x121   :  { %v450_v28 = vpack.c.bf16 %v429_v26, %v428_v14  ;;  %v287_v29 = vadd.f32 %v5330_v61, %v286_v27 }
 0x123   :  { %3524 = vmatmul.msk.bf16.gmra.mxu0 %vm166_vm1, %v120_v25  ;;  %684 = vmatmul.bf16.gmra.mxu1 %v450_v28  ;;  %v372_v32 = vmax.f32 %v287_v29, 0.0 }
 0x124   :  { %797 = vmatmul.bf16.gmra.mxu3 %v450_v28 }
 0x128   :  { %v288_v30 = vpop.f32.mrf.mxu0 }
 0x129   :  { %v289_v31 = vadd.f32 %v5330_v61, %v288_v30 }
 0x12b   :  { %v373_v33 = vmax.f32 %v289_v31, 0.0 }
 0x12d   :  { %v408_v36 = vadd.f32 %v373_v33, %v372_v32 }
 0x12f   :  { %v430_v38 = vmul.f32 0.5, %v408_v36 }
 0x130   :  { %v291_v39 = vpop.f32.mrf.mxu0 }
 0x131   :  { %v451_v40 = vpack.c.bf16 %v430_v38, %v429_v26  ;;  %v292_v41 = vadd.f32 %v5330_v61, %v291_v39 }
 0x133   :  { %3525 = vmatmul.msk.bf16.gmra.mxu0 %vm166_vm1, %v121_v37  ;;  %743 = vmatmul.bf16.gmra.mxu2 %v451_v40  ;;  %v374_v44 = vmax.f32 %v292_v41, 0.0 }
 0x138   :  { %v293_v42 = vpop.f32.mrf.mxu0 }
 0x139   :  { %v294_v43 = vadd.f32 %v5330_v61, %v293_v42 }
 0x13b   :  { %v375_v45 = vmax.f32 %v294_v43, 0.0 }
 0x13d   :  { %v409_v48 = vadd.f32 %v375_v45, %v374_v44 }
 0x13f   :  { %v431_v50 = vmul.f32 0.5, %v409_v48 }
 0x140   :  { %v296_v51 = vpop.f32.mrf.mxu0 }
 0x141   :  { %v452_v52 = vpack.c.bf16 %v431_v50, %v430_v38  ;;  %v297_v53 = vadd.f32 %v5330_v61, %v296_v51 }
 0x143   :  { %3526 = vmatmul.msk.bf16.gmra.mxu0 %vm166_vm1, %v122_v49  ;;  %689 = vmatmul.bf16.gmra.mxu1 %v452_v52  ;;  %v376_v56 = vmax.f32 %v297_v53, 0.0  ;;  %v5461_v53 = vpop.f32.mrf.mxu1 }
 0x144   :  { %802 = vmatmul.bf16.gmra.mxu3 %v452_v52 }
 0x148   :  { %v298_v54 = vpop.f32.mrf.mxu0 }
 0x149   :  { %v299_v55 = vadd.f32 %v5330_v61, %v298_v54 }
 0x14b   :  { %v377_v57 = vmax.f32 %v299_v55, 0.0 }
 0x14d   :  { %v410_v60 = vadd.f32 %v377_v57, %v376_v56 }
 0x14f   :  { %v432_v63 = vmul.f32 0.5, %v410_v60 }
 0x150   :  { %v301_v0 = vpop.f32.mrf.mxu0 }
 0x151   :  { %v453_v1 = vpack.c.bf16 %v432_v63, %v431_v50  ;;  %v302_v2 = vadd.f32 %v5330_v61, %v301_v0 }
 0x153   :  { %3527 = vmatmul.msk.bf16.gmra.mxu0 %vm166_vm1, %v123_v62  ;;  %748 = vmatmul.bf16.gmra.mxu2 %v453_v1  ;;  %v378_v5 = vmax.f32 %v302_v2, 0.0  ;;  %v5469_v62 = vpop.f32.mrf.mxu1 }
 0x156   :  { %v5463_v54 = vpop.f32.mrf.mxu2 }
 0x158   :  { %v303_v3 = vpop.f32.mrf.mxu0 }
 0x159   :  { %v304_v4 = vadd.f32 %v5330_v61, %v303_v3 }
 0x15b   :  { %v379_v6 = vmax.f32 %v304_v4, 0.0  ;;  %v3684_v4 = vld [vmem:[%s7359_s6 + $0x70] sm:$0xf] }
 0x15d   :  { %v411_v9 = vadd.f32 %v379_v6, %v378_v5  ;;  %v4813_v5 = vld [vmem:[%s7359_s6 + $0x74] sm:$0xf0] }
 0x15e   :  { %v5471_v1 = vpop.f32.mrf.mxu2  ;;  %v3685_v6 = vor.u32 %v4813_v5, %v3684_v4  ;;  %v4823_v5 = vld [vmem:[%s7359_s6 + $0xc4] sm:$0xf0] }
 0x15f   :  { %v433_v11 = vmul.f32 0.5, %v411_v9  ;;  %v3676_v9 = vld [vmem:[%s7359_s6 + $0x60] sm:$0xf] }
 0x160   :  { %v306_v12 = vpop.f32.mrf.mxu0  ;;  %v5479_v7 = vpop.f32.mrf.mxu1  ;;  %1181 = vmatpush.bf16.msrb.mxu1 %v3685_v6 }
 0x161   :  { %v454_v13 = vpack.c.bf16 %v433_v11, %v432_v63  ;;  %v307_v14 = vadd.f32 %v5330_v61, %v306_v12 }
 0x163   :  { %3528 = vmatmul.msk.bf16.gmra.mxu0 %vm166_vm1, %v124_v10  ;;  %694 = vmatmul.bf16.gmra.mxu1 %v454_v13  ;;  %v380_v17 = vmax.f32 %v307_v14, 0.0  ;;  %v4811_v10 = vld [vmem:[%s7359_s6 + $0x64] sm:$0xf0] }
 0x164   :  { %807 = vmatmul.bf16.gmra.mxu3 %v454_v13  ;;  %v3677_v12 = vor.u32 %v4811_v10, %v3676_v9 }
 0x166   :  { %1182 = vmatpush.bf16.msrb.mxu1 %v3677_v12 }
 0x167   :  { %v5467_v60 = vpop.f32.mrf.mxu3 }
 0x168   :  { %v308_v15 = vpop.f32.mrf.mxu0 }
 0x169   :  { %v309_v16 = vadd.f32 %v5330_v61, %v308_v15 }
 0x16b   :  { %v381_v18 = vmax.f32 %v309_v16, 0.0  ;;  %v3668_v16 = vld [vmem:[%s7359_s6 + $0x50] sm:$0xf] }
 0x16d   :  { %v412_v21 = vadd.f32 %v381_v18, %v380_v17  ;;  %v4809_v17 = vld [vmem:[%s7359_s6 + $0x54] sm:$0xf0] }
 0x16e   :  { %v3669_v20 = vor.u32 %v4809_v17, %v3668_v16  ;;  %v3716_v17 = vld [vmem:[%s7359_s6 + $0xb0] sm:$0xf] }
 0x16f   :  { %v434_v23 = vmul.f32 0.5, %v412_v21  ;;  %v5481_v8 = vpop.f32.mrf.mxu3 }
 0x170   :  { %v311_v24 = vpop.f32.mrf.mxu0  ;;  %1183 = vmatpush.bf16.msrb.mxu1 %v3669_v20 }
 0x171   :  { %v455_v25 = vpack.c.bf16 %v434_v23, %v433_v11  ;;  %v312_v26 = vadd.f32 %v5330_v61, %v311_v24  ;;  %v4807_v24 = vld [vmem:[%s7359_s6 + $0x44] sm:$0xf0] }
 0x173   :  { %3529 = vmatmul.msk.bf16.gmra.mxu0 %vm166_vm1, %v125_v22  ;;  %753 = vmatmul.bf16.gmra.mxu2 %v455_v25  ;;  %v382_v29 = vmax.f32 %v312_v26, 0.0  ;;  %v5507_v25 = vpop.f32.mrf.mxu1 }
 0x176   :  { %v5490_v13 = vpop.f32.mrf.mxu2 }
 0x178   :  { %v313_v27 = vpop.f32.mrf.mxu0 }
 0x179   :  { %v314_v28 = vadd.f32 %v5330_v61, %v313_v27 }
 0x17b   :  { %v383_v30 = vmax.f32 %v314_v28, 0.0 }
 0x17d   :  { %v413_v31 = vadd.f32 %v383_v30, %v382_v29 }
 0x17e   :  { %v5509_v30 = vpop.f32.mrf.mxu2 }
 0x17f   :  { %v435_v32 = vmul.f32 0.5, %v413_v31  ;;  %v3652_v31 = vld [vmem:[%s7359_s6 + $0x30] sm:$0xf] }
 0x180   :  { %v316_v33 = vpop.f32.mrf.mxu0 }
 0x181   :  { %v456_v34 = vpack.c.bf16 %v435_v32, %v434_v23  ;;  %v317_v35 = vadd.f32 %v5330_v61, %v316_v33  ;;  %v3660_v23 = vld [vmem:[%s7359_s6 + $0x40] sm:$0xf]  ;;  %v3748_v33 = vld [vmem:[%s7359_s6 + $0xf0] sm:$0xf] }
 0x182   :  { %v3661_v27 = vor.u32 %v4807_v24, %v3660_v23  ;;  %v4819_v23 = vld [vmem:[%s7359_s6 + $0xa4] sm:$0xf0] }
 0x183   :  { %699 = vmatmul.bf16.gmra.mxu1 %v456_v34  ;;  %812 = vmatmul.bf16.gmra.mxu3 %v456_v34  ;;  %v384_v38 = vmax.f32 %v317_v35, 0.0  ;;  %v4829_v35 = vld [vmem:[%s7359_s6 + $0xf4] sm:$0xf0] }
 0x184   :  { %1184 = vmatpush.bf16.msrb.mxu1 %v3661_v27  ;;  %v3804_v27 = vld [vmem:[%s7359_s6 + $0x160] sm:$0xf] }
 0x187   :  { %v5499_v22 = vpop.f32.mrf.mxu3 }
 0x188   :  { %v318_v36 = vpop.f32.mrf.mxu0 }
 0x189   :  { %v319_v37 = vadd.f32 %v5330_v61, %v318_v36  ;;  %v3749_v36 = vor.u32 %v4829_v35, %v3748_v33  ;;  %v3700_v35 = vld [vmem:[%s7359_s6 + $0x90] sm:$0xf] }
 0x18b   :  { %v385_v39 = vmax.f32 %v319_v37, 0.0  ;;  %1210 = vmatpush.bf16.msrb.mxu2 %v3749_v36  ;;  %v3644_v37 = vld [vmem:[%s7359_s6 + $0x20] sm:$0xf]  ;;  %v4817_v36 = vld [vmem:[%s7359_s6 + $0x94] sm:$0xf0] }
 0x18d   :  { %v414_v40 = vadd.f32 %v385_v39, %v384_v38  ;;  %v4803_v38 = vld [vmem:[%s7359_s6 + $0x24] sm:$0xf0]  ;;  %v3740_v39 = vld [vmem:[%s7359_s6 + $0xe0] sm:$0xf] }
 0x18f   :  { %v436_v41 = vmul.f32 0.5, %v414_v40  ;;  %v5532_v40 = vpop.f32.mrf.mxu1 }
 0x190   :  { %v321_v42 = vpop.f32.mrf.mxu0 }
 0x191   :  { %v457_v43 = vpack.c.bf16 %v436_v41, %v435_v32  ;;  %v322_v44 = vadd.f32 %v5330_v61, %v321_v42  ;;  %v4805_v32 = vld [vmem:[%s7359_s6 + $0x34] sm:$0xf0]  ;;  %v3645_v42 = vor.u32 %v4803_v38, %v3644_v37  ;;  %v3796_v37 = vld [vmem:[%s7359_s6 + $0x150] sm:$0xf]  ;;  %v5615_v38 = vld [vmem:[%s7358_s5] ss:$0 sm:$0xff] }
 0x192   :  { %v3653_v34 = vor.u32 %v4805_v32, %v3652_v31 }
 0x193   :  { %758 = vmatmul.bf16.gmra.mxu2 %v457_v43  ;;  %v386_v47 = vmax.f32 %v322_v44, 0.0  ;;  %v4827_v43 = vld [vmem:[%s7359_s6 + $0xe4] sm:$0xf0]  ;;  %v5538_v44 = vpop.f32.mrf.mxu3 }
 0x194   :  { %1185 = vmatpush.bf16.msrb.mxu1 %v3653_v34 }
 0x197   :  { %v5569_v12 = vpop.f32.mrf.mxu1 }
 0x198   :  { %v323_v45 = vpop.f32.mrf.mxu0  ;;  %1186 = vmatpush.bf16.msrb.mxu1 %v3645_v42  ;;  %v3701_v42 = vor.u32 %v4817_v36, %v3700_v35 }
 0x199   :  { %v324_v46 = vadd.f32 %v5330_v61, %v323_v45 }
 0x19b   :  { %v387_v48 = vmax.f32 %v324_v46, 0.0  ;;  %v3741_v46 = vor.u32 %v4827_v43, %v3740_v39  ;;  %v4841_v43 = vld [vmem:[%s7359_s6 + $0x154] sm:$0xf0] }
 0x19d   :  { %v415_v49 = vadd.f32 %v387_v48, %v386_v47  ;;  %v5541_v48 = vpop.f32.mrf.mxu2  ;;  %1211 = vmatpush.bf16.msrb.mxu2 %v3741_v46  ;;  %v3797_v46 = vor.u32 %v4841_v43, %v3796_v37 }
 0x19f   :  { %v437_v50 = vmul.f32 0.5, %v415_v49  ;;  %v3636_v49 = vld [vmem:[%s7359_s6 + $0x10] sm:$0xf] }
 0x1a0   :  { %v326_v51 = vpop.f32.mrf.mxu0  ;;  %v5599_v33 = vpop.f32.mrf.mxu1 }
 0x1a1   :  { %v458_v52 = vpack.c.bf16 %v437_v50, %v436_v41  ;;  %v327_v55 = vadd.f32 %v5330_v61, %v326_v51 }
 0x1a3   :  { %704 = vmatmul.bf16.gmra.mxu1 %v458_v52  ;;  %817 = vmatmul.bf16.gmra.mxu3 %v458_v52  ;;  %v388_v58 = vmax.f32 %v327_v55, 0.0 }
 0x1a7   :  { %v5567_v6 = vpop.f32.mrf.mxu3 }
 0x1a8   :  { %v328_v56 = vpop.f32.mrf.mxu0 }
 0x1a9   :  { %v329_v57 = vadd.f32 %v5330_v61, %v328_v56  ;;  %v3732_v56 = vld [vmem:[%s7359_s6 + $0xd0] sm:$0xf] }
 0x1ab   :  { %v389_v59 = vmax.f32 %v329_v57, 0.0  ;;  %v4825_v57 = vld [vmem:[%s7359_s6 + $0xd4] sm:$0xf0] }
 0x1ad   :  { %v416_v63 = vadd.f32 %v389_v59, %v388_v58  ;;  %v3733_v58 = vor.u32 %v4825_v57, %v3732_v56 }
 0x1af   :  { %v438_v0 = vmul.f32 0.5, %v416_v63  ;;  %1212 = vmatpush.bf16.msrb.mxu2 %v3733_v58  ;;  %v3628_v63 = vld [vmem:[%s7359_s6] sm:$0xf]  ;;  %v5601_v34 = vpop.f32.mrf.mxu3  ;;  %v4839_v58 = vld [vmem:[%s7359_s6 + $0x144] sm:$0xf0] }
 0x1b0   :  { %v331_v2 = vpop.f32.mrf.mxu0 }
 0x1b1   :  { %v459_v3 = vpack.c.bf16 %v438_v0, %v437_v50  ;;  %v332_v11 = vadd.f32 %v5330_v61, %v331_v2  ;;  %v4801_v50 = vld [vmem:[%s7359_s6 + $0x14] sm:$0xf0]  ;;  %v3724_v2 = vld [vmem:[%s7359_s6 + $0xc0] sm:$0xf] }
 0x1b2   :  { %v3637_v55 = vor.u32 %v4801_v50, %v3636_v49  ;;  %v3725_v10 = vor.u32 %v4823_v5, %v3724_v2  ;;  %v673_v50 = vadd.f32 %v5615_v38, %v5469_v62 }
 0x1b3   :  { %763 = vmatmul.bf16.gmra.mxu2 %v459_v3  ;;  %v390_v18 = vmax.f32 %v332_v11, 0.0 }
 0x1b4   :  { %1187 = vmatpush.bf16.msrb.mxu1 %v3637_v55  ;;  %1213 = vmatpush.bf16.msrb.mxu2 %v3725_v10  ;;  %v3788_v55 = vld [vmem:[%s7359_s6 + $0x140] sm:$0xf] }
 0x1b5   :  { %v3789_v2 = vor.u32 %v4839_v58, %v3788_v55  ;;  %v681_v55 = vadd.f32 %v5615_v38, %v5532_v40 }
 0x1b8   :  { %v333_v14 = vpop.f32.mrf.mxu0 }
 0x1b9   :  { %v334_v15 = vadd.f32 %v5330_v61, %v333_v14  ;;  %v3812_v14 = vld [vmem:[%s7359_s6 + $0x170] sm:$0xf] }
 0x1bb   :  { %v391_v19 = vmax.f32 %v334_v15, 0.0  ;;  %v4845_v15 = vld [vmem:[%s7359_s6 + $0x174] sm:$0xf0] }
 0x1bc   :  { %v3813_v16 = vor.u32 %v4845_v15, %v3812_v14  ;;  %v3772_v15 = vld [vmem:[%s7359_s6 + $0x120] sm:$0xf] }
 0x1bd   :  { %v417_v21 = vadd.f32 %v391_v19, %v390_v18  ;;  %v4821_v18 = vld [vmem:[%s7359_s6 + $0xb4] sm:$0xf0]  ;;  %v5583_v19 = vpop.f32.mrf.mxu2 }
 0x1be   :  { %v3717_v20 = vor.u32 %v4821_v18, %v3716_v17  ;;  %1239 = vmatpush.bf16.msrb.mxu3 %v3813_v16  ;;  %v4835_v16 = vld [vmem:[%s7359_s6 + $0x124] sm:$0xf0] }
 0x1bf   :  { %v439_v26 = vmul.f32 0.5, %v417_v21  ;;  %v3708_v21 = vld [vmem:[%s7359_s6 + $0xa0] sm:$0xf]  ;;  %v3773_v18 = vor.u32 %v4835_v16, %v3772_v15 }
 0x1c0   :  { %v336_v28 = vpop.f32.mrf.mxu0  ;;  %1214 = vmatpush.bf16.msrb.mxu2 %v3717_v20 }
 0x1c1   :  { %v460_v29 = vpack.c.bf16 %v439_v26, %v438_v0  ;;  %v337_v41 = vadd.f32 %v5330_v61, %v336_v28  ;;  %v4799_v0 = vld [vmem:[%s7359_s6 + $0x4] sm:$0xf0] }
 0x1c2   :  { %v3629_v4 = vor.u32 %v4799_v0, %v3628_v63  ;;  %v4843_v28 = vld [vmem:[%s7359_s6 + $0x164] sm:$0xf0]  ;;  %v732_v63 = vadd.f32 %v5471_v1, %v673_v50  ;;  %v4837_v1 = vld [vmem:[%s7359_s6 + $0x134] sm:$0xf0] }
 0x1c3   :  { %709 = vmatmul.bf16.gmra.mxu1 %v460_v29  ;;  %822 = vmatmul.bf16.gmra.mxu3 %v460_v29  ;;  %v392_v51 = vmax.f32 %v337_v41, 0.0  ;;  %v3805_v31 = vor.u32 %v4843_v28, %v3804_v27 }
 0x1c4   :  { %1188 = vmatpush.bf16.msrb.mxu1 %v3629_v4 }
 0x1c5   :  { %1240 = vmatpush.bf16.msrb.mxu3 %v3805_v31 }
 0x1c7   :  { %v803_v10 = vpop.f32.mrf.mxu3 }
 0x1c8   :  { %v338_v45 = vpop.f32.mrf.mxu0 }
 0x1c9   :  { %v339_v47 = vadd.f32 %v5330_v61, %v338_v45  ;;  %v5620_v45 = vpop.f32.mrf.mxu2  ;;  %1241 = vmatpush.bf16.msrb.mxu3 %v3797_v46  ;;  %v3756_v46 = vld [vmem:[%s7359_s6 + $0x100] sm:$0xf] }
 0x1cb   :  { %v393_v52 = vmax.f32 %v339_v47, 0.0  ;;  %v678_v47 = vadd.f32 %v5615_v38, %v5507_v25  ;;  %v676_v25 = vadd.f32 %v5615_v38, %v5479_v7 }
 0x1cd   :  { %v418_v59 = vadd.f32 %v393_v52, %v392_v51  ;;  %v3692_v51 = vld [vmem:[%s7359_s6 + $0x80] sm:$0xf]  ;;  %v4815_v52 = vld [vmem:[%s7359_s6 + $0x84] sm:$0xf0]  ;;  %v737_v56 = vadd.f32 %v5509_v30, %v678_v47  ;;  %v735_v4 = vadd.f32 %v5490_v13, %v676_v25  ;;  %1242 = vmatpush.bf16.msrb.mxu3 %v3789_v2 }
 0x1ce   :  { %v3693_v57 = vor.u32 %v4815_v52, %v3692_v51  ;;  %v4831_v47 = vld [vmem:[%s7359_s6 + $0x104] sm:$0xf0] }
 0x1cf   :  { %v440_v3 = vmul.f32 0.5, %v418_v59  ;;  %v671_v59 = vadd.f32 %v5615_v38, %v5461_v53  ;;  %v796_v7 = vadd.f32 %v5538_v44, %v737_v56  ;;  %v3780_v53 = vld [vmem:[%s7359_s6 + $0x130] sm:$0xf]  ;;  %v794_v13 = vadd.f32 %v5499_v22, %v735_v4  ;;  %v805_v35 = vpop.f32.mrf.mxu3 }
 0x1d0   :  { %v341_v9 = vpop.f32.mrf.mxu0  ;;  %v3781_v44 = vor.u32 %v4837_v1, %v3780_v53  ;;  %v3757_v52 = vor.u32 %v4831_v47, %v3756_v46 }
 0x1d1   :  { %v461_v11 = vpack.c.bf16 %v440_v3, %v439_v26  ;;  %v342_v24 = vadd.f32 %v5330_v61, %v341_v9  ;;  %v3709_v26 = vor.u32 %v4819_v23, %v3708_v21  ;;  %v730_v5 = vadd.f32 %v5463_v54, %v671_v59  ;;  %v746_v14 = vpop.f32.mrf.mxu2 }
 0x1d2   :  { %v791_v9 = vadd.f32 %v5481_v8, %v732_v63  ;;  %v841_v8 = vmax.f32 %v796_v7, 0.0  ;;  %1243 = vmatpush.bf16.msrb.mxu3 %v3781_v44  ;;  %v840_v17 = vmax.f32 %v794_v13, 0.0  ;;  %v740_v63 = vadd.f32 %v5541_v48, %v681_v55 }
 0x1d3   :  { %768 = vmatmul.bf16.gmra.mxu2 %v461_v11  ;;  %v394_v39 = vmax.f32 %v342_v24, 0.0  ;;  %v789_v54 = vadd.f32 %v5467_v60, %v730_v5  ;;  %v3764_v24 = vld [vmem:[%s7359_s6 + $0x110] sm:$0xf] }
 0x1d4   :  { %1215 = vmatpush.bf16.msrb.mxu2 %v3709_v26  ;;  %v839_v11 = vmax.f32 %v791_v9, 0.0  ;;  %v859_v60 = vadd.f32 %v841_v8, %v840_v17  ;;  %v4833_v26 = vld [vmem:[%s7359_s6 + $0x114] sm:$0xf0]  ;;  %v799_v40 = vadd.f32 %v5567_v6, %v740_v63 }
 0x1d5   :  { %v838_v20 = vmax.f32 %v789_v54, 0.0  ;;  %v3765_v28 = vor.u32 %v4833_v26, %v3764_v24 }
 0x1d6   :  { %1244 = vmatpush.bf16.msrb.mxu3 %v3773_v18  ;;  %v869_v36 = vmul.f32 0.5, %v859_v60 }
 0x1d7   :  { %v858_v27 = vadd.f32 %v839_v11, %v838_v20 }
 0x1d8   :  { %v343_v29 = vpop.f32.mrf.mxu0  ;;  %1216 = vmatpush.bf16.msrb.mxu2 %v3701_v42  ;;  %v683_v42 = vadd.f32 %v5615_v38, %v5569_v12 }
 0x1d9   :  { %v344_v32 = vadd.f32 %v5330_v61, %v343_v29  ;;  %v749_v43 = vpop.f32.mrf.mxu2 }
 0x1da   :  { %1245 = vmatpush.bf16.msrb.mxu3 %v3765_v28  ;;  %v742_v12 = vadd.f32 %v5583_v19, %v683_v42 }
 0x1db   :  { %v395_v41 = vmax.f32 %v344_v32, 0.0 }
 0x1dc   :  { %1217 = vmatpush.bf16.msrb.mxu2 %v3693_v57 }
 0x1dd   :  { %v419_v49 = vadd.f32 %v395_v41, %v394_v39  ;;  %v868_v41 = vmul.f32 0.5, %v858_v27 }
 0x1de   :  { %1246 = vmatpush.bf16.msrb.mxu3 %v3757_v52 }
 0x1df   :  { %v5638_v62 = vmul.f32 0.5, %v419_v49  ;;  %v686_v49 = vadd.f32 %v5615_v38, %v5599_v33  ;;  %v5689_v59 = vpack.c.bf16 %v869_v36, %v868_v41  ;;  %v801_v33 = vadd.f32 %v5601_v34, %v742_v12 }
 0x1e0   :  { %v346_v0 = vpop.f32.mrf.mxu0 }
 0x1e1   :  { %v462_v30 = vpack.c.bf16 %v5638_v62, %v440_v3  ;;  %v687_v3 = vpop.f32.mrf.mxu1  ;;  %v347_v22 = vadd.f32 %v5330_v61, %v346_v0  ;;  %v745_v56 = vadd.f32 %v5620_v45, %v686_v49  ;;  %v843_v4 = vmax.f32 %v801_v33, 0.0  ;;  %v751_v5 = vpop.f32.mrf.mxu2 }
 0x1e2   :  { %v688_v37 = vadd.f32 %v5615_v38, %v687_v3 }
 0x1e3   :  { %714 = vmatmul.bf16.gmra.mxu1 %v462_v30  ;;  %827 = vmatmul.bf16.gmra.mxu3 %v462_v30  ;;  %v396_v29 = vmax.f32 %v347_v22, 0.0  ;;  %v804_v0 = vadd.f32 %v803_v10, %v745_v56  ;;  %v842_v30 = vmax.f32 %v799_v40, 0.0  ;;  %v3686_v56 = vld [vmem:[%s7359_s6 + $0x78] sm:$0xf0]  ;;  %v4810_v40 = vld [vmem:[%s7359_s6 + $0x64] sm:$0xf] }
 0x1e4   :  { %v747_v50 = vadd.f32 %v746_v14, %v688_v37 }
 0x1e5   :  { %v844_v7 = vmax.f32 %v804_v0, 0.0  ;;  %v860_v53 = vadd.f32 %v843_v4, %v842_v30  ;;  %v4808_v30 = vld [vmem:[%s7359_s6 + $0x54] sm:$0xf] }
 0x1e6   :  { %v806_v57 = vadd.f32 %v805_v35, %v747_v50 }
 0x1e7   :  { %v808_v19 = vpop.f32.mrf.mxu3  ;;  %v870_v54 = vmul.f32 0.5, %v860_v53 }
 0x1e8   :  { %v348_v21 = vpop.f32.mrf.mxu0  ;;  %v845_v2 = vmax.f32 %v806_v57, 0.0 }
 0x1e9   :  { %v349_v23 = vadd.f32 %v5330_v61, %v348_v21  ;;  %v690_v32 = vpop.f32.mrf.mxu1  ;;  %v5701_v20 = vpack.c.bf16 %v870_v54, %v869_v36 }
 0x1ea   :  { %v861_v48 = vadd.f32 %v845_v2, %v844_v7  ;;  %v691_v14 = vadd.f32 %v5615_v38, %v690_v32 }
 0x1eb   :  { %v397_v31 = vmax.f32 %v349_v23, 0.0 }
 0x1ec   :  { %v871_v13 = vmul.f32 0.5, %v861_v48  ;;  %v750_v18 = vadd.f32 %v749_v43, %v691_v14  ;;  %v3646_v14 = vld [vmem:[%s7359_s6 + $0x28] sm:$0xf0] }
 0x1ed   :  { %v420_v39 = vadd.f32 %v397_v31, %v396_v29 }
 0x1ee   :  { %v5699_v17 = vpack.c.bf16 %v871_v13, %v870_v54  ;;  %v809_v21 = vadd.f32 %v808_v19, %v750_v18  ;;  %v3678_v19 = vld [vmem:[%s7359_s6 + $0x68] sm:$0xf0]  ;;  %v4800_v18 = vld [vmem:[%s7359_s6 + $0x14] sm:$0xf] }
 0x1ef   :  { %v442_v51 = vmul.f32 0.5, %v420_v39  ;;  %v810_v8 = vpop.f32.mrf.mxu3 }
 0x1f0   :  { %v351_v25 = vpop.f32.mrf.mxu0  ;;  %v846_v24 = vmax.f32 %v809_v21, 0.0 }
 0x1f1   :  { %v463_v58 = vpack.c.bf16 %v442_v51, %v5638_v62  ;;  %v692_v45 = vpop.f32.mrf.mxu1  ;;  %v352_v62 = vadd.f32 %v5330_v61, %v351_v25  ;;  %v4812_v25 = vld [vmem:[%s7359_s6 + $0x74] sm:$0xf] }
 0x1f2   :  { %v693_v6 = vadd.f32 %v5615_v38, %v692_v45  ;;  %v3681_v45 = vor.u32 %v4810_v40, %v3678_v19  ;;  %v4820_v19 = vld [vmem:[%s7359_s6 + $0xb4] sm:$0xf] }
 0x1f3   :  { %773 = vmatmul.bf16.gmra.mxu2 %v463_v58  ;;  %1189 = vmatmul.bf16.vlgmr.msrb.gmra.mxu1 %v5689_v59  ;;  %v398_v10 = vmax.f32 %v352_v62, 0.0  ;;  %v3689_v58 = vor.u32 %v4812_v25, %v3686_v56 }
 0x1f4   :  { %v752_v15 = vadd.f32 %v751_v5, %v693_v6  ;;  %v3670_v5 = vld [vmem:[%s7359_s6 + $0x58] sm:$0xf0]  ;;  %v4804_v6 = vld [vmem:[%s7359_s6 + $0x34] sm:$0xf] }
 0x1f5   :  { %1268 = vmatpush.bf16.msra.mxu1 %v3689_v58  ;;  %v4822_v58 = vld [vmem:[%s7359_s6 + $0xc4] sm:$0xf] }
 0x1f6   :  { %v754_v16 = vpop.f32.mrf.mxu2 }
 0x1f8   :  { %v353_v9 = vpop.f32.mrf.mxu0 }
 0x1f9   :  { %v354_v34 = vadd.f32 %v5330_v61, %v353_v9  ;;  %v695_v3 = vpop.f32.mrf.mxu1  ;;  %v811_v61 = vadd.f32 %v810_v8, %v752_v15  ;;  %1269 = vmatpush.bf16.msra.mxu1 %v3681_v45  ;;  %v4818_v45 = vld [vmem:[%s7359_s6 + $0xa4] sm:$0xf] }
 0x1fa   :  { %v696_v27 = vadd.f32 %v5615_v38, %v695_v3  ;;  %v3654_v3 = vld [vmem:[%s7359_s6 + $0x38] sm:$0xf0] }
 0x1fb   :  { %v399_v1 = vmax.f32 %v354_v34, 0.0  ;;  %v847_v60 = vmax.f32 %v811_v61, 0.0  ;;  %v3673_v34 = vor.u32 %v4808_v30, %v3670_v5  ;;  %v3657_v8 = vor.u32 %v4804_v6, %v3654_v3  ;;  %v3638_v61 = vld [vmem:[%s7359_s6 + $0x18] sm:$0xf0]  ;;  %v4844_v6 = vld [vmem:[%s7359_s6 + $0x174] sm:$0xf] }
 0x1fc   :  { %v755_v32 = vadd.f32 %v754_v16, %v696_v27  ;;  %v3641_v21 = vor.u32 %v4800_v18, %v3638_v61  ;;  %v3814_v3 = vld [vmem:[%s7359_s6 + $0x178] sm:$0xf0]  ;;  %v3806_v18 = vld [vmem:[%s7359_s6 + $0x168] sm:$0xf0] }
 0x1fd   :  { %v421_v44 = vadd.f32 %v399_v1, %v398_v10  ;;  %v862_v29 = vadd.f32 %v847_v60, %v846_v24  ;;  %1270 = vmatpush.bf16.msra.mxu1 %v3673_v34  ;;  %v4806_v10 = vld [vmem:[%s7359_s6 + $0x44] sm:$0xf]  ;;  %v3662_v1 = vld [vmem:[%s7359_s6 + $0x48] sm:$0xf0] }
 0x1fe   :  { %v756_v28 = vpop.f32.mrf.mxu2  ;;  %v4798_v60 = vld [vmem:[%s7359_s6 + $0x4] sm:$0xf] }
 0x1ff   :  { %v443_v11 = vmul.f32 0.5, %v421_v44  ;;  %v872_v39 = vmul.f32 0.5, %v862_v29  ;;  %v3665_v44 = vor.u32 %v4806_v10, %v3662_v1  ;;  %v3750_v29 = vld [vmem:[%s7359_s6 + $0xf8] sm:$0xf0]  ;;  %v3694_v10 = vld [vmem:[%s7359_s6 + $0x88] sm:$0xf0] }
 0x201   :  { %v464_v22 = vpack.c.bf16 %v443_v11, %v442_v51  ;;  %v697_v26 = vpop.f32.mrf.mxu1  ;;  %v5707_v46 = vpack.c.bf16 %v872_v39, %v871_v13  ;;  %1271 = vmatpush.bf16.msra.mxu1 %v3665_v44  ;;  %v4802_v11 = vld [vmem:[%s7359_s6 + $0x24] sm:$0xf] }
 0x202   :  { %v698_v31 = vadd.f32 %v5615_v38, %v697_v26  ;;  %v3649_v15 = vor.u32 %v4802_v11, %v3646_v14  ;;  %v3817_v11 = vor.u32 %v4844_v6, %v3814_v3  ;;  %v3758_v6 = vld [vmem:[%s7359_s6 + $0x108] sm:$0xf0]  ;;  %v3884_v3 = vld [vmem:[%s7360_s8 + $0x80] sm:$0xf] }
 0x203   :  { %832 = vmatmul.bf16.gmra.mxu3 %v464_v22  ;;  %1194 = vmatmul.bf16.gmra.mxu1 %v5699_v17 }
 0x204   :  { %1218 = vmatmul.bf16.vlgmr.msrb.gmra.mxu2 %v5701_v20  ;;  %v757_v35 = vadd.f32 %v756_v28, %v698_v31  ;;  %v4828_v28 = vld [vmem:[%s7359_s6 + $0xf4] sm:$0xf]  ;;  %1326 = vmatpush.bf16.msra.mxu3 %v3817_v11  ;;  %v4864_v11 = vld [vmem:[%s7360_s8 + $0x8c] sm:$0xf0] }
 0x205   :  { %1272 = vmatpush.bf16.msra.mxu1 %v3657_v8 }
 0x206   :  { %v813_v23 = vpop.f32.mrf.mxu3 }
 0x207   :  { %v814_v36 = vadd.f32 %v813_v23, %v755_v32  ;;  %v3630_v23 = vld [vmem:[%s7359_s6 + $0x8] sm:$0xf0]  ;;  %v3753_v32 = vor.u32 %v4828_v28, %v3750_v29 }
 0x208   :  { %v3633_v24 = vor.u32 %v4798_v60, %v3630_v23 }
 0x209   :  { %v848_v42 = vmax.f32 %v814_v36, 0.0  ;;  %v700_v51 = vpop.f32.mrf.mxu1  ;;  %1273 = vmatpush.bf16.msra.mxu1 %v3649_v15  ;;  %1297 = vmatpush.bf16.msra.mxu2 %v3753_v32  ;;  %v4838_v32 = vld [vmem:[%s7359_s6 + $0x144] sm:$0xf] }
 0x20a   :  { %v701_v57 = vadd.f32 %v5615_v38, %v700_v51 }
 0x20d   :  { %1274 = vmatpush.bf16.msra.mxu1 %v3641_v21 }
 0x20e   :  { %v815_v37 = vpop.f32.mrf.mxu3 }
 0x20f   :  { %v816_v41 = vadd.f32 %v815_v37, %v757_v35 }
 0x211   :  { %v849_v43 = vmax.f32 %v816_v41, 0.0  ;;  %v702_v12 = vpop.f32.mrf.mxu1  ;;  %1275 = vmatpush.bf16.msra.mxu1 %v3633_v24  ;;  %v3742_v41 = vld [vmem:[%s7359_s6 + $0xe8] sm:$0xf0] }
 0x212   :  { %v703_v33 = vadd.f32 %v5615_v38, %v702_v12 }
 0x213   :  { %v863_v47 = vadd.f32 %v849_v43, %v848_v42  ;;  %1247 = vmatmul.bf16.vlgmr.msrb.gmra.mxu3 %v5699_v17 }
 0x214   :  { %1223 = vmatmul.bf16.gmra.mxu2 %v5707_v46 }
 0x215   :  { %v873_v49 = vmul.f32 0.5, %v863_v47 }
 0x216   :  { %v759_v52 = vpop.f32.mrf.mxu2 }
 0x217   :  { %v5711_v50 = vpack.c.bf16 %v873_v49, %v872_v39  ;;  %v760_v0 = vadd.f32 %v759_v52, %v701_v57  ;;  %v4826_v39 = vld [vmem:[%s7359_s6 + $0xe4] sm:$0xf]  ;;  %v4824_v52 = vld [vmem:[%s7359_s6 + $0xd4] sm:$0xf] }
 0x218   :  { %v3745_v47 = vor.u32 %v4826_v39, %v3742_v41 }
 0x219   :  { %1199 = vmatmul.bf16.gmra.mxu1 %v5711_v50 }
 0x21a   :  { %1298 = vmatpush.bf16.msra.mxu2 %v3745_v47  ;;  %v3782_v47 = vld [vmem:[%s7359_s6 + $0x138] sm:$0xf0] }
 0x21e   :  { %v761_v63 = vpop.f32.mrf.mxu2 }
 0x21f   :  { %v762_v2 = vadd.f32 %v761_v63, %v703_v33  ;;  %v3726_v63 = vld [vmem:[%s7359_s6 + $0xc8] sm:$0xf0] }
 0x220   :  { %v705_v16 = vpop.f32.mrf.mxu1 }
 0x221   :  { %v706_v31 = vadd.f32 %v5615_v38, %v705_v16 }
 0x223   :  { %1252 = vmatmul.bf16.gmra.mxu3 %v5711_v50 }
 0x226   :  { %v818_v55 = vpop.f32.mrf.mxu3 }
 0x227   :  { %v819_v4 = vadd.f32 %v818_v55, %v760_v0  ;;  %v3734_v55 = vld [vmem:[%s7359_s6 + $0xd8] sm:$0xf0]  ;;  %v3729_v0 = vor.u32 %v4822_v58, %v3726_v63  ;;  %v3774_v58 = vld [vmem:[%s7359_s6 + $0x128] sm:$0xf0]  ;;  %v3916_v63 = vld [vmem:[%s7360_s8 + $0xc0] sm:$0xf] }
 0x228   :  { %v707_v27 = vpop.f32.mrf.mxu1  ;;  %v3737_v56 = vor.u32 %v4824_v52, %v3734_v55  ;;  %v4876_v52 = vld [vmem:[%s7360_s8 + $0xec] sm:$0xf0]  ;;  %v4874_v55 = vld [vmem:[%s7360_s8 + $0xe4] sm:$0xf] }
 0x229   :  { %v850_v9 = vmax.f32 %v819_v4, 0.0  ;;  %v708_v36 = vadd.f32 %v5615_v38, %v707_v27 }
 0x22a   :  { %1299 = vmatpush.bf16.msra.mxu2 %v3737_v56 }
 0x22e   :  { %v820_v7 = vpop.f32.mrf.mxu3  ;;  %1300 = vmatpush.bf16.msra.mxu2 %v3729_v0  ;;  %v4872_v0 = vld [vmem:[%s7360_s8 + $0xcc] sm:$0xf0] }
 0x22f   :  { %v821_v62 = vadd.f32 %v820_v7, %v762_v2  ;;  %v3718_v2 = vld [vmem:[%s7359_s6 + $0xb8] sm:$0xf0]  ;;  %v3710_v7 = vld [vmem:[%s7359_s6 + $0xa8] sm:$0xf0] }
 0x230   :  { %v3721_v4 = vor.u32 %v4820_v19, %v3718_v2  ;;  %v4870_v19 = vld [vmem:[%s7360_s8 + $0xc4] sm:$0xf]  ;;  %v3918_v2 = vld [vmem:[%s7360_s8 + $0xd0] sm:$0xf0] }
 0x231   :  { %v851_v48 = vmax.f32 %v821_v62, 0.0  ;;  %v3713_v62 = vor.u32 %v4818_v45, %v3710_v7  ;;  %v3921_v45 = vor.u32 %v4870_v19, %v3918_v2  ;;  %v4848_v19 = vld [vmem:[%s7360_s8 + $0xc] sm:$0xf0]  ;;  %v4846_v2 = vld [vmem:[%s7360_s8 + $0x4] sm:$0xf] }
 0x232   :  { %1301 = vmatpush.bf16.msra.mxu2 %v3721_v4  ;;  %v3917_v4 = vor.u32 %v4872_v0, %v3916_v63  ;;  %v3820_v0 = vld [vmem:[%s7360_s8] sm:$0xf] }
 0x233   :  { %v864_v53 = vadd.f32 %v851_v48, %v850_v9  ;;  %v4816_v9 = vld [vmem:[%s7359_s6 + $0x94] sm:$0xf]  ;;  %v3702_v48 = vld [vmem:[%s7359_s6 + $0x98] sm:$0xf0] }
 0x234   :  { %v3705_v34 = vor.u32 %v4816_v9, %v3702_v48  ;;  %v4868_v48 = vld [vmem:[%s7360_s8 + $0xac] sm:$0xf0] }
 0x235   :  { %v874_v13 = vmul.f32 0.5, %v864_v53  ;;  %v4814_v53 = vld [vmem:[%s7359_s6 + $0x84] sm:$0xf] }
 0x236   :  { %v764_v22 = vpop.f32.mrf.mxu2  ;;  %1302 = vmatpush.bf16.msra.mxu2 %v3713_v62  ;;  %v3697_v1 = vor.u32 %v4814_v53, %v3694_v10  ;;  %v4832_v62 = vld [vmem:[%s7359_s6 + $0x114] sm:$0xf] }
 0x237   :  { %v5741_v54 = vpack.c.bf16 %v874_v13, %v873_v49  ;;  %v765_v37 = vadd.f32 %v764_v22, %v706_v31  ;;  %v4842_v22 = vld [vmem:[%s7359_s6 + $0x164] sm:$0xf]  ;;  %v3902_v53 = vld [vmem:[%s7360_s8 + $0xb0] sm:$0xf0] }
 0x238   :  { %v3809_v60 = vor.u32 %v4842_v22, %v3806_v18  ;;  %v3885_v22 = vor.u32 %v4864_v11, %v3884_v3 }
 0x239   :  { %1228 = vmatmul.bf16.gmra.mxu2 %v5741_v54 }
 0x23a   :  { %1303 = vmatpush.bf16.msra.mxu2 %v3705_v34  ;;  %1327 = vmatpush.bf16.msra.mxu3 %v3809_v60  ;;  %v4866_v34 = vld [vmem:[%s7360_s8 + $0xa4] sm:$0xf] }
 0x23b   :  { %v4858_v60 = vld [vmem:[%s7360_s8 + $0x64] sm:$0xf] }
 0x23e   :  { %v766_v35 = vpop.f32.mrf.mxu2  ;;  %1304 = vmatpush.bf16.msra.mxu2 %v3697_v1 }
 0x23f   :  { %v767_v42 = vadd.f32 %v766_v35, %v708_v36  ;;  %v3790_v35 = vld [vmem:[%s7359_s6 + $0x148] sm:$0xf0] }
 0x240   :  { %v710_v30 = vpop.f32.mrf.mxu1 }
 0x241   :  { %v711_v8 = vadd.f32 %v5615_v38, %v710_v30  ;;  %v3766_v30 = vld [vmem:[%s7359_s6 + $0x118] sm:$0xf0] }
 0x242   :  { %v3769_v9 = vor.u32 %v4832_v62, %v3766_v30 }
 0x246   :  { %v823_v26 = vpop.f32.mrf.mxu3 }
 0x247   :  { %v824_v43 = vadd.f32 %v823_v26, %v765_v37  ;;  %v3798_v26 = vld [vmem:[%s7359_s6 + $0x158] sm:$0xf0]  ;;  %v3793_v37 = vor.u32 %v4838_v32, %v3790_v35  ;;  %v3852_v32 = vld [vmem:[%s7360_s8 + $0x40] sm:$0xf]  ;;  %v4854_v35 = vld [vmem:[%s7360_s8 + $0x44] sm:$0xf] }
 0x248   :  { %v712_v44 = vpop.f32.mrf.mxu1 }
 0x249   :  { %v852_v12 = vmax.f32 %v824_v43, 0.0  ;;  %v713_v15 = vadd.f32 %v5615_v38, %v712_v44  ;;  %v4836_v43 = vld [vmem:[%s7359_s6 + $0x134] sm:$0xf]  ;;  %v4830_v44 = vld [vmem:[%s7359_s6 + $0x104] sm:$0xf] }
 0x24e   :  { %v825_v49 = vpop.f32.mrf.mxu3 }
 0x24f   :  { %v826_v51 = vadd.f32 %v825_v49, %v767_v42  ;;  %v3932_v49 = vld [vmem:[%s7360_s8 + $0xe0] sm:$0xf] }
 0x251   :  { %v853_v25 = vmax.f32 %v826_v51, 0.0  ;;  %v3785_v51 = vor.u32 %v4836_v43, %v3782_v47 }
 0x253   :  { %v865_v57 = vadd.f32 %v853_v25, %v852_v12  ;;  %v3934_v12 = vld [vmem:[%s7360_s8 + $0xf0] sm:$0xf0]  ;;  %v3933_v25 = vor.u32 %v4876_v52, %v3932_v49  ;;  %v4852_v52 = vld [vmem:[%s7360_s8 + $0x2c] sm:$0xf0] }
 0x254   :  { %v3937_v56 = vor.u32 %v4874_v55, %v3934_v12  ;;  %v4850_v55 = vld [vmem:[%s7360_s8 + $0x24] sm:$0xf] }
 0x255   :  { %v875_v33 = vmul.f32 0.5, %v865_v57  ;;  %2555 = vmatpush.bf16.msrb.mxu1 %v3933_v25  ;;  %v4834_v57 = vld [vmem:[%s7359_s6 + $0x124] sm:$0xf] }
 0x256   :  { %v769_v5 = vpop.f32.mrf.mxu2  ;;  %2639 = vmatpush.bf16.msrb.mxu0 %v3937_v56 }
 0x257   :  { %v5794_v40 = vpack.c.bf16 %v875_v33, %v874_v13  ;;  %v770_v16 = vadd.f32 %v769_v5, %v711_v8  ;;  %v3900_v5 = vld [vmem:[%s7360_s8 + $0xa0] sm:$0xf]  ;;  %v3761_v8 = vor.u32 %v4830_v44, %v3758_v6 }
 0x258   :  { %v3901_v1 = vor.u32 %v4868_v48, %v3900_v5 }
 0x259   :  { %1204 = vmatmul.bf16.gmra.mxu1 %v5794_v40  ;;  %1257 = vmatmul.bf16.gmra.mxu3 %v5794_v40 }
 0x25a   :  { %2556 = vmatpush.bf16.msrb.mxu1 %v3917_v4  ;;  %2640 = vmatpush.bf16.msrb.mxu0 %v3921_v45  ;;  %v3821_v45 = vor.u32 %v4848_v19, %v3820_v0  ;;  %v5002_v19 = vld [vmem:[%s7360_s8 + $0x4e4] sm:$0xf] }
 0x25e   :  { %v771_v14 = vpop.f32.mrf.mxu2  ;;  %2557 = vmatpush.bf16.msrb.mxu1 %v3901_v1 }
 0x25f   :  { %v772_v61 = vadd.f32 %v771_v14, %v713_v15  ;;  %v4862_v14 = vld [vmem:[%s7360_s8 + $0x84] sm:$0xf]  ;;  %v3886_v15 = vld [vmem:[%s7360_s8 + $0x90] sm:$0xf0] }
 0x260   :  { %v715_v39 = vpop.f32.mrf.mxu1  ;;  %v3889_v18 = vor.u32 %v4862_v14, %v3886_v15  ;;  %v4188_v14 = vld [vmem:[%s7360_s8 + $0x2e0] sm:$0xf]  ;;  %v4940_v15 = vld [vmem:[%s7360_s8 + $0x2ec] sm:$0xf0] }
 0x262   :  { %2558 = vmatpush.bf16.msrb.mxu1 %v3885_v22  ;;  %v4189_v22 = vor.u32 %v4940_v15, %v4188_v14  ;;  %v4986_v15 = vld [vmem:[%s7360_s8 + $0x464] sm:$0xf] }
 0x266   :  { %v828_v13 = vpop.f32.mrf.mxu3 }
 0x267   :  { %v829_v21 = vadd.f32 %v828_v13, %v770_v16  ;;  %v3905_v13 = vor.u32 %v4866_v34, %v3902_v53  ;;  %v5992_v53 = vld [vmem:[%s7361_s7] sm:$0x3] }
 0x268   :  { %v717_v7 = vpop.f32.mrf.mxu1  ;;  %v5995_v1 = vperm.slane %v5992_v53, 0 }
 0x269   :  { %1276 = vmatmul.bf16.vlgmr.msra.gmra.mxu1 %v5689_v59  ;;  %v4840_v59 = vld [vmem:[%s7359_s6 + $0x154] sm:$0xf]  ;;  %v854_v27 = vmax.f32 %v829_v21, 0.0  ;;  %2641 = vmatpush.bf16.msrb.mxu0 %v3905_v13  ;;  %v4860_v21 = vld [vmem:[%s7360_s8 + $0x6c] sm:$0xf0] }
 0x26a   :  { %v3801_v29 = vor.u32 %v4840_v59, %v3798_v26  ;;  %v3870_v59 = vld [vmem:[%s7360_s8 + $0x70] sm:$0xf0] }
 0x26c   :  { %1328 = vmatpush.bf16.msra.mxu3 %v3801_v29 }
 0x26d   :  { %2642 = vmatpush.bf16.msrb.mxu0 %v3889_v18  ;;  %v4172_v18 = vld [vmem:[%s7360_s8 + $0x2c0] sm:$0xf] }
 0x26e   :  { %v830_v23 = vpop.f32.mrf.mxu3 }
 0x26f   :  { %v831_v24 = vadd.f32 %v830_v23, %v772_v61  ;;  %v3868_v61 = vld [vmem:[%s7360_s8 + $0x60] sm:$0xf]  ;;  %v716_v23 = vadd.f32 %v5615_v38, %v715_v39 }
 0x270   :  { %1329 = vmatpush.bf16.msra.mxu3 %v3793_v37  ;;  %v1190_v26 = vpop.f32.mrf.mxu1 }
 0x271   :  { %v855_v28 = vmax.f32 %v831_v24, 0.0  ;;  %v3869_v24 = vor.u32 %v4860_v21, %v3868_v61  ;;  %v1191_v44 = vadd.f32 %v1190_v26, %v5995_v1 }
 0x273   :  { %v866_v31 = vadd.f32 %v855_v28, %v854_v27  ;;  %v3873_v27 = vor.u32 %v4858_v60, %v3870_v59  ;;  %v718_v28 = vadd.f32 %v5615_v38, %v717_v7  ;;  %2559 = vmatpush.bf16.msrb.mxu1 %v3869_v24  ;;  %v3822_v7 = vld [vmem:[%s7360_s8 + $0x10] sm:$0xf0] }
 0x274   :  { %1330 = vmatpush.bf16.msra.mxu3 %v3785_v51  ;;  %v3836_v51 = vld [vmem:[%s7360_s8 + $0x20] sm:$0xf]  ;;  %v3825_v5 = vor.u32 %v4846_v2, %v3822_v7  ;;  %v4446_v2 = vld [vmem:[%s7360_s8 + $0x4f0] sm:$0xf0]  ;;  %v4998_v7 = vld [vmem:[%s7360_s8 + $0x4c4] sm:$0xf] }
 0x275   :  { %v5849_v36 = vmul.f32 0.5, %v866_v31  ;;  %2643 = vmatpush.bf16.msrb.mxu0 %v3873_v27  ;;  %v3837_v56 = vor.u32 %v4852_v52, %v3836_v51 }
 0x276   :  { %v5854_v42 = vpop.f32.mrf.mxu2 }
 0x277   :  { %v5852_v41 = vpack.c.bf16 %v5849_v36, %v875_v33  ;;  %v3777_v33 = vor.u32 %v4834_v57, %v3774_v58  ;;  %v775_v29 = vadd.f32 %v5854_v42, %v716_v23  ;;  %v3854_v42 = vld [vmem:[%s7360_s8 + $0x50] sm:$0xf0] }
 0x278   :  { %v3857_v47 = vor.u32 %v4854_v35, %v3854_v42  ;;  %v3838_v57 = vld [vmem:[%s7360_s8 + $0x30] sm:$0xf0] }
 0x279   :  { %1233 = vmatmul.bf16.gmra.mxu2 %v5852_v41  ;;  %1281 = vmatmul.bf16.gmra.mxu1 %v5699_v17  ;;  %v3841_v58 = vor.u32 %v4850_v55, %v3838_v57  ;;  %v4108_v55 = vld [vmem:[%s7360_s8 + $0x240] sm:$0xf]  ;;  %v4916_v57 = vld [vmem:[%s7360_s8 + $0x22c] sm:$0xf0] }
 0x27a   :  { %1331 = vmatpush.bf16.msra.mxu3 %v3777_v33  ;;  %2644 = vmatpush.bf16.msrb.mxu0 %v3857_v47  ;;  %v1192_v33 = vpop.f32.mrf.mxu1  ;;  %v4140_v47 = vld [vmem:[%s7360_s8 + $0x280] sm:$0xf] }
 0x27e   :  { %v776_v10 = vpop.f32.mrf.mxu2  ;;  %1332 = vmatpush.bf16.msra.mxu3 %v3769_v9  ;;  %2645 = vmatpush.bf16.msrb.mxu0 %v3841_v58 }
 0x27f   :  { %v777_v37 = vadd.f32 %v776_v10, %v718_v28 }
 0x282   :  { %1333 = vmatpush.bf16.msra.mxu3 %v3761_v8  ;;  %2646 = vmatpush.bf16.msrb.mxu0 %v3825_v5  ;;  %v1195_v48 = vpop.f32.mrf.mxu1  ;;  %v4994_v5 = vld [vmem:[%s7360_s8 + $0x4a4] sm:$0xf] }
 0x286   :  { %v833_v16 = vpop.f32.mrf.mxu3  ;;  %2583 = vmatpush.bf16.msrb.mxu3 %v4189_v22 }
 0x287   :  { %v1219_v31 = vpop.f32.mrf.mxu2  ;;  %v834_v39 = vadd.f32 %v833_v16, %v775_v29 }
 0x288   :  { %v1220_v8 = vadd.f32 %v1219_v31, %v1191_v44  ;;  %v4990_v44 = vld [vmem:[%s7360_s8 + $0x484] sm:$0xf] }
 0x289   :  { %1286 = vmatmul.bf16.gmra.mxu1 %v5711_v50  ;;  %1305 = vmatmul.bf16.vlgmr.msra.gmra.mxu2 %v5701_v20  ;;  %v4856_v20 = vld [vmem:[%s7360_s8 + $0x4c] sm:$0xf0]  ;;  %v856_v12 = vmax.f32 %v834_v39, 0.0  ;;  %v4156_v39 = vld [vmem:[%s7360_s8 + $0x2a0] sm:$0xf] }
 0x28a   :  { %v3853_v38 = vor.u32 %v4856_v20, %v3852_v32  ;;  %v1197_v3 = vpop.f32.mrf.mxu1 }
 0x28b   :  { %v1198_v61 = vadd.f32 %v1197_v3, %v5995_v1 }
 0x28c   :  { %2560 = vmatpush.bf16.msrb.mxu1 %v3853_v38  ;;  %v4932_v38 = vld [vmem:[%s7360_s8 + $0x2ac] sm:$0xf0] }
 0x28e   :  { %v835_v43 = vpop.f32.mrf.mxu3 }
 0x28f   :  { %v836_v49 = vadd.f32 %v835_v43, %v777_v37  ;;  %v1221_v62 = vpop.f32.mrf.mxu2  ;;  %v4157_v43 = vor.u32 %v4932_v38, %v4156_v39  ;;  %v4060_v38 = vld [vmem:[%s7360_s8 + $0x1e0] sm:$0xf] }
 0x290   :  { %2561 = vmatpush.bf16.msrb.mxu1 %v3837_v56  ;;  %v4092_v56 = vld [vmem:[%s7360_s8 + $0x220] sm:$0xf] }
 0x291   :  { %v857_v25 = vmax.f32 %v836_v49, 0.0  ;;  %v4928_v49 = vld [vmem:[%s7360_s8 + $0x28c] sm:$0xf0]  ;;  %v4093_v58 = vor.u32 %v4916_v57, %v4092_v56  ;;  %v4028_v57 = vld [vmem:[%s7360_s8 + $0x1a0] sm:$0xf] }
 0x292   :  { %v4141_v51 = vor.u32 %v4928_v49, %v4140_v47  ;;  %v4180_v49 = vld [vmem:[%s7360_s8 + $0x2c8] sm:$0xf] }
 0x293   :  { %v867_v63 = vadd.f32 %v857_v25, %v856_v12  ;;  %v4920_v12 = vld [vmem:[%s7360_s8 + $0x24c] sm:$0xf0] }
 0x294   :  { %2562 = vmatpush.bf16.msrb.mxu1 %v3821_v45  ;;  %v4109_v25 = vor.u32 %v4920_v12, %v4108_v55  ;;  %v4164_v55 = vld [vmem:[%s7360_s8 + $0x2a8] sm:$0xf] }
 0x295   :  { %v877_v4 = vmul.f32 0.5, %v867_v63  ;;  %v4076_v63 = vld [vmem:[%s7360_s8 + $0x200] sm:$0xf] }
 0x296   :  { %v1248_v30 = vpop.f32.mrf.mxu3 }
 0x297   :  { %v5984_v9 = vpack.c.bf16 %v877_v4, %v5849_v36  ;;  %v1224_v10 = vpop.f32.mrf.mxu2  ;;  %v1193_v36 = vadd.f32 %v1192_v33, %v5995_v1  ;;  %v1249_v60 = vadd.f32 %v1248_v30, %v1220_v8  ;;  %v4912_v33 = vld [vmem:[%s7360_s8 + $0x20c] sm:$0xf0]  ;;  %v1200_v4 = vpop.f32.mrf.mxu1 }
 0x298   :  { %v4077_v0 = vor.u32 %v4912_v33, %v4076_v63  ;;  %v4148_v33 = vld [vmem:[%s7360_s8 + $0x288] sm:$0xf] }
 0x299   :  { %1262 = vmatmul.bf16.gmra.mxu3 %v5984_v9  ;;  %1291 = vmatmul.bf16.gmra.mxu1 %v5794_v40  ;;  %v1222_v6 = vadd.f32 %v1221_v62, %v1193_v36  ;;  %v4430_v62 = vld [vmem:[%s7360_s8 + $0x4d0] sm:$0xf0] }
 0x29a   :  { %1310 = vmatmul.bf16.gmra.mxu2 %v5707_v46  ;;  %v1196_v46 = vadd.f32 %v1195_v48, %v5995_v1  ;;  %v4433_v30 = vor.u32 %v4998_v7, %v4430_v62  ;;  %v4414_v48 = vld [vmem:[%s7360_s8 + $0x4b0] sm:$0xf0]  ;;  %v4925_v7 = vld [vmem:[%s7360_s8 + $0x274] sm:$0xf0] }
 0x29c   :  { %v1225_v21 = vadd.f32 %v1224_v10, %v1196_v46  ;;  %v4417_v10 = vor.u32 %v4994_v5, %v4414_v48  ;;  %v4892_v5 = vld [vmem:[%s7360_s8 + $0x16c] sm:$0xf0]  ;;  %v4316_v48 = vld [vmem:[%s7360_s8 + $0x3e0] sm:$0xf] }
 0x29e   :  { %v1250_v34 = vpop.f32.mrf.mxu3 }
 0x29f   :  { %v1251_v11 = vadd.f32 %v1250_v34, %v1222_v6  ;;  %v1226_v16 = vpop.f32.mrf.mxu2  ;;  %v1202_v36 = vpop.f32.mrf.mxu1 }
 0x2a0   :  { %v1227_v24 = vadd.f32 %v1226_v16, %v1198_v61  ;;  %v1203_v46 = vadd.f32 %v1202_v36, %v5995_v1  ;;  %v4382_v16 = vld [vmem:[%s7360_s8 + $0x470] sm:$0xf0]  ;;  %v4972_v36 = vld [vmem:[%s7360_s8 + $0x3ec] sm:$0xf0] }
 0x2a1   :  { %v1357_v59 = vmax.f32 %v1251_v11, 0.0 }
 0x2a6   :  { %v1253_v13 = vpop.f32.mrf.mxu3 }
 0x2a7   :  { %v1254_v26 = vadd.f32 %v1253_v13, %v1225_v21  ;;  %v1201_v13 = vadd.f32 %v1200_v4, %v5995_v1  ;;  %v4132_v4 = vld [vmem:[%s7360_s8 + $0x268] sm:$0xf] }
 0x2a8   :  { %v4133_v62 = vor.u32 %v4925_v7, %v4132_v4  ;;  %v4412_v4 = vld [vmem:[%s7360_s8 + $0x4a0] sm:$0xf] }
 0x2a9   :  { %1334 = vmatmul.bf16.vlgmr.msra.gmra.mxu3 %v5699_v17  ;;  %v4936_v17 = vld [vmem:[%s7360_s8 + $0x2cc] sm:$0xf0]  ;;  %v1359_v31 = vmax.f32 %v1254_v26, 0.0 }
 0x2aa   :  { %1315 = vmatmul.bf16.gmra.mxu2 %v5741_v54  ;;  %v4173_v23 = vor.u32 %v4936_v17, %v4172_v18  ;;  %v1355_v54 = vmax.f32 %v1249_v60, 0.0  ;;  %v4385_v18 = vor.u32 %v4986_v15, %v4382_v16  ;;  %v4982_v60 = vld [vmem:[%s7360_s8 + $0x444] sm:$0xf]  ;;  %v4968_v15 = vld [vmem:[%s7360_s8 + $0x3cc] sm:$0xf0] }
 0x2ab   :  { %v4100_v16 = vld [vmem:[%s7360_s8 + $0x228] sm:$0xf] }
 0x2ac   :  { %2584 = vmatpush.bf16.msrb.mxu3 %v4173_v23  ;;  %v1371_v29 = vadd.f32 %v1357_v59, %v1355_v54  ;;  %v4366_v23 = vld [vmem:[%s7360_s8 + $0x450] sm:$0xf0] }
 0x2ad   :  { %v4350_v54 = vld [vmem:[%s7360_s8 + $0x430] sm:$0xf0] }
 0x2ae   :  { %v1255_v27 = vpop.f32.mrf.mxu3  ;;  %v1379_v35 = vmul.f32 0.5, %v1371_v29 }
 0x2af   :  { %v1256_v28 = vadd.f32 %v1255_v27, %v1227_v24  ;;  %v4369_v24 = vor.u32 %v4982_v60, %v4366_v23  ;;  %v4978_v27 = vld [vmem:[%s7360_s8 + $0x424] sm:$0xf]  ;;  %v4284_v60 = vld [vmem:[%s7360_s8 + $0x3a0] sm:$0xf] }
 0x2b0   :  { %2585 = vmatpush.bf16.msrb.mxu3 %v4157_v43  ;;  %v4908_v43 = vld [vmem:[%s7360_s8 + $0x1ec] sm:$0xf0] }
 0x2b1   :  { %v1361_v32 = vmax.f32 %v1256_v28, 0.0  ;;  %v4353_v28 = vor.u32 %v4978_v27, %v4350_v54  ;;  %v4061_v47 = vor.u32 %v4908_v43, %v4060_v38  ;;  %v4913_v27 = vld [vmem:[%s7360_s8 + $0x214] sm:$0xf0]  ;;  %v4960_v38 = vld [vmem:[%s7360_s8 + $0x38c] sm:$0xf0] }
 0x2b2   :  { %v4444_v43 = vld [vmem:[%s7360_s8 + $0x4e0] sm:$0xf] }
 0x2b3   :  { %v1373_v20 = vadd.f32 %v1361_v32, %v1359_v31  ;;  %v4974_v31 = vld [vmem:[%s7360_s8 + $0x404] sm:$0xf]  ;;  %v4334_v32 = vld [vmem:[%s7360_s8 + $0x410] sm:$0xf0]  ;;  %2569 = vmatpush.bf16.msrb.mxu2 %v4061_v47  ;;  %v5004_v47 = vld [vmem:[%s7360_s8 + $0x4ec] sm:$0xf0] }
 0x2b4   :  { %2586 = vmatpush.bf16.msrb.mxu3 %v4141_v51  ;;  %v4937_v51 = vld [vmem:[%s7360_s8 + $0x2d4] sm:$0xf0] }
 0x2b5   :  { %v6015_v37 = vmul.f32 0.5, %v1373_v20  ;;  %v4196_v20 = vld [vmem:[%s7360_s8 + $0x2e8] sm:$0xf] }
 0x2b7   :  { %v6024_v42 = vpack.c.bf16 %v6015_v37, %v1379_v35  ;;  %v4337_v35 = vor.u32 %v4974_v31, %v4334_v32  ;;  %v3948_v32 = vld [vmem:[%s7360_s8 + $0x100] sm:$0xf] }
 0x2b9   :  { %1339 = vmatmul.bf16.gmra.mxu3 %v5711_v50  ;;  %2563 = vmatmul.bf16.vlgmr.msrb.gmra.mxu1 %v6024_v42  ;;  %v4124_v50 = vld [vmem:[%s7360_s8 + $0x260] sm:$0xf] }
 0x2ba   :  { %1320 = vmatmul.bf16.gmra.mxu2 %v5852_v41  ;;  %2647 = vmatmul.bf16.vlgmr.msrb.gmra.mxu0 %v6024_v42  ;;  %v4924_v41 = vld [vmem:[%s7360_s8 + $0x26c] sm:$0xf0] }
 0x2bb   :  { %v4125_v52 = vor.u32 %v4924_v41, %v4124_v50  ;;  %v4181_v50 = vor.u32 %v4937_v51, %v4180_v49  ;;  %v4044_v41 = vld [vmem:[%s7360_s8 + $0x1c0] sm:$0xf]  ;;  %v4445_v51 = vor.u32 %v5004_v47, %v4444_v43 }
 0x2bc   :  { %v1229_v45 = vpop.f32.mrf.mxu2 }
 0x2bd   :  { %2587 = vmatpush.bf16.msrb.mxu3 %v4125_v52  ;;  %v1230_v8 = vadd.f32 %v1229_v45, %v1201_v13  ;;  %v4904_v52 = vld [vmem:[%s7360_s8 + $0x1cc] sm:$0xf0]  ;;  %v4116_v13 = vld [vmem:[%s7360_s8 + $0x248] sm:$0xf] }
 0x2be   :  { %v4045_v12 = vor.u32 %v4904_v52, %v4044_v41  ;;  %v4956_v41 = vld [vmem:[%s7360_s8 + $0x36c] sm:$0xf0]  ;;  %v4572_v52 = vld [vmem:[%s7360_s8 + $0x5e0] sm:$0xf] }
 0x2c0   :  { %2570 = vmatpush.bf16.msrb.mxu2 %v4045_v12  ;;  %v5036_v12 = vld [vmem:[%s7360_s8 + $0x5ec] sm:$0xf0] }
 0x2c1   :  { %2588 = vmatpush.bf16.msrb.mxu3 %v4109_v25  ;;  %v4933_v25 = vld [vmem:[%s7360_s8 + $0x2b4] sm:$0xf0] }
 0x2c2   :  { %v4165_v56 = vor.u32 %v4933_v25, %v4164_v55  ;;  %v4428_v25 = vld [vmem:[%s7360_s8 + $0x4c0] sm:$0xf] }
 0x2c4   :  { %v1231_v6 = vpop.f32.mrf.mxu2 }
 0x2c5   :  { %2589 = vmatpush.bf16.msrb.mxu3 %v4093_v58  ;;  %v1232_v11 = vadd.f32 %v1231_v6, %v1203_v46  ;;  %v4900_v58 = vld [vmem:[%s7360_s8 + $0x1ac] sm:$0xf0]  ;;  %v3980_v46 = vld [vmem:[%s7360_s8 + $0x140] sm:$0xf] }
 0x2c6   :  { %v4029_v63 = vor.u32 %v4900_v58, %v4028_v57  ;;  %v4573_v57 = vor.u32 %v5036_v12, %v4572_v52  ;;  %v4492_v52 = vld [vmem:[%s7360_s8 + $0x540] sm:$0xf] }
 0x2c8   :  { %2571 = vmatpush.bf16.msrb.mxu2 %v4029_v63  ;;  %v4236_v63 = vld [vmem:[%s7360_s8 + $0x340] sm:$0xf] }
 0x2c9   :  { %1344 = vmatmul.bf16.gmra.mxu3 %v5794_v40  ;;  %v4449_v40 = vor.u32 %v5002_v19, %v4446_v2  ;;  %v4012_v2 = vld [vmem:[%s7360_s8 + $0x180] sm:$0xf] }
 0x2ca   :  { %2590 = vmatpush.bf16.msrb.mxu3 %v4077_v0  ;;  %v4929_v0 = vld [vmem:[%s7360_s8 + $0x294] sm:$0xf0] }
 0x2cb   :  { %2695 = vmatpush.bf16.msra.mxu0 %v4449_v40  ;;  %v4149_v19 = vor.u32 %v4929_v0, %v4148_v33  ;;  %v4896_v40 = vld [vmem:[%s7360_s8 + $0x18c] sm:$0xf0]  ;;  %v4556_v0 = vld [vmem:[%s7360_s8 + $0x5c0] sm:$0xf] }
 0x2cc   :  { %v4013_v45 = vor.u32 %v4896_v40, %v4012_v2  ;;  %v4952_v33 = vld [vmem:[%s7360_s8 + $0x34c] sm:$0xf0] }
 0x2cd   :  { %v4237_v2 = vor.u32 %v4952_v33, %v4236_v63  ;;  %v5032_v40 = vld [vmem:[%s7360_s8 + $0x5cc] sm:$0xf0]  ;;  %v4875_v63 = vld [vmem:[%s7360_s8 + $0xec] sm:$0xf]  ;;  %v3942_v33 = vld [vmem:[%s7360_s8 + $0xf8] sm:$0xf0] }
 0x2ce   :  { %2572 = vmatpush.bf16.msrb.mxu2 %v4013_v45  ;;  %2625 = vmatpush.bf16.msra.mxu3 %v4573_v57  ;;  %v4996_v45 = vld [vmem:[%s7360_s8 + $0x4ac] sm:$0xf0]  ;;  %v4557_v7 = vor.u32 %v5032_v40, %v4556_v0  ;;  %v4898_v57 = vld [vmem:[%s7360_s8 + $0x1a4] sm:$0xf] }
 0x2cf   :  { %2696 = vmatpush.bf16.msra.mxu0 %v4433_v30  ;;  %v3996_v30 = vld [vmem:[%s7360_s8 + $0x160] sm:$0xf] }
 0x2d2   :  { %2626 = vmatpush.bf16.msra.mxu3 %v4557_v7  ;;  %v5012_v7 = vld [vmem:[%s7360_s8 + $0x52c] sm:$0xf0] }
 0x2d3   :  { %2697 = vmatpush.bf16.msra.mxu0 %v4417_v10  ;;  %v3997_v10 = vor.u32 %v4892_v5, %v3996_v30  ;;  %v4220_v5 = vld [vmem:[%s7360_s8 + $0x320] sm:$0xf] }
 0x2d5   :  { %2573 = vmatpush.bf16.msrb.mxu2 %v3997_v10  ;;  %v4540_v10 = vld [vmem:[%s7360_s8 + $0x5a0] sm:$0xf] }
 0x2d9   :  { %1349 = vmatmul.bf16.gmra.mxu3 %v5984_v9  ;;  %v4398_v9 = vld [vmem:[%s7360_s8 + $0x490] sm:$0xf0] }
 0x2da   :  { %v4401_v3 = vor.u32 %v4990_v44, %v4398_v9  ;;  %v4921_v44 = vld [vmem:[%s7360_s8 + $0x254] sm:$0xf0]  ;;  %v4317_v9 = vor.u32 %v4972_v36, %v4316_v48  ;;  %v4948_v48 = vld [vmem:[%s7360_s8 + $0x32c] sm:$0xf0] }
 0x2db   :  { %v4117_v6 = vor.u32 %v4921_v44, %v4116_v13  ;;  %v4221_v13 = vor.u32 %v4948_v48, %v4220_v5  ;;  %v5028_v44 = vld [vmem:[%s7360_s8 + $0x5ac] sm:$0xf0]  ;;  %v3945_v48 = vor.u32 %v4875_v63, %v3942_v33  ;;  %v4878_v33 = vld [vmem:[%s7360_s8 + $0x104] sm:$0xf] }
 0x2dc   :  { %v1258_v34 = vpop.f32.mrf.mxu3  ;;  %2698 = vmatpush.bf16.msra.mxu0 %v4401_v3  ;;  %2597 = vmatpush.bf16.msra.mxu1 %v4317_v9  ;;  %v4396_v9 = vld [vmem:[%s7360_s8 + $0x480] sm:$0xf] }
 0x2dd   :  { %v1259_v14 = vadd.f32 %v1258_v34, %v1230_v8  ;;  %v6182_v34 = vpop.f32.mrf.mxu1  ;;  %v4888_v8 = vld [vmem:[%s7360_s8 + $0x14c] sm:$0xf0] }
 0x2df   :  { %v1363_v61 = vmax.f32 %v1259_v14, 0.0  ;;  %v3981_v14 = vor.u32 %v4888_v8, %v3980_v46  ;;  %v4541_v46 = vor.u32 %v5028_v44, %v4540_v10  ;;  %v4894_v44 = vld [vmem:[%s7360_s8 + $0x184] sm:$0xf] }
 0x2e0   :  { %2699 = vmatpush.bf16.msra.mxu0 %v4385_v18 }
 0x2e1   :  { %2574 = vmatpush.bf16.msrb.mxu2 %v3981_v14  ;;  %2627 = vmatpush.bf16.msra.mxu3 %v4541_v46  ;;  %v4204_v14 = vld [vmem:[%s7360_s8 + $0x300] sm:$0xf]  ;;  %v3926_v46 = vld [vmem:[%s7360_s8 + $0xd8] sm:$0xf0] }
 0x2e4   :  { %v1260_v22 = vpop.f32.mrf.mxu3  ;;  %2700 = vmatpush.bf16.msra.mxu0 %v4369_v24  ;;  %v4964_v24 = vld [vmem:[%s7360_s8 + $0x3ac] sm:$0xf0] }
 0x2e5   :  { %v1261_v17 = vadd.f32 %v1260_v22, %v1232_v11  ;;  %v4300_v11 = vld [vmem:[%s7360_s8 + $0x3c0] sm:$0xf]  ;;  %v4917_v22 = vld [vmem:[%s7360_s8 + $0x234] sm:$0xf0]  ;;  %v4285_v54 = vor.u32 %v4964_v24, %v4284_v60  ;;  %v6231_v31 = vpop.f32.mrf.mxu1  ;;  %v4988_v60 = vld [vmem:[%s7360_s8 + $0x46c] sm:$0xf0] }
 0x2e6   :  { %v4301_v18 = vor.u32 %v4968_v15, %v4300_v11  ;;  %v1206_v11 = vadd.f32 %v6182_v34, %v5995_v1  ;;  %v4944_v15 = vld [vmem:[%s7360_s8 + $0x30c] sm:$0xf0]  ;;  %v4062_v24 = vld [vmem:[%s7360_s8 + $0x1f0] sm:$0xf0] }
 0x2e7   :  { %v1365_v21 = vmax.f32 %v1261_v17, 0.0  ;;  %v4101_v17 = vor.u32 %v4917_v22, %v4100_v16  ;;  %v4205_v16 = vor.u32 %v4944_v15, %v4204_v14  ;;  %v4524_v22 = vld [vmem:[%s7360_s8 + $0x580] sm:$0xf]  ;;  %v5024_v34 = vld [vmem:[%s7360_s8 + $0x58c] sm:$0xf0] }
 0x2e8   :  { %2701 = vmatpush.bf16.msra.mxu0 %v4353_v28  ;;  %2598 = vmatpush.bf16.msra.mxu1 %v4301_v18  ;;  %v4380_v18 = vld [vmem:[%s7360_s8 + $0x460] sm:$0xf] }
 0x2e9   :  { %v1375_v59 = vadd.f32 %v1365_v21, %v1363_v61  ;;  %v3964_v61 = vld [vmem:[%s7360_s8 + $0x120] sm:$0xf]  ;;  %v4884_v21 = vld [vmem:[%s7360_s8 + $0x12c] sm:$0xf0] }
 0x2ea   :  { %v3965_v23 = vor.u32 %v4884_v21, %v3964_v61  ;;  %v4525_v21 = vor.u32 %v5024_v34, %v4524_v22 }
 0x2eb   :  { %v6100_v26 = vmul.f32 0.5, %v1375_v59  ;;  %v4084_v59 = vld [vmem:[%s7360_s8 + $0x208] sm:$0xf] }
 0x2ec   :  { %2702 = vmatpush.bf16.msra.mxu0 %v4337_v35  ;;  %v4085_v28 = vor.u32 %v4913_v27, %v4084_v59  ;;  %2575 = vmatpush.bf16.msrb.mxu2 %v3965_v23  ;;  %v4268_v35 = vld [vmem:[%s7360_s8 + $0x380] sm:$0xf]  ;;  %v4906_v23 = vld [vmem:[%s7360_s8 + $0x1e4] sm:$0xf]  ;;  %v4381_v27 = vor.u32 %v4988_v60, %v4380_v18  ;;  %v3910_v60 = vld [vmem:[%s7360_s8 + $0xb8] sm:$0xf0] }
 0x2ed   :  { %v6110_v29 = vpack.c.bf16 %v6100_v26, %v6015_v37  ;;  %v4941_v37 = vld [vmem:[%s7360_s8 + $0x2f4] sm:$0xf0]  ;;  %2599 = vmatpush.bf16.msra.mxu1 %v4285_v54  ;;  %v4269_v49 = vor.u32 %v4960_v38, %v4268_v35  ;;  %v4065_v54 = vor.u32 %v4906_v23, %v4062_v24  ;;  %2628 = vmatpush.bf16.msra.mxu3 %v4525_v21  ;;  %v4902_v38 = vld [vmem:[%s7360_s8 + $0x1c4] sm:$0xf]  ;;  %v4867_v21 = vld [vmem:[%s7360_s8 + $0xac] sm:$0xf] }
 0x2ee   :  { %v4197_v39 = vor.u32 %v4941_v37, %v4196_v20  ;;  %v4880_v20 = vld [vmem:[%s7360_s8 + $0x10c] sm:$0xf0]  ;;  %v4890_v18 = vld [vmem:[%s7360_s8 + $0x164] sm:$0xf]  ;;  %v4318_v24 = vld [vmem:[%s7360_s8 + $0x3f0] sm:$0xf0] }
 0x2ef   :  { %2591 = vmatmul.bf16.vlgmr.msrb.gmra.mxu3 %v6110_v29 }
 0x2f0   :  { %2751 = vmatpush.bf16.msrb.mxu0 %v4197_v39  ;;  %v3949_v39 = vor.u32 %v4880_v20, %v3948_v32 }
 0x2f1   :  { %2600 = vmatpush.bf16.msra.mxu1 %v4269_v49  ;;  %v4046_v49 = vld [vmem:[%s7360_s8 + $0x1d0] sm:$0xf0] }
 0x2f2   :  { %2576 = vmatpush.bf16.msrb.mxu2 %v3949_v39  ;;  %v4984_v39 = vld [vmem:[%s7360_s8 + $0x44c] sm:$0xf0] }
 0x2f4   :  { %2752 = vmatpush.bf16.msrb.mxu0 %v4181_v50  ;;  %v4252_v50 = vld [vmem:[%s7360_s8 + $0x360] sm:$0xf] }
 0x2f5   :  { %v4253_v55 = vor.u32 %v4956_v41, %v4252_v50 }
 0x2f6   :  { %2611 = vmatpush.bf16.msra.mxu2 %v4445_v51  ;;  %v4049_v51 = vor.u32 %v4902_v38, %v4046_v49 }
 0x2f7   :  { %2601 = vmatpush.bf16.msra.mxu1 %v4253_v55  ;;  %v5016_v55 = vld [vmem:[%s7360_s8 + $0x54c] sm:$0xf0] }
 0x2f8   :  { %2753 = vmatpush.bf16.msrb.mxu0 %v4165_v56  ;;  %v5000_v56 = vld [vmem:[%s7360_s8 + $0x4cc] sm:$0xf0]  ;;  %v4493_v12 = vor.u32 %v5016_v55, %v4492_v52  ;;  %v4962_v52 = vld [vmem:[%s7360_s8 + $0x3a4] sm:$0xf]  ;;  %v3878_v55 = vld [vmem:[%s7360_s8 + $0x78] sm:$0xf0] }
 0x2f9   :  { %v4429_v58 = vor.u32 %v5000_v56, %v4428_v25  ;;  %v4348_v25 = vld [vmem:[%s7360_s8 + $0x420] sm:$0xf]  ;;  %v4980_v56 = vld [vmem:[%s7360_s8 + $0x42c] sm:$0xf0] }
 0x2fa   :  { %v4349_v0 = vor.u32 %v4980_v56, %v4348_v25  ;;  %v4286_v25 = vld [vmem:[%s7360_s8 + $0x3b0] sm:$0xf0] }
 0x2fb   :  { %2612 = vmatpush.bf16.msra.mxu2 %v4429_v58  ;;  %2602 = vmatpush.bf16.msra.mxu1 %v4237_v2  ;;  %v4030_v2 = vld [vmem:[%s7360_s8 + $0x1b0] sm:$0xf0]  ;;  %v4289_v56 = vor.u32 %v4962_v52, %v4286_v25  ;;  %v4438_v52 = vld [vmem:[%s7360_s8 + $0x4d8] sm:$0xf0] }
 0x2fc   :  { %2754 = vmatpush.bf16.msrb.mxu0 %v4149_v19  ;;  %v6193_v3 = vpop.f32.mrf.mxu2  ;;  %v6280_v19 = vpop.f32.mrf.mxu1  ;;  %v4033_v40 = vor.u32 %v4898_v57, %v4030_v2  ;;  %v4958_v2 = vld [vmem:[%s7360_s8 + $0x384] sm:$0xf] }
 0x2fd   :  { %v1235_v61 = vadd.f32 %v6193_v3, %v1206_v11  ;;  %v4014_v11 = vld [vmem:[%s7360_s8 + $0x190] sm:$0xf0] }
 0x2fe   :  { %v4017_v15 = vor.u32 %v4894_v44, %v4014_v11  ;;  %v4851_v11 = vld [vmem:[%s7360_s8 + $0x2c] sm:$0xf] }
 0x2ff   :  { %2603 = vmatpush.bf16.msra.mxu1 %v4221_v13  ;;  %v4976_v13 = vld [vmem:[%s7360_s8 + $0x40c] sm:$0xf0] }
 0x300   :  { %2755 = vmatpush.bf16.msrb.mxu0 %v4133_v62  ;;  %v4413_v62 = vor.u32 %v4996_v45, %v4412_v4  ;;  %v4476_v45 = vld [vmem:[%s7360_s8 + $0x520] sm:$0xf] }
 0x301   :  { %v4477_v10 = vor.u32 %v5012_v7, %v4476_v45  ;;  %v3862_v45 = vld [vmem:[%s7360_s8 + $0x58] sm:$0xf0] }
 0x302   :  { %2613 = vmatpush.bf16.msra.mxu2 %v4413_v62 }
 0x303   :  { %2604 = vmatpush.bf16.msra.mxu1 %v4205_v16  ;;  %v5008_v16 = vld [vmem:[%s7360_s8 + $0x50c] sm:$0xf0] }
 0x304   :  { %2756 = vmatpush.bf16.msrb.mxu0 %v4117_v6  ;;  %v6242_v37 = vpop.f32.mrf.mxu2  ;;  %v4992_v6 = vld [vmem:[%s7360_s8 + $0x48c] sm:$0xf0]  ;;  %v6340_v59 = vpop.f32.mrf.mxu1 }
 0x305   :  { %v4397_v8 = vor.u32 %v4992_v6, %v4396_v9  ;;  %v4871_v6 = vld [vmem:[%s7360_s8 + $0xcc] sm:$0xf] }
 0x306   :  { %v3929_v22 = vor.u32 %v4871_v6, %v3926_v46  ;;  %v4954_v6 = vld [vmem:[%s7360_s8 + $0x364] sm:$0xf]  ;;  %v4254_v46 = vld [vmem:[%s7360_s8 + $0x370] sm:$0xf0] }
 0x307   :  { %2614 = vmatpush.bf16.msra.mxu2 %v4397_v8  ;;  %2653 = vmatpush.bf16.msrb.mxu1 %v4065_v54 }
 0x308   :  { %2757 = vmatpush.bf16.msrb.mxu0 %v4101_v17  ;;  %v1208_v17 = vadd.f32 %v6231_v31, %v5995_v1  ;;  %v5020_v31 = vld [vmem:[%s7360_s8 + $0x56c] sm:$0xf0] }
 0x30a   :  { %v1237_v1 = vadd.f32 %v6242_v37, %v1208_v17  ;;  %v4364_v37 = vld [vmem:[%s7360_s8 + $0x440] sm:$0xf]  ;;  %v3998_v17 = vld [vmem:[%s7360_s8 + $0x170] sm:$0xf0] }
 0x30b   :  { %2615 = vmatpush.bf16.msra.mxu2 %v4381_v27  ;;  %v4365_v47 = vor.u32 %v4984_v39, %v4364_v37  ;;  %2654 = vmatpush.bf16.msrb.mxu1 %v4049_v51  ;;  %v4001_v23 = vor.u32 %v4890_v18, %v3998_v17  ;;  %v4302_v39 = vld [vmem:[%s7360_s8 + $0x3d0] sm:$0xf0] }
 0x30c   :  { %2758 = vmatpush.bf16.msrb.mxu0 %v4085_v28  ;;  %v6291_v30 = vpop.f32.mrf.mxu2  ;;  %v4508_v28 = vld [vmem:[%s7360_s8 + $0x560] sm:$0xf]  ;;  %v6393_v62 = vpop.f32.mrf.mxu1 }
 0x30d   :  { %v4509_v35 = vor.u32 %v5020_v31, %v4508_v28  ;;  %v3982_v28 = vld [vmem:[%s7360_s8 + $0x150] sm:$0xf0]  ;;  %v4966_v31 = vld [vmem:[%s7360_s8 + $0x3c4] sm:$0xf] }
 0x30f   :  { %2629 = vmatpush.bf16.msra.mxu3 %v4509_v35  ;;  %2616 = vmatpush.bf16.msra.mxu2 %v4365_v47  ;;  %v3894_v35 = vld [vmem:[%s7360_s8 + $0x98] sm:$0xf0]  ;;  %v6464_v47 = vperm.slane %v5992_v53, 1  ;;  %v4859_v53 = vld [vmem:[%s7360_s8 + $0x6c] sm:$0xf] }
 0x310   :  { %2655 = vmatpush.bf16.msrb.mxu1 %v4033_v40  ;;  %v3881_v63 = vor.u32 %v4859_v53, %v3878_v55 }
 0x311   :  { %v1280_v57 = vadd.f32 %v6340_v59, %v6464_v47  ;;  %v1278_v40 = vadd.f32 %v6280_v19, %v6464_v47  ;;  %v1283_v19 = vadd.f32 %v6393_v62, %v6464_v47 }
 0x313   :  { %2630 = vmatpush.bf16.msra.mxu3 %v4493_v12  ;;  %2617 = vmatpush.bf16.msra.mxu2 %v4349_v0  ;;  %v3950_v0 = vld [vmem:[%s7360_s8 + $0x110] sm:$0xf0] }
 0x314   :  { %v6349_v32 = vpop.f32.mrf.mxu2  ;;  %2656 = vmatpush.bf16.msrb.mxu1 %v4017_v15  ;;  %v1284_v38 = vpop.f32.mrf.mxu1  ;;  %v3953_v7 = vor.u32 %v4878_v33, %v3950_v0  ;;  %v3846_v15 = vld [vmem:[%s7360_s8 + $0x38] sm:$0xf0]  ;;  %v4174_v33 = vld [vmem:[%s7360_s8 + $0x2d0] sm:$0xf0]  ;;  %v4942_v0 = vld [vmem:[%s7360_s8 + $0x304] sm:$0xf] }
 0x315   :  { %v1309_v59 = vadd.f32 %v6349_v32, %v1280_v57  ;;  %v1307_v32 = vadd.f32 %v6291_v30, %v1278_v40  ;;  %v1285_v62 = vadd.f32 %v1284_v38, %v6464_v47  ;;  %v4934_v57 = vld [vmem:[%s7360_s8 + $0x2c4] sm:$0xf]  ;;  %v4995_v40 = vld [vmem:[%s7360_s8 + $0x4ac] sm:$0xf] }
 0x317   :  { %2631 = vmatpush.bf16.msra.mxu3 %v4477_v10 }
 0x318   :  { %2657 = vmatpush.bf16.msrb.mxu1 %v4001_v23  ;;  %v4847_v23 = vld [vmem:[%s7360_s8 + $0xc] sm:$0xf] }
 0x31c   :  { %v1263_v36 = vpop.f32.mrf.mxu3 }
 0x31d   :  { %v1264_v3 = vadd.f32 %v1263_v36, %v1235_v61  ;;  %v4332_v36 = vld [vmem:[%s7360_s8 + $0x400] sm:$0xf]  ;;  %v6418_v14 = vpop.f32.mrf.mxu2  ;;  %v4970_v61 = vld [vmem:[%s7360_s8 + $0x3e4] sm:$0xf] }
 0x31e   :  { %v4333_v8 = vor.u32 %v4976_v13, %v4332_v36  ;;  %v4321_v27 = vor.u32 %v4970_v61, %v4318_v24  ;;  %v6511_v13 = vpop.f32.mrf.mxu1  ;;  %v1312_v30 = vadd.f32 %v6418_v14, %v1283_v19  ;;  %v3849_v61 = vor.u32 %v4851_v11, %v3846_v15  ;;  %v4238_v14 = vld [vmem:[%s7360_s8 + $0x350] sm:$0xf0]  ;;  %v3830_v24 = vld [vmem:[%s7360_s8 + $0x18] sm:$0xf0] }
 0x31f   :  { %v1367_v50 = vmax.f32 %v1264_v3, 0.0  ;;  %v4886_v3 = vld [vmem:[%s7360_s8 + $0x144] sm:$0xf] }
 0x320   :  { %2618 = vmatpush.bf16.msra.mxu2 %v4333_v8  ;;  %v3985_v37 = vor.u32 %v4886_v3, %v3982_v28 }
 0x322   :  { %2658 = vmatpush.bf16.msrb.mxu1 %v3985_v37  ;;  %v4222_v37 = vld [vmem:[%s7360_s8 + $0x330] sm:$0xf0] }
 0x324   :  { %v1265_v20 = vpop.f32.mrf.mxu3 }
 0x325   :  { %v1266_v43 = vadd.f32 %v1265_v20, %v1237_v1  ;;  %v3913_v1 = vor.u32 %v4867_v21, %v3910_v60  ;;  %v4863_v20 = vld [vmem:[%s7360_s8 + $0x8c] sm:$0xf]  ;;  %v1313_v49 = vpop.f32.mrf.mxu2 }
 0x326   :  { %v3897_v51 = vor.u32 %v4863_v20, %v3894_v35  ;;  %v3833_v20 = vor.u32 %v4847_v23, %v3830_v24  ;;  %v4946_v35 = vld [vmem:[%s7360_s8 + $0x324] sm:$0xf]  ;;  %v4126_v23 = vld [vmem:[%s7360_s8 + $0x270] sm:$0xf0] }
 0x327   :  { %v1369_v41 = vmax.f32 %v1266_v43, 0.0  ;;  %v4305_v43 = vor.u32 %v4966_v31, %v4302_v39  ;;  %v5034_v24 = vld [vmem:[%s7360_s8 + $0x5e4] sm:$0xf] }
 0x329   :  { %v1377_v58 = vadd.f32 %v1369_v41, %v1367_v50  ;;  %v4882_v50 = vld [vmem:[%s7360_s8 + $0x124] sm:$0xf]  ;;  %v3966_v41 = vld [vmem:[%s7360_s8 + $0x130] sm:$0xf0] }
 0x32a   :  { %v3969_v12 = vor.u32 %v4882_v50, %v3966_v41  ;;  %v1289_v50 = vpop.f32.mrf.mxu1  ;;  %v4999_v41 = vld [vmem:[%s7360_s8 + $0x4cc] sm:$0xf] }
 0x32b   :  { %v1385_v4 = vmul.f32 0.5, %v1377_v58 }
 0x32c   :  { %v6395_v5 = vpop.f32.mrf.mxu3  ;;  %2659 = vmatpush.bf16.msrb.mxu1 %v3969_v12 }
 0x32d   :  { %v6407_v9 = vpack.c.bf16 %v1385_v4, %v6100_v26  ;;  %v4460_v26 = vld [vmem:[%s7360_s8 + $0x500] sm:$0xf]  ;;  %v4855_v4 = vld [vmem:[%s7360_s8 + $0x4c] sm:$0xf]  ;;  %v1336_v8 = vadd.f32 %v6395_v5, %v1307_v32  ;;  %v4950_v5 = vld [vmem:[%s7360_s8 + $0x344] sm:$0xf] }
 0x32e   :  { %v4461_v34 = vor.u32 %v5008_v16, %v4460_v26  ;;  %v3865_v44 = vor.u32 %v4855_v4, %v3862_v45  ;;  %v4257_v26 = vor.u32 %v4954_v6, %v4254_v46  ;;  %v1316_v16 = vpop.f32.mrf.mxu2  ;;  %v1288_v45 = vadd.f32 %v6511_v13, %v6464_v47  ;;  %v4930_v32 = vld [vmem:[%s7360_s8 + $0x2a4] sm:$0xf]  ;;  %v4991_v13 = vld [vmem:[%s7360_s8 + $0x48c] sm:$0xf] }
 0x32f   :  { %2703 = vmatmul.bf16.vlgmr.msra.gmra.mxu0 %v6407_v9  ;;  %v1356_v21 = vmax.f32 %v1336_v8, 0.0 }
 0x330   :  { %2807 = vmatpush.bf16.msra.mxu0 %v3945_v48  ;;  %2632 = vmatpush.bf16.msra.mxu3 %v4461_v34  ;;  %v4270_v48 = vld [vmem:[%s7360_s8 + $0x390] sm:$0xf0] }
 0x331   :  { %v4273_v10 = vor.u32 %v4958_v2, %v4270_v48  ;;  %2660 = vmatpush.bf16.msrb.mxu1 %v3953_v7  ;;  %v4206_v2 = vld [vmem:[%s7360_s8 + $0x310] sm:$0xf0]  ;;  %v4177_v7 = vor.u32 %v4934_v57, %v4174_v33  ;;  %v1290_v48 = vadd.f32 %v1289_v50, %v6464_v47  ;;  %v4979_v50 = vld [vmem:[%s7360_s8 + $0x42c] sm:$0xf] }
 0x332   :  { %v4209_v4 = vor.u32 %v4942_v0, %v4206_v2  ;;  %v4094_v33 = vld [vmem:[%s7360_s8 + $0x230] sm:$0xf0]  ;;  %v5026_v0 = vld [vmem:[%s7360_s8 + $0x5a4] sm:$0xf] }
 0x333   :  { %v4542_v2 = vld [vmem:[%s7360_s8 + $0x5b0] sm:$0xf0] }
 0x334   :  { %2808 = vmatpush.bf16.msra.mxu0 %v3929_v22  ;;  %v1337_v54 = vpop.f32.mrf.mxu3  ;;  %2681 = vmatpush.bf16.msrb.mxu3 %v4321_v27  ;;  %v1314_v22 = vadd.f32 %v1313_v49, %v1285_v62  ;;  %v4241_v27 = vor.u32 %v4950_v5, %v4238_v14  ;;  %v4190_v49 = vld [vmem:[%s7360_s8 + $0x2f0] sm:$0xf0]  ;;  %v1292_v62 = vpop.f32.mrf.mxu1  ;;  %v4922_v14 = vld [vmem:[%s7360_s8 + $0x264] sm:$0xf] }
 0x335   :  { %v1338_v36 = vadd.f32 %v1337_v54, %v1309_v59  ;;  %v5003_v54 = vld [vmem:[%s7360_s8 + $0x4ec] sm:$0xf]  ;;  %v4422_v59 = vld [vmem:[%s7360_s8 + $0x4b8] sm:$0xf0] }
 0x336   :  { %v1318_v12 = vpop.f32.mrf.mxu2  ;;  %v4425_v19 = vor.u32 %v4995_v40, %v4422_v59  ;;  %v4975_v40 = vld [vmem:[%s7360_s8 + $0x40c] sm:$0xf] }
 0x337   :  { %v1358_v34 = vmax.f32 %v1338_v36, 0.0  ;;  %v4158_v36 = vld [vmem:[%s7360_s8 + $0x2b0] sm:$0xf0]  ;;  %v1319_v6 = vadd.f32 %v1318_v12, %v1290_v48  ;;  %v4545_v48 = vor.u32 %v5026_v0, %v4542_v2  ;;  %v4973_v0 = vld [vmem:[%s7360_s8 + $0x3f4] sm:$0xf0] }
 0x338   :  { %2809 = vmatpush.bf16.msra.mxu0 %v3913_v1  ;;  %2682 = vmatpush.bf16.msrb.mxu3 %v4305_v43  ;;  %v4454_v1 = vld [vmem:[%s7360_s8 + $0x4f8] sm:$0xf0]  ;;  %v4938_v43 = vld [vmem:[%s7360_s8 + $0x2e4] sm:$0xf]  ;;  %v4161_v8 = vor.u32 %v4930_v32, %v4158_v36  ;;  %v4078_v36 = vld [vmem:[%s7360_s8 + $0x210] sm:$0xf0] }
 0x339   :  { %v1372_v3 = vadd.f32 %v1358_v34, %v1356_v21  ;;  %v4457_v38 = vor.u32 %v5003_v54, %v4454_v1  ;;  %v4987_v34 = vld [vmem:[%s7360_s8 + $0x46c] sm:$0xf]  ;;  %v4374_v1 = vld [vmem:[%s7360_s8 + $0x458] sm:$0xf0] }
 0x33a   :  { %v4983_v54 = vld [vmem:[%s7360_s8 + $0x44c] sm:$0xf] }
 0x33b   :  { %v1380_v53 = vmul.f32 0.5, %v1372_v3 }
 0x33c   :  { %2810 = vmatpush.bf16.msra.mxu0 %v3897_v51  ;;  %v1340_v58 = vpop.f32.mrf.mxu3  ;;  %2683 = vmatpush.bf16.msrb.mxu3 %v4289_v56  ;;  %v4225_v51 = vor.u32 %v4946_v35, %v4222_v37  ;;  %v4193_v56 = vor.u32 %v4938_v43, %v4190_v49  ;;  %v4918_v35 = vld [vmem:[%s7360_s8 + $0x244] sm:$0xf]  ;;  %v4558_v49 = vld [vmem:[%s7360_s8 + $0x5d0] sm:$0xf0] }
 0x33d   :  { %v1341_v18 = vadd.f32 %v1340_v58, %v1312_v30  ;;  %v5030_v43 = vld [vmem:[%s7360_s8 + $0x5c4] sm:$0xf] }
 0x33e   :  { %v4561_v12 = vor.u32 %v5030_v43, %v4558_v49  ;;  %v4036_v43 = vld [vmem:[%s7360_s8 + $0x1a8] sm:$0xf]  ;;  %v4901_v49 = vld [vmem:[%s7360_s8 + $0x1b4] sm:$0xf0] }
 0x33f   :  { %2759 = vmatmul.bf16.vlgmr.msrb.gmra.mxu0 %v6110_v29  ;;  %v1360_v28 = vmax.f32 %v1341_v18, 0.0  ;;  %v4390_v18 = vld [vmem:[%s7360_s8 + $0x478] sm:$0xf0] }
 0x340   :  { %2811 = vmatpush.bf16.msra.mxu0 %v3881_v63  ;;  %2684 = vmatpush.bf16.msrb.mxu3 %v4273_v10  ;;  %v4441_v63 = vor.u32 %v4999_v41, %v4438_v52  ;;  %v1317_v10 = vadd.f32 %v1316_v16, %v1288_v45  ;;  %v4142_v16 = vld [vmem:[%s7360_s8 + $0x290] sm:$0xf0]  ;;  %v4358_v41 = vld [vmem:[%s7360_s8 + $0x438] sm:$0xf0]  ;;  %v1293_v52 = vadd.f32 %v1292_v62, %v6464_v47 }
 0x344   :  { %2812 = vmatpush.bf16.msra.mxu0 %v3865_v44  ;;  %v1342_v17 = vpop.f32.mrf.mxu3  ;;  %2685 = vmatpush.bf16.msrb.mxu3 %v4257_v26  ;;  %v4406_v44 = vld [vmem:[%s7360_s8 + $0x498] sm:$0xf0]  ;;  %v4926_v26 = vld [vmem:[%s7360_s8 + $0x284] sm:$0xf] }
 0x345   :  { %v1343_v60 = vadd.f32 %v1342_v17, %v1314_v22  ;;  %v4409_v15 = vor.u32 %v4991_v13, %v4406_v44  ;;  %v1321_v22 = vpop.f32.mrf.mxu2  ;;  %v4145_v5 = vor.u32 %v4926_v26, %v4142_v16  ;;  %v5022_v13 = vld [vmem:[%s7360_s8 + $0x584] sm:$0xf]  ;;  %v4526_v44 = vld [vmem:[%s7360_s8 + $0x590] sm:$0xf0] }
 0x346   :  { %v1322_v57 = vadd.f32 %v1321_v22, %v1293_v52  ;;  %v5018_v16 = vld [vmem:[%s7360_s8 + $0x564] sm:$0xf]  ;;  %v4510_v22 = vld [vmem:[%s7360_s8 + $0x570] sm:$0xf0]  ;;  %v4037_v52 = vor.u32 %v4901_v49, %v4036_v43 }
 0x347   :  { %v1362_v31 = vmax.f32 %v1343_v60, 0.0  ;;  %v4393_v60 = vor.u32 %v4987_v34, %v4390_v18  ;;  %v4068_v34 = vld [vmem:[%s7360_s8 + $0x1e8] sm:$0xf]  ;;  %v4909_v18 = vld [vmem:[%s7360_s8 + $0x1f4] sm:$0xf0] }
 0x348   :  { %2813 = vmatpush.bf16.msra.mxu0 %v3849_v61  ;;  %2686 = vmatpush.bf16.msrb.mxu3 %v4241_v27  ;;  %v4574_v27 = vld [vmem:[%s7360_s8 + $0x5f0] sm:$0xf0] }
 0x349   :  { %v1374_v39 = vadd.f32 %v1362_v31, %v1360_v28  ;;  %v4129_v31 = vor.u32 %v4922_v14, %v4126_v23  ;;  %v4513_v14 = vor.u32 %v5018_v16, %v4510_v22  ;;  %v4885_v16 = vld [vmem:[%s7360_s8 + $0x134] sm:$0xf0] }
 0x34b   :  { %v6564_v55 = vmul.f32 0.5, %v1374_v39  ;;  %v4377_v39 = vor.u32 %v4983_v54, %v4374_v1  ;;  %v4052_v54 = vld [vmem:[%s7360_s8 + $0x1c8] sm:$0xf]  ;;  %v4905_v1 = vld [vmem:[%s7360_s8 + $0x1d4] sm:$0xf0] }
 0x34c   :  { %2814 = vmatpush.bf16.msra.mxu0 %v3833_v20  ;;  %v1345_v25 = vpop.f32.mrf.mxu3  ;;  %2687 = vmatpush.bf16.msrb.mxu3 %v4225_v51  ;;  %v4577_v20 = vor.u32 %v5034_v24, %v4574_v27  ;;  %v1294_v51 = vpop.f32.mrf.mxu1  ;;  %v5014_v24 = vld [vmem:[%s7360_s8 + $0x544] sm:$0xf]  ;;  %v4494_v27 = vld [vmem:[%s7360_s8 + $0x550] sm:$0xf0] }
 0x34d   :  { %v6570_v58 = vpack.c.bf16 %v6564_v55, %v1380_v53  ;;  %v1346_v46 = vadd.f32 %v1345_v25, %v1317_v10  ;;  %v1323_v53 = vpop.f32.mrf.mxu2  ;;  %v4914_v25 = vld [vmem:[%s7360_s8 + $0x224] sm:$0xf] }
 0x34e   :  { %v4910_v10 = vld [vmem:[%s7360_s8 + $0x204] sm:$0xf] }
 0x34f   :  { %2577 = vmatmul.bf16.vlgmr.msrb.gmra.mxu2 %v6570_v58  ;;  %2815 = vmatmul.bf16.vlgmr.msra.gmra.mxu0 %v6024_v42  ;;  %v1364_v17 = vmax.f32 %v1346_v46, 0.0  ;;  %v4877_v46 = vld [vmem:[%s7360_s8 + $0xf4] sm:$0xf0] }
 0x350   :  { %2863 = vmatpush.bf16.msrb.mxu0 %v4457_v38  ;;  %2667 = vmatpush.bf16.msrb.mxu2 %v4193_v56  ;;  %v4110_v38 = vld [vmem:[%s7360_s8 + $0x250] sm:$0xf0]  ;;  %v1295_v56 = vadd.f32 %v1294_v51, %v6464_v47  ;;  %v4342_v47 = vld [vmem:[%s7360_s8 + $0x418] sm:$0xf0]  ;;  %v3892_v51 = vld [vmem:[%s7360_s8 + $0x88] sm:$0xf] }
 0x351   :  { %2688 = vmatpush.bf16.msrb.mxu3 %v4209_v4  ;;  %v4345_v32 = vor.u32 %v4975_v40, %v4342_v47 }
 0x352   :  { %v1324_v59 = vadd.f32 %v1323_v53, %v1295_v56  ;;  %v4897_v56 = vld [vmem:[%s7360_s8 + $0x194] sm:$0xf0] }
 0x354   :  { %2864 = vmatpush.bf16.msrb.mxu0 %v4441_v63  ;;  %2668 = vmatpush.bf16.msrb.mxu2 %v4177_v7  ;;  %v1347_v30 = vpop.f32.mrf.mxu3  ;;  %v4361_v63 = vor.u32 %v4979_v50, %v4358_v41  ;;  %v4097_v7 = vor.u32 %v4914_v25, %v4094_v33  ;;  %v4865_v50 = vld [vmem:[%s7360_s8 + $0x94] sm:$0xf0]  ;;  %v4020_v25 = vld [vmem:[%s7360_s8 + $0x188] sm:$0xf] }
 0x355   :  { %v1348_v11 = vadd.f32 %v1347_v30, %v1319_v6  ;;  %v3940_v6 = vld [vmem:[%s7360_s8 + $0xe8] sm:$0xf]  ;;  %v3893_v53 = vor.u32 %v4865_v50, %v3892_v51  ;;  %v4021_v40 = vor.u32 %v4897_v56, %v4020_v25 }
 0x356   :  { %v3941_v26 = vor.u32 %v4877_v46, %v3940_v6  ;;  %v4324_v33 = vld [vmem:[%s7360_s8 + $0x3e8] sm:$0xf]  ;;  %v4889_v6 = vld [vmem:[%s7360_s8 + $0x154] sm:$0xf0] }
 0x357   :  { %v1366_v61 = vmax.f32 %v1348_v11, 0.0  ;;  %v4529_v11 = vor.u32 %v5022_v13, %v4526_v44  ;;  %v3988_v13 = vld [vmem:[%s7360_s8 + $0x148] sm:$0xf] }
 0x358   :  { %2865 = vmatpush.bf16.msrb.mxu0 %v4425_v19  ;;  %2669 = vmatpush.bf16.msrb.mxu2 %v4161_v8  ;;  %v4081_v8 = vor.u32 %v4910_v10, %v4078_v36  ;;  %v4308_v10 = vld [vmem:[%s7360_s8 + $0x3c8] sm:$0xf] }
 0x359   :  { %v1376_v21 = vadd.f32 %v1366_v61, %v1364_v17  ;;  %v3924_v17 = vld [vmem:[%s7360_s8 + $0xc8] sm:$0xf]  ;;  %v4873_v61 = vld [vmem:[%s7360_s8 + $0xd4] sm:$0xf0] }
 0x35a   :  { %v3925_v23 = vor.u32 %v4873_v61, %v3924_v17  ;;  %v3844_v46 = vld [vmem:[%s7360_s8 + $0x28] sm:$0xf]  ;;  %v4961_v61 = vld [vmem:[%s7360_s8 + $0x394] sm:$0xf0] }
 0x35b   :  { %v6634_v3 = vmul.f32 0.5, %v1376_v21  ;;  %v4276_v17 = vld [vmem:[%s7360_s8 + $0x388] sm:$0xf] }
 0x35c   :  { %2866 = vmatpush.bf16.msrb.mxu0 %v4409_v15  ;;  %2670 = vmatpush.bf16.msrb.mxu2 %v4145_v5  ;;  %v1350_v28 = vpop.f32.mrf.mxu3  ;;  %v4244_v51 = vld [vmem:[%s7360_s8 + $0x348] sm:$0xf] }
 0x35d   :  { %v6641_v37 = vpack.c.bf16 %v6634_v3, %v6564_v55  ;;  %v4113_v55 = vor.u32 %v4918_v35, %v4110_v38  ;;  %v1351_v4 = vadd.f32 %v1350_v28, %v1322_v57  ;;  %v4869_v28 = vld [vmem:[%s7360_s8 + $0xb4] sm:$0xf0]  ;;  %v4478_v38 = vld [vmem:[%s7360_s8 + $0x530] sm:$0xf0]  ;;  %v3876_v57 = vld [vmem:[%s7360_s8 + $0x68] sm:$0xf] }
 0x35f   :  { %2605 = vmatmul.bf16.vlgmr.msra.gmra.mxu1 %v6641_v37  ;;  %2619 = vmatmul.bf16.vlgmr.msra.gmra.mxu2 %v6407_v9  ;;  %v1368_v62 = vmax.f32 %v1351_v4, 0.0  ;;  %v4325_v4 = vor.u32 %v4973_v0, %v4324_v33  ;;  %v4548_v33 = vld [vmem:[%s7360_s8 + $0x5a8] sm:$0xf]  ;;  %v5029_v0 = vld [vmem:[%s7360_s8 + $0x5b4] sm:$0xf0] }
 0x360   :  { %2867 = vmatpush.bf16.msrb.mxu0 %v4393_v60  ;;  %2671 = vmatpush.bf16.msrb.mxu2 %v4129_v31  ;;  %v4069_v60 = vor.u32 %v4909_v18, %v4068_v34  ;;  %v4497_v31 = vor.u32 %v5014_v24, %v4494_v27  ;;  %v3828_v34 = vld [vmem:[%s7360_s8 + $0x8] sm:$0xf]  ;;  %v4849_v18 = vld [vmem:[%s7360_s8 + $0x14] sm:$0xf0]  ;;  %v4277_v24 = vor.u32 %v4961_v61, %v4276_v17 }
 0x361   :  { %2709 = vmatpush.bf16.msra.mxu1 %v4577_v20  ;;  %v4053_v20 = vor.u32 %v4905_v1, %v4052_v54  ;;  %v3956_v54 = vld [vmem:[%s7360_s8 + $0x108] sm:$0xf]  ;;  %v4881_v1 = vld [vmem:[%s7360_s8 + $0x114] sm:$0xf0] }
 0x362   :  { %v4500_v17 = vld [vmem:[%s7360_s8 + $0x548] sm:$0xf]  ;;  %v5017_v61 = vld [vmem:[%s7360_s8 + $0x554] sm:$0xf0] }
 0x364   :  { %2868 = vmatpush.bf16.msrb.mxu0 %v4377_v39  ;;  %2672 = vmatpush.bf16.msrb.mxu2 %v4113_v55  ;;  %v1352_v45 = vpop.f32.mrf.mxu3  ;;  %v5010_v39 = vld [vmem:[%s7360_s8 + $0x524] sm:$0xf] }
 0x365   :  { %2710 = vmatpush.bf16.msra.mxu1 %v4561_v12  ;;  %v1353_v19 = vadd.f32 %v1352_v45, %v1324_v59  ;;  %v4481_v41 = vor.u32 %v5010_v39, %v4478_v38  ;;  %v5006_v55 = vld [vmem:[%s7360_s8 + $0x504] sm:$0xf]  ;;  %v4462_v12 = vld [vmem:[%s7360_s8 + $0x510] sm:$0xf0]  ;;  %v4004_v59 = vld [vmem:[%s7360_s8 + $0x168] sm:$0xf]  ;;  %v3957_v38 = vor.u32 %v4881_v1, %v3956_v54 }
 0x366   :  { %v4465_v2 = vor.u32 %v5006_v55, %v4462_v12  ;;  %v4893_v45 = vld [vmem:[%s7360_s8 + $0x174] sm:$0xf0]  ;;  %v4420_v55 = vld [vmem:[%s7360_s8 + $0x4a8] sm:$0xf] }
 0x367   :  { %v1370_v30 = vmax.f32 %v1353_v19, 0.0  ;;  %v4969_v19 = vld [vmem:[%s7360_s8 + $0x3d4] sm:$0xf0]  ;;  %v4484_v1 = vld [vmem:[%s7360_s8 + $0x528] sm:$0xf] }
 0x368   :  { %2869 = vmatpush.bf16.msrb.mxu0 %v4361_v63  ;;  %2673 = vmatpush.bf16.msrb.mxu2 %v4097_v7  ;;  %v4861_v63 = vld [vmem:[%s7360_s8 + $0x74] sm:$0xf0]  ;;  %v3860_v7 = vld [vmem:[%s7360_s8 + $0x48] sm:$0xf]  ;;  %v4309_v44 = vor.u32 %v4969_v19, %v4308_v10 }
 0x369   :  { %2711 = vmatpush.bf16.msra.mxu1 %v4545_v48  ;;  %v1378_v15 = vadd.f32 %v1370_v30, %v1368_v62  ;;  %v3877_v47 = vor.u32 %v4861_v63, %v3876_v57  ;;  %v4857_v48 = vld [vmem:[%s7360_s8 + $0x54] sm:$0xf0]  ;;  %v4292_v30 = vld [vmem:[%s7360_s8 + $0x3a8] sm:$0xf] }
 0x36a   :  { %v3861_v36 = vor.u32 %v4857_v48, %v3860_v7  ;;  %v4853_v62 = vld [vmem:[%s7360_s8 + $0x34] sm:$0xf0]  ;;  %v4228_v57 = vld [vmem:[%s7360_s8 + $0x328] sm:$0xf] }
 0x36b   :  { %v1386_v5 = vmul.f32 0.5, %v1378_v15  ;;  %v3845_v15 = vor.u32 %v4853_v62, %v3844_v46  ;;  %v5001_v39 = vld [vmem:[%s7360_s8 + $0x4d4] sm:$0xf0]  ;;  %v4532_v48 = vld [vmem:[%s7360_s8 + $0x588] sm:$0xf] }
 0x36c   :  { %2870 = vmatpush.bf16.msrb.mxu0 %v4345_v32  ;;  %2674 = vmatpush.bf16.msrb.mxu2 %v4081_v8  ;;  %v4005_v32 = vor.u32 %v4893_v45, %v4004_v59  ;;  %v4965_v8 = vld [vmem:[%s7360_s8 + $0x3b4] sm:$0xf0]  ;;  %v4549_v59 = vor.u32 %v5029_v0, %v4548_v33  ;;  %v4388_v19 = vld [vmem:[%s7360_s8 + $0x468] sm:$0xf]  ;;  %v4887_v0 = vld [vmem:[%s7360_s8 + $0x14c] sm:$0xf] }
 0x36d   :  { %2712 = vmatpush.bf16.msra.mxu1 %v4529_v11  ;;  %v6717_v21 = vpack.c.bf16 %v1386_v5, %v6634_v3  ;;  %v3908_v3 = vld [vmem:[%s7360_s8 + $0xa8] sm:$0xf]  ;;  %v3989_v11 = vor.u32 %v4889_v6, %v3988_v13  ;;  %v4293_v22 = vor.u32 %v4965_v8, %v4292_v30  ;;  %v4997_v12 = vld [vmem:[%s7360_s8 + $0x4b4] sm:$0xf0]  ;;  %v4070_v13 = vld [vmem:[%s7360_s8 + $0x1f8] sm:$0xf0] }
 0x36e   :  { %v3909_v35 = vor.u32 %v4869_v28, %v3908_v3  ;;  %v4452_v5 = vld [vmem:[%s7360_s8 + $0x4e8] sm:$0xf]  ;;  %v4957_v28 = vld [vmem:[%s7360_s8 + $0x374] sm:$0xf0]  ;;  %v4421_v63 = vor.u32 %v4997_v12, %v4420_v55  ;;  %v4006_v55 = vld [vmem:[%s7360_s8 + $0x178] sm:$0xf0] }
 0x36f   :  { %2871 = vmatmul.bf16.vlgmr.msrb.gmra.mxu0 %v6407_v9  ;;  %2633 = vmatmul.bf16.vlgmr.msra.gmra.mxu3 %v6717_v21  ;;  %v4260_v3 = vld [vmem:[%s7360_s8 + $0x368] sm:$0xf]  ;;  %v4945_v45 = vld [vmem:[%s7360_s8 + $0x314] sm:$0xf0]  ;;  %v4971_v12 = vld [vmem:[%s7360_s8 + $0x3ec] sm:$0xf] }
 0x370   :  { %2723 = vmatpush.bf16.msra.mxu2 %v3941_v26  ;;  %2661 = vmatmul.bf16.vlgmr.msrb.gmra.mxu1 %v6570_v58  ;;  %v3972_v26 = vld [vmem:[%s7360_s8 + $0x128] sm:$0xf]  ;;  %v4261_v43 = vor.u32 %v4957_v28, %v4260_v3  ;;  %v5025_v10 = vld [vmem:[%s7360_s8 + $0x594] sm:$0xf0] }
 0x371   :  { %2675 = vmatmul.bf16.vlgmr.msrb.gmra.mxu2 %v6110_v29  ;;  %2713 = vmatpush.bf16.msra.mxu1 %v4513_v14  ;;  %v5005_v14 = vld [vmem:[%s7360_s8 + $0x4f4] sm:$0xf0]  ;;  %v4533_v6 = vor.u32 %v5025_v10, %v4532_v48  ;;  %v4516_v30 = vld [vmem:[%s7360_s8 + $0x568] sm:$0xf]  ;;  %v4883_v10 = vld [vmem:[%s7360_s8 + $0x12c] sm:$0xf] }
 0x372   :  { %2737 = vmatpush.bf16.msra.mxu3 %v4069_v60  ;;  %v3973_v60 = vor.u32 %v4885_v16, %v3972_v26  ;;  %v4453_v27 = vor.u32 %v5005_v14, %v4452_v5  ;;  %v5021_v8 = vld [vmem:[%s7360_s8 + $0x574] sm:$0xf0]  ;;  %v4903_v26 = vld [vmem:[%s7360_s8 + $0x1cc] sm:$0xf]  ;;  %v4054_v16 = vld [vmem:[%s7360_s8 + $0x1d8] sm:$0xf0] }
 0x373   :  { %v4356_v5 = vld [vmem:[%s7360_s8 + $0x428] sm:$0xf]  ;;  %v4981_v14 = vld [vmem:[%s7360_s8 + $0x434] sm:$0xf0] }
 0x374   :  { %2724 = vmatpush.bf16.msra.mxu2 %v3925_v23  ;;  %v3829_v23 = vor.u32 %v4849_v18, %v3828_v34  ;;  %v4057_v18 = vor.u32 %v4903_v26, %v4054_v16  ;;  %v5013_v3 = vld [vmem:[%s7360_s8 + $0x534] sm:$0xf0]  ;;  %v4340_v28 = vld [vmem:[%s7360_s8 + $0x408] sm:$0xf]  ;;  %v4923_v26 = vld [vmem:[%s7360_s8 + $0x26c] sm:$0xf] }
 0x375   :  { %2714 = vmatpush.bf16.msra.mxu1 %v4497_v31  ;;  %v4580_v31 = vld [vmem:[%s7360_s8 + $0x5e8] sm:$0xf]  ;;  %v4134_v16 = vld [vmem:[%s7360_s8 + $0x278] sm:$0xf0] }
 0x376   :  { %2738 = vmatpush.bf16.msra.mxu3 %v4053_v20  ;;  %v5037_v20 = vld [vmem:[%s7360_s8 + $0x5f4] sm:$0xf0] }
 0x377   :  { %v4581_v49 = vor.u32 %v5037_v20, %v4580_v31  ;;  %v4977_v31 = vld [vmem:[%s7360_s8 + $0x414] sm:$0xf0]  ;;  %v4895_v20 = vld [vmem:[%s7360_s8 + $0x18c] sm:$0xf] }
 0x378   :  { %2725 = vmatpush.bf16.msra.mxu2 %v3909_v35  ;;  %v4436_v35 = vld [vmem:[%s7360_s8 + $0x4c8] sm:$0xf] }
 0x379   :  { %2715 = vmatpush.bf16.msra.mxu1 %v4481_v41  ;;  %v4437_v50 = vor.u32 %v5001_v39, %v4436_v35  ;;  %v4953_v41 = vld [vmem:[%s7360_s8 + $0x354] sm:$0xf0]  ;;  %v4022_v35 = vld [vmem:[%s7360_s8 + $0x198] sm:$0xf0]  ;;  %v4939_v39 = vld [vmem:[%s7360_s8 + $0x2ec] sm:$0xf] }
 0x37a   :  { %2739 = vmatpush.bf16.msra.mxu3 %v4037_v52  ;;  %v4564_v52 = vld [vmem:[%s7360_s8 + $0x5c8] sm:$0xf]  ;;  %v4245_v25 = vor.u32 %v4953_v41, %v4244_v51  ;;  %v4025_v51 = vor.u32 %v4895_v20, %v4022_v35  ;;  %v5009_v41 = vld [vmem:[%s7360_s8 + $0x514] sm:$0xf0]  ;;  %v4246_v20 = vld [vmem:[%s7360_s8 + $0x358] sm:$0xf0] }
 0x37b   :  { %v4915_v35 = vld [vmem:[%s7360_s8 + $0x22c] sm:$0xf] }
 0x37c   :  { %2726 = vmatpush.bf16.msra.mxu2 %v3893_v53  ;;  %v5033_v53 = vld [vmem:[%s7360_s8 + $0x5d4] sm:$0xf0] }
 0x37d   :  { %2716 = vmatpush.bf16.msra.mxu1 %v4465_v2  ;;  %v4565_v56 = vor.u32 %v5033_v53, %v4564_v52  ;;  %v4404_v2 = vld [vmem:[%s7360_s8 + $0x488] sm:$0xf]  ;;  %v4891_v52 = vld [vmem:[%s7360_s8 + $0x16c] sm:$0xf] }
 0x37e   :  { %2740 = vmatpush.bf16.msra.mxu3 %v4021_v40  ;;  %v4993_v40 = vld [vmem:[%s7360_s8 + $0x494] sm:$0xf0] }
 0x37f   :  { %2689 = vmatmul.bf16.vlgmr.msrb.gmra.mxu3 %v6641_v37  ;;  %v4405_v7 = vor.u32 %v4993_v40, %v4404_v2  ;;  %v3990_v40 = vld [vmem:[%s7360_s8 + $0x158] sm:$0xf0] }
 0x380   :  { %2727 = vmatpush.bf16.msra.mxu2 %v3877_v47  ;;  %2717 = vmatmul.bf16.vlgmr.msra.gmra.mxu1 %v6717_v21 }
 0x381   :  { %2765 = vmatpush.bf16.msrb.mxu1 %v4325_v4  ;;  %v4212_v4 = vld [vmem:[%s7360_s8 + $0x308] sm:$0xf] }
 0x382   :  { %2741 = vmatpush.bf16.msra.mxu3 %v4005_v32  ;;  %v4989_v32 = vld [vmem:[%s7360_s8 + $0x474] sm:$0xf0] }
 0x383   :  { %v4389_v46 = vor.u32 %v4989_v32, %v4388_v19  ;;  %v3974_v32 = vld [vmem:[%s7360_s8 + $0x138] sm:$0xf0] }
 0x384   :  { %2728 = vmatpush.bf16.msra.mxu2 %v3861_v36  ;;  %v4907_v36 = vld [vmem:[%s7360_s8 + $0x1ec] sm:$0xf] }
 0x385   :  { %2766 = vmatpush.bf16.msrb.mxu1 %v4309_v44  ;;  %v4213_v44 = vor.u32 %v4945_v45, %v4212_v4  ;;  %v4073_v62 = vor.u32 %v4907_v36, %v4070_v13  ;;  %v4931_v4 = vld [vmem:[%s7360_s8 + $0x2ac] sm:$0xf]  ;;  %v4166_v45 = vld [vmem:[%s7360_s8 + $0x2b8] sm:$0xf0] }
 0x386   :  { %2742 = vmatpush.bf16.msra.mxu3 %v3989_v11  ;;  %v4372_v11 = vld [vmem:[%s7360_s8 + $0x448] sm:$0xf]  ;;  %v4169_v19 = vor.u32 %v4931_v4, %v4166_v45  ;;  %v4963_v36 = vld [vmem:[%s7360_s8 + $0x3ac] sm:$0xf] }
 0x387   :  { %v4927_v13 = vld [vmem:[%s7360_s8 + $0x28c] sm:$0xf] }
 0x388   :  { %2729 = vmatpush.bf16.msra.mxu2 %v3845_v15  ;;  %v4985_v15 = vld [vmem:[%s7360_s8 + $0x454] sm:$0xf0] }
 0x389   :  { %2767 = vmatpush.bf16.msrb.mxu1 %v4293_v22  ;;  %v4517_v22 = vor.u32 %v5021_v8, %v4516_v30  ;;  %v4373_v34 = vor.u32 %v4985_v15, %v4372_v11  ;;  %v3958_v30 = vld [vmem:[%s7360_s8 + $0x118] sm:$0xf0]  ;;  %v4959_v11 = vld [vmem:[%s7360_s8 + $0x38c] sm:$0xf] }
 0x38a   :  { %2743 = vmatpush.bf16.msra.mxu3 %v3973_v60  ;;  %v4899_v60 = vld [vmem:[%s7360_s8 + $0x1ac] sm:$0xf]  ;;  %v4278_v15 = vld [vmem:[%s7360_s8 + $0x398] sm:$0xf0] }
 0x38c   :  { %2730 = vmatpush.bf16.msra.mxu2 %v3829_v23  ;;  %v4038_v23 = vld [vmem:[%s7360_s8 + $0x1b8] sm:$0xf0] }
 0x38d   :  { %2768 = vmatpush.bf16.msrb.mxu1 %v4277_v24  ;;  %v4501_v24 = vor.u32 %v5017_v61, %v4500_v17  ;;  %v4041_v54 = vor.u32 %v4899_v60, %v4038_v23  ;;  %v4281_v17 = vor.u32 %v4959_v11, %v4278_v15  ;;  %v4137_v61 = vor.u32 %v4923_v26, %v4134_v16  ;;  %v4262_v60 = vld [vmem:[%s7360_s8 + $0x378] sm:$0xf0]  ;;  %v4919_v23 = vld [vmem:[%s7360_s8 + $0x24c] sm:$0xf] }
 0x38e   :  { %2744 = vmatpush.bf16.msra.mxu3 %v3957_v38  ;;  %v4198_v38 = vld [vmem:[%s7360_s8 + $0x2f8] sm:$0xf0] }
 0x38f   :  { %2731 = vmatmul.bf16.vlgmr.msra.gmra.mxu2 %v6024_v42  ;;  %v4949_v42 = vld [vmem:[%s7360_s8 + $0x334] sm:$0xf0]  ;;  %v4201_v53 = vor.u32 %v4939_v39, %v4198_v38  ;;  %v4102_v39 = vld [vmem:[%s7360_s8 + $0x238] sm:$0xf0]  ;;  %v5027_v38 = vld [vmem:[%s7360_s8 + $0x5ac] sm:$0xf] }
 0x390   :  { %2779 = vmatpush.bf16.msrb.mxu2 %v4453_v27  ;;  %v4229_v47 = vor.u32 %v4949_v42, %v4228_v57  ;;  %v4357_v27 = vor.u32 %v4981_v14, %v4356_v5  ;;  %v4182_v57 = vld [vmem:[%s7360_s8 + $0x2d8] sm:$0xf0]  ;;  %v4009_v42 = vor.u32 %v4891_v52, %v4006_v55  ;;  %v4955_v14 = vld [vmem:[%s7360_s8 + $0x36c] sm:$0xf] }
 0x391   :  { %2769 = vmatpush.bf16.msrb.mxu1 %v4261_v43  ;;  %2745 = vmatmul.bf16.vlgmr.msra.gmra.mxu3 %v6570_v58  ;;  %v4485_v43 = vor.u32 %v5013_v3, %v4484_v1  ;;  %v4265_v1 = vor.u32 %v4955_v14, %v4262_v60  ;;  %v4911_v55 = vld [vmem:[%s7360_s8 + $0x20c] sm:$0xf] }
 0x392   :  { %2793 = vmatpush.bf16.msrb.mxu3 %v4581_v49  ;;  %v4341_v49 = vor.u32 %v4977_v31, %v4340_v28  ;;  %v4951_v31 = vld [vmem:[%s7360_s8 + $0x34c] sm:$0xf] }
 0x394   :  { %2780 = vmatpush.bf16.msrb.mxu2 %v4437_v50  ;;  %v4468_v50 = vld [vmem:[%s7360_s8 + $0x508] sm:$0xf] }
 0x395   :  { %2770 = vmatpush.bf16.msrb.mxu1 %v4245_v25  ;;  %v4326_v25 = vld [vmem:[%s7360_s8 + $0x3f8] sm:$0xf0] }
 0x396   :  { %2794 = vmatpush.bf16.msrb.mxu3 %v4565_v56  ;;  %v4935_v56 = vld [vmem:[%s7360_s8 + $0x2cc] sm:$0xf]  ;;  %v4329_v33 = vor.u32 %v4971_v12, %v4326_v25  ;;  %v4086_v12 = vld [vmem:[%s7360_s8 + $0x218] sm:$0xf0] }
 0x397   :  { %v4185_v2 = vor.u32 %v4935_v56, %v4182_v57  ;;  %v5023_v25 = vld [vmem:[%s7360_s8 + $0x58c] sm:$0xf]  ;;  %v4534_v56 = vld [vmem:[%s7360_s8 + $0x598] sm:$0xf0] }
 0x398   :  { %2781 = vmatpush.bf16.msrb.mxu2 %v4421_v63  ;;  %v4469_v63 = vor.u32 %v5009_v41, %v4468_v50  ;;  %v5038_v50 = vld [vmem:[%s7362_s10] sm:$0x30]  ;;  %v4105_v41 = vor.u32 %v4915_v35, %v4102_v39 }
 0x399   :  { %2771 = vmatpush.bf16.msrb.mxu1 %v4229_v47  ;;  %v4967_v47 = vld [vmem:[%s7360_s8 + $0x3cc] sm:$0xf] }
 0x39a   :  { %2795 = vmatpush.bf16.msrb.mxu3 %v4549_v59  ;;  %v4310_v59 = vld [vmem:[%s7360_s8 + $0x3d8] sm:$0xf0] }
 0x39b   :  { %v4313_v48 = vor.u32 %v4967_v47, %v4310_v59  ;;  %v4518_v47 = vld [vmem:[%s7360_s8 + $0x578] sm:$0xf0] }
 0x39c   :  { %2782 = vmatpush.bf16.msrb.mxu2 %v4405_v7  ;;  %v3993_v7 = vor.u32 %v4887_v0, %v3990_v40  ;;  %v4943_v0 = vld [vmem:[%s7360_s8 + $0x30c] sm:$0xf] }
 0x39d   :  { %2772 = vmatpush.bf16.msrb.mxu1 %v4213_v44  ;;  %v4150_v44 = vld [vmem:[%s7360_s8 + $0x298] sm:$0xf0]  ;;  %v5019_v40 = vld [vmem:[%s7360_s8 + $0x56c] sm:$0xf] }
 0x39e   :  { %2796 = vmatpush.bf16.msrb.mxu3 %v4533_v6  ;;  %v3977_v6 = vor.u32 %v4883_v10, %v3974_v32  ;;  %v4153_v8 = vor.u32 %v4927_v13, %v4150_v44  ;;  %v4521_v45 = vor.u32 %v5019_v40, %v4518_v47  ;;  %v4486_v32 = vld [vmem:[%s7360_s8 + $0x538] sm:$0xf0] }
 0x39f   :  { %v4470_v13 = vld [vmem:[%s7360_s8 + $0x518] sm:$0xf0] }
 0x3a0   :  { %2783 = vmatpush.bf16.msrb.mxu2 %v4389_v46  ;;  %2773 = vmatmul.bf16.vlgmr.msrb.gmra.mxu1 %v6641_v37 }
 0x3a1   :  { %2821 = vmatpush.bf16.msra.mxu1 %v4073_v62  ;;  %v4879_v62 = vld [vmem:[%s7360_s8 + $0x10c] sm:$0xf] }
 0x3a2   :  { %2797 = vmatpush.bf16.msrb.mxu3 %v4517_v22  ;;  %v5035_v22 = vld [vmem:[%s7360_s8 + $0x5ec] sm:$0xf] }
 0x3a4   :  { %2784 = vmatpush.bf16.msrb.mxu2 %v4373_v34  ;;  %v4582_v34 = vld [vmem:[%s7360_s8 + $0x5f8] sm:$0xf0] }
 0x3a5   :  { %2822 = vmatpush.bf16.msra.mxu1 %v4057_v18  ;;  %v3961_v18 = vor.u32 %v4879_v62, %v3958_v30  ;;  %v4585_v5 = vor.u32 %v5035_v22, %v4582_v34  ;;  %v2592_v22 = vpop.f32.mrf.mxu3 }
 0x3a6   :  { %2798 = vmatpush.bf16.msrb.mxu3 %v4501_v24  ;;  %v4118_v24 = vld [vmem:[%s7360_s8 + $0x258] sm:$0xf0] }
 0x3a7   :  { %v4121_v3 = vor.u32 %v4919_v23, %v4118_v24 }
 0x3a8   :  { %2785 = vmatpush.bf16.msrb.mxu2 %v4357_v27  ;;  %v5031_v27 = vld [vmem:[%s7360_s8 + $0x5cc] sm:$0xf] }
 0x3a9   :  { %2823 = vmatpush.bf16.msra.mxu1 %v4041_v54  ;;  %v4566_v54 = vld [vmem:[%s7360_s8 + $0x5d8] sm:$0xf0] }
 0x3aa   :  { %2799 = vmatpush.bf16.msrb.mxu3 %v4485_v43  ;;  %v4569_v28 = vor.u32 %v5031_v27, %v4566_v54  ;;  %v4550_v43 = vld [vmem:[%s7360_s8 + $0x5b8] sm:$0xf0] }
 0x3ab   :  { %v4553_v52 = vor.u32 %v5027_v38, %v4550_v43 }
 0x3ac   :  { %2786 = vmatpush.bf16.msrb.mxu2 %v4341_v49  ;;  %v4249_v49 = vor.u32 %v4951_v31, %v4246_v20  ;;  %v2648_v20 = vpop.f32.mrf.mxu0 }
 0x3ad   :  { %2824 = vmatpush.bf16.msra.mxu1 %v4025_v51  ;;  %v4588_v51 = vld [vmem:[%s7362_s10] sm:$0xf]  ;;  %v2594_v27 = vpop.f32.mrf.mxu3 }
 0x3ae   :  { %2800 = vmatpush.bf16.msrb.mxu3 %v4469_v63  ;;  %v4589_v57 = vor.u32 %v5038_v50, %v4588_v51 }
 0x3af   :  { %2787 = vmatmul.bf16.vlgmr.msrb.gmra.mxu2 %v6407_v9  ;;  %v4294_v9 = vld [vmem:[%s7360_s8 + $0x3b8] sm:$0xf0] }
 0x3b0   :  { %2835 = vmatpush.bf16.msra.mxu2 %v4201_v53  ;;  %v4297_v46 = vor.u32 %v4963_v36, %v4294_v9  ;;  %v4947_v53 = vld [vmem:[%s7360_s8 + $0x32c] sm:$0xf]  ;;  %v2933_v59 = vsel %vm2931_vm2, %v4589_v57, 0  ;;  %v2564_v36 = vpop.f32.mrf.mxu1 }
 0x3b1   :  { %2825 = vmatpush.bf16.msra.mxu1 %v4009_v42  ;;  %2801 = vmatmul.bf16.vlgmr.msrb.gmra.mxu3 %v6717_v21  ;;  %v4089_v42 = vor.u32 %v4911_v55, %v4086_v12 }
 0x3b2   :  { %2849 = vmatpush.bf16.msra.mxu3 %v4329_v33  ;;  %v4537_v33 = vor.u32 %v5023_v25, %v4534_v56 }
 0x3b4   :  { %2836 = vmatpush.bf16.msra.mxu2 %v4185_v2  ;;  %v4214_v2 = vld [vmem:[%s7360_s8 + $0x318] sm:$0xf0]  ;;  %v2650_v38 = vpop.f32.mrf.mxu0 }
 0x3b5   :  { %2826 = vmatpush.bf16.msra.mxu1 %v3993_v7  ;;  %v4217_v4 = vor.u32 %v4943_v0, %v4214_v2  ;;  %v5015_v7 = vld [vmem:[%s7360_s8 + $0x54c] sm:$0xf] }
 0x3b6   :  { %2850 = vmatpush.bf16.msra.mxu3 %v4313_v48  ;;  %v4502_v48 = vld [vmem:[%s7360_s8 + $0x558] sm:$0xf0] }
 0x3b7   :  { %v4505_v10 = vor.u32 %v5015_v7, %v4502_v48 }
 0x3b8   :  { %2837 = vmatpush.bf16.msra.mxu2 %v4169_v19  ;;  %v5011_v19 = vld [vmem:[%s7360_s8 + $0x52c] sm:$0xf] }
 0x3b9   :  { %2827 = vmatpush.bf16.msra.mxu1 %v3977_v6  ;;  %v4489_v9 = vor.u32 %v5011_v19, %v4486_v32  ;;  %v2907_v6 = vld [vmem:[%s7363_s1] sm:$0xff] }
 0x3ba   :  { %2851 = vmatpush.bf16.msra.mxu3 %v4297_v46  ;;  %v7180_v46 = vld [vmem:[%s7364_s9] sm:$0xf] }
 0x3bb   :  { %v1587_v11 = vperm.slane %v7180_v46, 0  ;;  %v1588_v50 = vperm.slane %v7180_v46, 1  ;;  %v1589_v32 = vperm.slane %v7180_v46, 2 }
 0x3bc   :  { %2838 = vmatpush.bf16.msra.mxu2 %v4153_v8  ;;  %v2566_v8 = vpop.f32.mrf.mxu1  ;;  %v2704_v56 = vpop.f32.mrf.mxu0 }
 0x3bd   :  { %2828 = vmatpush.bf16.msra.mxu1 %v3961_v18  ;;  %v2565_v15 = vadd.f32 %v2564_v36, %v1587_v11  ;;  %v2649_v55 = vadd.f32 %v2648_v20, %v1588_v50 }
 0x3be   :  { %2852 = vmatpush.bf16.msra.mxu3 %v4281_v17  ;;  %v2909_v17 = vld [vmem:[%s7363_s1 + $0x10] sm:$0xff] }
 0x3c0   :  { %2839 = vmatpush.bf16.msra.mxu2 %v4137_v61  ;;  %2829 = vmatmul.bf16.vlgmr.msra.gmra.mxu1 %v6570_v58  ;;  %v4230_v58 = vld [vmem:[%s7360_s8 + $0x338] sm:$0xf0] }
 0x3c1   :  { %2877 = vmatpush.bf16.msrb.mxu1 %v4585_v5  ;;  %v4233_v63 = vor.u32 %v4947_v53, %v4230_v58  ;;  %v2910_v61 = vld [vmem:[%s7363_s1 + $0x18] sm:$0xff]  ;;  %v2567_v5 = vadd.f32 %v2566_v8, %v1587_v11 }
 0x3c2   :  { %2853 = vmatpush.bf16.msra.mxu3 %v4265_v1  ;;  %v2912_v24 = vpack.c.bf16 %v2910_v61, %v2909_v17 }
 0x3c4   :  { %2840 = vmatpush.bf16.msra.mxu2 %v4121_v3  ;;  %v2706_v7 = vpop.f32.mrf.mxu0 }
 0x3c5   :  { %2878 = vmatpush.bf16.msrb.mxu1 %v4569_v28 }
 0x3c6   :  { %2854 = vmatpush.bf16.msra.mxu3 %v4249_v49 }
 0x3c8   :  { %2841 = vmatpush.bf16.msra.mxu2 %v4105_v41 }
 0x3c9   :  { %2879 = vmatpush.bf16.msrb.mxu1 %v4553_v52 }
 0x3ca   :  { %2855 = vmatpush.bf16.msra.mxu3 %v4233_v63 }
 0x3cc   :  { %2842 = vmatpush.bf16.msra.mxu2 %v4089_v42 }
 0x3cd   :  { %2880 = vmatpush.bf16.msrb.mxu1 %v4537_v33  ;;  %v2651_v33 = vadd.f32 %v2650_v38, %v1588_v50  ;;  %v5041_v38 = vld [vmem:[%s7366_s12 + $0x10] sm:$0xff] }
 0x3ce   :  { %2856 = vmatpush.bf16.msra.mxu3 %v4217_v4  ;;  %3030 = vmatpush.bf16.msra.mxu0 %v5041_v38 }
 0x3cf   :  { %2843 = vmatmul.bf16.vlgmr.msra.gmra.mxu2 %v6110_v29  ;;  %v5007_v29 = vld [vmem:[%s7360_s8 + $0x50c] sm:$0xf] }
 0x3d0   :  { %2942 = vmatpush.bf16.msrb.mxu2 %v2933_v59  ;;  %v4473_v44 = vor.u32 %v5007_v29, %v4470_v13 }
 0x3d1   :  { %2881 = vmatpush.bf16.msrb.mxu1 %v4521_v45  ;;  %2857 = vmatmul.bf16.vlgmr.msra.gmra.mxu3 %v6641_v37  ;;  %v2908_v37 = vld [vmem:[%s7363_s1 + $0x8] sm:$0xff] }
 0x3d2   :  { %v2578_v62 = vpop.f32.mrf.mxu2  ;;  %v2911_v30 = vpack.c.bf16 %v2908_v37, %v2907_v6 }
 0x3d3   :  { %v2579_v16 = vadd.f32 %v2578_v62, %v2565_v15 }
 0x3d5   :  { %2882 = vmatpush.bf16.msrb.mxu1 %v4505_v10  ;;  %v2593_v18 = vadd.f32 %v2592_v22, %v2579_v16 }
 0x3d9   :  { %2883 = vmatpush.bf16.msrb.mxu1 %v4489_v9 }
 0x3da   :  { %v2580_v26 = vpop.f32.mrf.mxu2 }
 0x3dc   :  { %v2606_v34 = vpop.f32.mrf.mxu1 }
 0x3dd   :  { %2884 = vmatpush.bf16.msrb.mxu1 %v4473_v44  ;;  %v2607_v14 = vadd.f32 %v2606_v34, %v2593_v18 }
 0x3df   :  { %4590 = vmatmul.msk.bf16.vlgmr.msrb.gmra.mxu2 %vm2924_vm3, %v2911_v30 }
 0x3e0   :  { %2885 = vmatmul.bf16.vlgmr.msrb.gmra.mxu1 %v6717_v21  ;;  %v2581_v21 = vadd.f32 %v2580_v26, %v2567_v5  ;;  %v2760_v26 = vpop.f32.mrf.mxu0 }
 0x3e2   :  { %v2620_v60 = vpop.f32.mrf.mxu2  ;;  %v2595_v1 = vadd.f32 %v2594_v27, %v2581_v21 }
 0x3e3   :  { %v2621_v23 = vadd.f32 %v2620_v60, %v2607_v14 }
 0x3e4   :  { %v2608_v54 = vpop.f32.mrf.mxu1 }
 0x3e5   :  { %v2609_v3 = vadd.f32 %v2608_v54, %v2595_v1 }
 0x3e8   :  { %v2762_v5 = vpop.f32.mrf.mxu0 }
 0x3ea   :  { %v2622_v28 = vpop.f32.mrf.mxu2 }
 0x3eb   :  { %v2623_v31 = vadd.f32 %v2622_v28, %v2609_v3 }
 0x3ed   :  { %v2662_v35 = vpop.f32.mrf.mxu1 }
 0x3ee   :  { %v2663_v25 = vadd.f32 %v2662_v35, %v2649_v55 }
 0x3ef   :  { %4591 = vmatmul.msk.bf16.gmra.mxu2 %vm2924_vm3, %v2912_v24 }
 0x3f0   :  { %v2816_v20 = vpop.f32.mrf.mxu0 }
 0x3f2   :  { %v2634_v39 = vpop.f32.mrf.mxu3 }
 0x3f3   :  { %v2635_v43 = vadd.f32 %v2634_v39, %v2621_v23  ;;  %v5040_v39 = vld [vmem:[%s7366_s12 + $0x8] sm:$0xff] }
 0x3f4   :  { %v2676_v52 = vpop.f32.mrf.mxu2  ;;  %2981 = vmatpush.bf16.msrb.mxu3 %v5040_v39  ;;  %v5047_v39 = vld [vmem:[%s7367_s16 + $0x8] sm:$0xff] }
 0x3f5   :  { %v2664_v49 = vpop.f32.mrf.mxu1  ;;  %v2891_v53 = vmax.f32 %v2635_v43, 0.0  ;;  %v2677_v63 = vadd.f32 %v2676_v52, %v2663_v25  ;;  %v5060_v52 = vld [vmem:[%s7367_s16 + $0x70] sm:$0xff] }
 0x3f6   :  { %v2665_v40 = vadd.f32 %v2664_v49, %v2651_v33  ;;  %v5061_v49 = vld [vmem:[%s7367_s16 + $0x78] sm:$0xff] }
 0x3f7   :  { %3434 = vmatpush.bf16.msrb.mxu0 %v5061_v49 }
 0x3f8   :  { %v2818_v43 = vpop.f32.mrf.mxu0 }
 0x3fa   :  { %v2636_v51 = vpop.f32.mrf.mxu3 }
 0x3fb   :  { %v2637_v41 = vadd.f32 %v2636_v51, %v2623_v31  ;;  %v1590_v51 = vperm.slane %v7180_v46, 3  ;;  %3435 = vmatpush.bf16.msrb.mxu0 %v5060_v52  ;;  %v5059_v46 = vld [vmem:[%s7367_s16 + $0x68] sm:$0xff]  ;;  %v5044_v52 = vld [vmem:[%s7368_s14 + $0x10] sm:$0xff] }
 0x3fc   :  { %v2678_v2 = vpop.f32.mrf.mxu2 }
 0x3fd   :  { %v2895_v58 = vmax.f32 %v2637_v41, 0.0  ;;  %v2718_v42 = vpop.f32.mrf.mxu1  ;;  %v2679_v47 = vadd.f32 %v2678_v2, %v2665_v40  ;;  %v2819_v55 = vadd.f32 %v2818_v43, %v1590_v51  ;;  %v5058_v40 = vld [vmem:[%s7367_s16 + $0x60] sm:$0xff] }
 0x3fe   :  { %v5046_v43 = vld [vmem:[%s7367_s16] sm:$0xff] }
 0x3ff   :  { %v7193_v12 = vadd.f32 %v2895_v58, %v2891_v53  ;;  %v2817_v53 = vadd.f32 %v2816_v20, %v1590_v51  ;;  %3436 = vmatpush.bf16.msrb.mxu0 %v5059_v46  ;;  %v5048_v20 = vld [vmem:[%s7367_s16 + $0x10] sm:$0xff]  ;;  %v5066_v46 = vld [vmem:[%s7367_s16 + $0xa0] sm:$0xff] }
 0x401   :  { %v2903_v49 = vmul.f32 0.5, %v7193_v12  ;;  %v5076_v12 = vld [vmem:[%s7367_s16 + $0xf0] sm:$0xff] }
 0x402   :  { %v2690_v57 = vpop.f32.mrf.mxu3 }
 0x403   :  { %v2691_v0 = vadd.f32 %v2690_v57, %v2677_v63  ;;  %v2872_v57 = vpop.f32.mrf.mxu0  ;;  %3437 = vmatpush.bf16.msrb.mxu0 %v5058_v40  ;;  %v3120_v51 = vpack.c.bf16 %v2903_v49, %v2903_v49  ;;  %v5064_v40 = vld [vmem:[%s7367_s16 + $0x90] sm:$0xff] }
 0x405   :  { %v2705_v59 = vadd.f32 %v2704_v56, %v2691_v0  ;;  %v2720_v19 = vpop.f32.mrf.mxu1  ;;  %v5039_v56 = vld [vmem:[%s7366_s12] sm:$0xff] }
 0x406   :  { %3004 = vmatpush.bf16.msra.mxu3 %v5039_v56  ;;  %v5067_v56 = vld [vmem:[%s7367_s16 + $0xa8] sm:$0xff] }
 0x407   :  { %v2719_v48 = vadd.f32 %v2718_v42, %v2705_v59 }
 0x409   :  { %v2892_v29 = vmax.f32 %v2719_v48, 0.0 }
 0x40a   :  { %v2692_v4 = vpop.f32.mrf.mxu3 }
 0x40b   :  { %v2693_v45 = vadd.f32 %v2692_v4, %v2679_v47  ;;  %v2874_v48 = vpop.f32.mrf.mxu0 }
 0x40d   :  { %v2707_v10 = vadd.f32 %v2706_v7, %v2693_v45  ;;  %v5057_v45 = vld [vmem:[%s7367_s16 + $0x58] sm:$0xff] }
 0x40e   :  { %3438 = vmatpush.bf16.msrb.mxu0 %v5057_v45  ;;  %v5063_v45 = vld [vmem:[%s7367_s16 + $0x88] sm:$0xff] }
 0x40f   :  { %v2721_v36 = vadd.f32 %v2720_v19, %v2707_v10 }
 0x411   :  { %v2896_v13 = vmax.f32 %v2721_v36, 0.0 }
 0x412   :  { %v2732_v9 = vpop.f32.mrf.mxu2 }
 0x413   :  { %v2733_v44 = vadd.f32 %v2732_v9, %v1589_v32  ;;  %v7196_v6 = vadd.f32 %v2896_v13, %v2892_v29  ;;  %v5056_v9 = vld [vmem:[%s7367_s16 + $0x50] sm:$0xff] }
 0x414   :  { %v2746_v37 = vpop.f32.mrf.mxu3  ;;  %3439 = vmatpush.bf16.msrb.mxu0 %v5056_v9  ;;  %v5081_v9 = vld [vmem:[%s7367_s16 + $0x118] sm:$0xff] }
 0x415   :  { %v2747_v62 = vadd.f32 %v2746_v37, %v2733_v44  ;;  %v5055_v37 = vld [vmem:[%s7367_s16 + $0x48] sm:$0xff] }
 0x417   :  { %v2761_v22 = vadd.f32 %v2760_v26, %v2747_v62 }
 0x418   :  { %3440 = vmatpush.bf16.msrb.mxu0 %v5055_v37 }
 0x41a   :  { %v2734_v30 = vpop.f32.mrf.mxu2 }
 0x41b   :  { %v2735_v8 = vadd.f32 %v2734_v30, %v1589_v32 }
 0x41c   :  { %v2748_v11 = vpop.f32.mrf.mxu3 }
 0x41d   :  { %v2749_v15 = vadd.f32 %v2748_v11, %v2735_v8  ;;  %v2774_v16 = vpop.f32.mrf.mxu1  ;;  %v5054_v8 = vld [vmem:[%s7367_s16 + $0x40] sm:$0xff] }
 0x41e   :  { %v2775_v34 = vadd.f32 %v2774_v16, %v2761_v22  ;;  %3441 = vmatpush.bf16.msrb.mxu0 %v5054_v8  ;;  %v5084_v11 = vld [vmem:[%s7365_s11] ss:$0 sm:$0xff] }
 0x41f   :  { %v2763_v21 = vadd.f32 %v2762_v5, %v2749_v15 }
 0x425   :  { %v2776_v14 = vpop.f32.mrf.mxu1 }
 0x426   :  { %v2777_v23 = vadd.f32 %v2776_v14, %v2763_v21  ;;  %v5052_v14 = vld [vmem:[%s7367_s16 + $0x30] sm:$0xff] }
 0x432   :  { %v2788_v18 = vpop.f32.mrf.mxu2 }
 0x433   :  { %v2789_v17 = vadd.f32 %v2788_v18, %v2775_v34  ;;  %v5053_v18 = vld [vmem:[%s7367_s16 + $0x38] sm:$0xff] }
 0x434   :  { %v2802_v61 = vpop.f32.mrf.mxu3 }
 0x435   :  { %v2803_v60 = vadd.f32 %v2802_v61, %v2789_v17  ;;  %v5043_v61 = vld [vmem:[%s7368_s14 + $0x8] sm:$0xff] }
 0x436   :  { %3107 = vmatpush.bf16.msra.mxu2 %v5043_v61 }
 0x437   :  { %v2893_v3 = vmax.f32 %v2803_v60, 0.0 }
 0x43a   :  { %v2790_v24 = vpop.f32.mrf.mxu2 }
 0x43b   :  { %v2791_v27 = vadd.f32 %v2790_v24, %v2777_v23  ;;  %v5051_v23 = vld [vmem:[%s7367_s16 + $0x28] sm:$0xff] }
 0x43c   :  { %v2804_v54 = vpop.f32.mrf.mxu3 }
 0x43d   :  { %v2805_v1 = vadd.f32 %v2804_v54, %v2791_v27  ;;  %v2830_v35 = vpop.f32.mrf.mxu1  ;;  %v5050_v54 = vld [vmem:[%s7367_s16 + $0x20] sm:$0xff] }
 0x43e   :  { %v2831_v25 = vadd.f32 %v2830_v35, %v2817_v53  ;;  %v2904_v35 = vmul.f32 0.5, %v7196_v6  ;;  %v5042_v6 = vld [vmem:[%s7368_s14] sm:$0xff]  ;;  %v5069_v53 = vld [vmem:[%s7367_s16 + $0xb8] sm:$0xff] }
 0x43f   :  { %v2897_v28 = vmax.f32 %v2805_v1, 0.0  ;;  %3108 = vmatpush.bf16.msra.mxu2 %v5042_v6 }
 0x440   :  { %v3121_v38 = vpack.c.bf16 %v2904_v35, %v2904_v35 }
 0x441   :  { %v7198_v31 = vadd.f32 %v2897_v28, %v2893_v3  ;;  %v5049_v3 = vld [vmem:[%s7367_s16 + $0x18] sm:$0xff] }
 0x445   :  { %v2832_v41 = vpop.f32.mrf.mxu1 }
 0x446   :  { %v2833_v63 = vadd.f32 %v2832_v41, %v2819_v55  ;;  %v5045_v41 = vld [vmem:[%s7368_s14 + $0x18] sm:$0xff]  ;;  %v5068_v55 = vld [vmem:[%s7367_s16 + $0xb0] sm:$0xff] }
 0x447   :  { %3079 = vmatpush.bf16.msra.mxu1 %v5045_v41 }
 0x44b   :  { %3080 = vmatpush.bf16.msra.mxu1 %v5044_v52 }
 0x44f   :  { %3447 = vmatpush.bf16.msrb.mxu1 %v5069_v53 }
 0x452   :  { %v2844_v50 = vpop.f32.mrf.mxu2 }
 0x453   :  { %v2845_v42 = vadd.f32 %v2844_v50, %v2831_v25  ;;  %v5077_v50 = vld [vmem:[%s7367_s16 + $0xf8] sm:$0xff]  ;;  %v5074_v25 = vld [vmem:[%s7367_s16 + $0xe0] sm:$0xff]  ;;  %3448 = vmatpush.bf16.msrb.mxu1 %v5068_v55 }
 0x454   :  { %v2858_v58 = vpop.f32.mrf.mxu3  ;;  %3460 = vmatpush.bf16.msrb.mxu2 %v5077_v50 }
 0x455   :  { %v2859_v47 = vadd.f32 %v2858_v58, %v2845_v42  ;;  %v5075_v58 = vld [vmem:[%s7367_s16 + $0xe8] sm:$0xff] }
 0x457   :  { %v2873_v7 = vadd.f32 %v2872_v57, %v2859_v47  ;;  %v5073_v57 = vld [vmem:[%s7367_s16 + $0xd8] sm:$0xff]  ;;  %3449 = vmatpush.bf16.msrb.mxu1 %v5067_v56  ;;  %v5070_v47 = vld [vmem:[%s7367_s16 + $0xc0] sm:$0xff] }
 0x458   :  { %3461 = vmatpush.bf16.msrb.mxu2 %v5076_v12 }
 0x45a   :  { %v2846_v33 = vpop.f32.mrf.mxu2 }
 0x45b   :  { %v2847_v0 = vadd.f32 %v2846_v33, %v2833_v63  ;;  %v5072_v63 = vld [vmem:[%s7367_s16 + $0xd0] sm:$0xff]  ;;  %3450 = vmatpush.bf16.msrb.mxu1 %v5066_v46 }
 0x45c   :  { %v2860_v59 = vpop.f32.mrf.mxu3  ;;  %3462 = vmatpush.bf16.msrb.mxu2 %v5075_v58 }
 0x45d   :  { %v2886_v2 = vpop.f32.mrf.mxu1  ;;  %v2861_v4 = vadd.f32 %v2860_v59, %v2847_v0  ;;  %v5065_v0 = vld [vmem:[%s7367_s16 + $0x98] sm:$0xff] }
 0x45e   :  { %v2887_v19 = vadd.f32 %v2886_v2, %v2873_v7  ;;  %v5071_v2 = vld [vmem:[%s7367_s16 + $0xc8] sm:$0xff]  ;;  %v5062_v7 = vld [vmem:[%s7367_s16 + $0x80] sm:$0xff] }
 0x45f   :  { %v2875_v32 = vadd.f32 %v2874_v48, %v2861_v4  ;;  %3451 = vmatpush.bf16.msrb.mxu1 %v5065_v0 }
 0x460   :  { %v2894_v13 = vmax.f32 %v2887_v19, 0.0  ;;  %3463 = vmatpush.bf16.msrb.mxu2 %v5074_v25  ;;  %v5085_v19 = vld [vmem:[%s7369_s13] ss:$0 sm:$0xff] }
 0x462   :  { %v2944_v10 = vpop.f32.mrf.mxu2 }
 0x463   :  { %v2945_v27 = vadd.f32 %v5084_v11, %v2944_v10  ;;  %3452 = vmatpush.bf16.msrb.mxu1 %v5064_v40 }
 0x464   :  { %3464 = vmatpush.bf16.msrb.mxu2 %v5073_v57 }
 0x465   :  { %v2888_v36 = vpop.f32.mrf.mxu1  ;;  %v2954_v1 = vmax.f32 %v2945_v27, 0.0  ;;  %v5078_v27 = vld [vmem:[%s7367_s16 + $0x100] sm:$0xff] }
 0x466   :  { %v2889_v29 = vadd.f32 %v2888_v36, %v2875_v32 }
 0x467   :  { %3453 = vmatpush.bf16.msrb.mxu1 %v5063_v45 }
 0x468   :  { %v2898_v44 = vmax.f32 %v2889_v29, 0.0  ;;  %3465 = vmatpush.bf16.msrb.mxu2 %v5072_v63 }
 0x46a   :  { %v7231_v62 = vadd.f32 %v2898_v44, %v2894_v13  ;;  %v2946_v30 = vpop.f32.mrf.mxu2  ;;  %v5080_v13 = vld [vmem:[%s7367_s16 + $0x110] sm:$0xff] }
 0x46b   :  { %v2947_v15 = vadd.f32 %v5084_v11, %v2946_v30  ;;  %3454 = vmatpush.bf16.msrb.mxu1 %v5062_v7 }
 0x46c   :  { %3466 = vmatpush.bf16.msrb.mxu2 %v5071_v2 }
 0x46d   :  { %v2955_v22 = vmax.f32 %v2947_v15, 0.0 }
 0x46f   :  { %v2958_v28 = vpack.c.bf16 %v2955_v22, %v2954_v1 }
 0x470   :  { %3467 = vmatpush.bf16.msrb.mxu2 %v5070_v47 }
 0x472   :  { %v2949_v26 = vpop.f32.mrf.mxu2 }
 0x473   :  { %v2950_v16 = vadd.f32 %v5084_v11, %v2949_v26 }
 0x475   :  { %v2956_v34 = vmax.f32 %v2950_v16, 0.0  ;;  %v5086_v16 = vld [vmem:[%s7370_s17] ss:$0 sm:$0xff] }
 0x477   :  { %v2961_v17 = vpack.c.bf16 %v2956_v34, %v2955_v22 }
 0x479   :  { %4596 = vmatmul.msk.bf16.vlgmr.msrb.gmra.mxu3 %vm2970_vm4, %v2961_v17 }
 0x47a   :  { %v2951_v5 = vpop.f32.mrf.mxu2  ;;  %3421 = vmatpush.bf16.msrb.mxu3 %v5053_v18 }
 0x47b   :  { %v2952_v60 = vadd.f32 %v5084_v11, %v2951_v5  ;;  %v2906_v5 = vmul.f32 0.5, %v7231_v62  ;;  %v5087_v62 = vld [vmem:[%s7371_s15] ss:$0 sm:$0xff] }
 0x47d   :  { %v2957_v21 = vmax.f32 %v2952_v60, 0.0  ;;  %v3123_v60 = vpack.c.bf16 %v2906_v5, %v2906_v5 }
 0x47e   :  { %3422 = vmatpush.bf16.msrb.mxu3 %v5052_v14 }
 0x47f   :  { %v3011_v24 = vpack.c.bf16 %v2957_v21, %v2956_v34  ;;  %v2905_v21 = vmul.f32 0.5, %v7198_v31 }
 0x481   :  { %4606 = vmatmul.msk.bf16.vlgmr.msra.gmra.mxu0 %vm2970_vm4, %v3011_v24  ;;  %v5079_v24 = vld [vmem:[%s7367_s16 + $0x108] sm:$0xff] }
 0x482   :  { %3423 = vmatpush.bf16.msrb.mxu3 %v5051_v23  ;;  %v3122_v23 = vpack.c.bf16 %v2905_v21, %v2905_v21 }
 0x486   :  { %3424 = vmatpush.bf16.msrb.mxu3 %v5050_v54 }
 0x489   :  { %4601 = vmatmul.msk.bf16.vlgmr.msra.gmra.mxu3 %vm2970_vm4, %v2958_v28 }
 0x48a   :  { %3425 = vmatpush.bf16.msrb.mxu3 %v5049_v3 }
 0x48e   :  { %3426 = vmatpush.bf16.msrb.mxu3 %v5048_v20 }
 0x491   :  { %3442 = vmatmul.bf16.vlgmr.msrb.gmra.mxu0 %v3121_v38 }
 0x492   :  { %3427 = vmatpush.bf16.msrb.mxu3 %v5047_v39 }
 0x496   :  { %3428 = vmatpush.bf16.msrb.mxu3 %v5046_v43 }
 0x499   :  { %3429 = vmatmul.bf16.vlgmr.msrb.gmra.mxu3 %v3120_v51 }
 0x49a   :  { %3477 = vmatpush.bf16.msra.mxu3 %v5081_v9 }
 0x49e   :  { %3478 = vmatpush.bf16.msra.mxu3 %v5080_v13 }
 0x4a2   :  { %3479 = vmatpush.bf16.msra.mxu3 %v5079_v24 }
 0x4a6   :  { %3480 = vmatpush.bf16.msra.mxu3 %v5078_v27 }
 0x4fc   :  { %v2983_v42 = vpop.f32.mrf.mxu3 }
 0x4fe   :  { %v3032_v33 = vpop.f32.mrf.mxu0 }
 0x504   :  { %v2985_v59 = vpop.f32.mrf.mxu3 }
 0x506   :  { %v3034_v4 = vpop.f32.mrf.mxu0 }
 0x50c   :  { %v3006_v48 = vpop.f32.mrf.mxu3 }
 0x50d   :  { %v3007_v10 = vadd.f32 %v3006_v48, %v2983_v42 }
 0x50e   :  { %v3443_v32 = vpop.f32.mrf.mxu0 }
 0x50f   :  { %v3037_v36 = vadd.f32 %v3032_v33, %v3007_v10 }
 0x511   :  { %v3043_v29 = vadd.f32 %v5085_v19, %v3037_v36 }
 0x513   :  { %v3045_v44 = vmax.f32 %v3043_v29, 0.0 }
 0x514   :  { %v3008_v37 = vpop.f32.mrf.mxu3 }
 0x515   :  { %v3047_v30 = vpack.c.bf16 %v3045_v44, %v3045_v44  ;;  %v3009_v8 = vadd.f32 %v3008_v37, %v2985_v59 }
 0x516   :  { %v3445_v11 = vpop.f32.mrf.mxu0 }
 0x517   :  { %v3038_v15 = vadd.f32 %v3034_v4, %v3009_v8  ;;  %4624 = vmatmul.msk.bf16.vlgmr.msra.gmra.mxu2 %vm3069_vm5, %v3047_v30 }
 0x519   :  { %v3044_v26 = vadd.f32 %v5085_v19, %v3038_v15 }
 0x51b   :  { %v3046_v22 = vmax.f32 %v3044_v26, 0.0 }
 0x51c   :  { %v3430_v34 = vpop.f32.mrf.mxu3 }
 0x51d   :  { %v3052_v18 = vpack.c.bf16 %v3046_v22, %v3046_v22  ;;  %v3431_v17 = vadd.f32 %v5086_v16, %v3430_v34 }
 0x51f   :  { %4615 = vmatmul.msk.bf16.vlgmr.msra.gmra.mxu1 %vm3069_vm5, %v3052_v18  ;;  %v3444_v61 = vadd.f32 %v3443_v32, %v3431_v17 }
 0x524   :  { %v3432_v14 = vpop.f32.mrf.mxu3 }
 0x527   :  { %3468 = vmatmul.bf16.vlgmr.msrb.gmra.mxu2 %v3123_v60 }
 0x52f   :  { %3455 = vmatmul.bf16.vlgmr.msrb.gmra.mxu1 %v3122_v23 }
 0x59a   :  { %v3110_v54 = vpop.f32.mrf.mxu2 }
 0x59c   :  { %v3082_v1 = vpop.f32.mrf.mxu1 }
 0x59d   :  { %v3111_v3 = vadd.f32 %v3110_v54, %v3082_v1 }
 0x59f   :  { %v3118_v31 = vadd.f32 %v5087_v62, %v3111_v3 }
 0x5a1   :  { %v3119_v28 = vmax.f32 %v3118_v31, 0.0 }
 0x5a2   :  { %v3112_v20 = vpop.f32.mrf.mxu2 }
 0x5a3   :  { %v3124_v35 = vpack.c.bf16 %v3119_v28, %v3119_v28 }
 0x5a4   :  { %v3084_v39 = vpop.f32.mrf.mxu1 }
 0x5a5   :  { %4769 = vmatmul.msk.bf16.vlgmr.msra.gmra.mxu3 %vm3417_vm6, %v3124_v35 }
 0x5aa   :  { %v3469_v38 = vpop.f32.mrf.mxu2 }
 0x5ac   :  { %v3456_v43 = vpop.f32.mrf.mxu1 }
 0x5ad   :  { %v3457_v49 = vadd.f32 %v3456_v43, %v3444_v61 }
 0x5af   :  { %v3470_v51 = vadd.f32 %v3469_v38, %v3457_v49 }
 0x5b2   :  { %v3471_v6 = vpop.f32.mrf.mxu2 }
 0x5b4   :  { %v3458_v50 = vpop.f32.mrf.mxu1 }
 0x628   :  { %v3482_v41 = vpop.f32.mrf.mxu3 }
 0x629   :  { %v3483_v12 = vadd.f32 %v3482_v41, %v3470_v51 }
 0x62b   :  { %v3486_v52 = vmax.f32 %v3483_v12, 0.0 }
 0x62d   :  { %3487 = vst [vmem:[%s7372_s18] sm:$0xff] %v3486_v52 }
 0x630   :  { %v3484_v53 = vpop.f32.mrf.mxu3 }

</bundles_post_ra>
